<compile_context>
chip_gen: v7x
topology: tpu7x:2x2x1
jax: 0.10.0
libtpu: 0.0.40
codegen_flags: <defaults>
</compile_context>

<pallas_src>
import functools

import jax
import jax.numpy as jnp
from jax import lax
from jax.experimental import pallas as pl
from jax.experimental.pallas import tpu as pltpu


_VMEM_LIMIT = 32 * 1024 * 1024   # safe scoped-VMEM budget across v5e/v6e/v7x

_TM_MIN = 16      # bf16 packs 16 rows per sublane group -> pad batch to >= 16
_TK_BB = 1536     # backbone-FC reduction tile (mult. of 256; 2 K-steps at 3x32x32)
_D_EMB = 512      # embedding dim (InceptionResnetV1 last_linear)


def _round_up(x, m):
    return (x + m - 1) // m * m


def _head_tile(num_classes):
    # Larger class tiles amortize per-step overhead at realistic ArcFace sizes;
    # 512 at demo size keeps >=2 blocks so v7x megacore still shards the axis.
    if num_classes >= 65536:
        return 2048
    if num_classes >= 8192:
        return 1024
    return 512


# ----------------------------------------------------------------------------
# Kernel 1: backbone tail FC (flattened image -> 512-d) + F.normalize(rows).
#   Grid over the reduction (flat-pixel) axis only; full emb row (tn == 512)
#   is resident, so bias-add + L2 row normalization happen in the K-finalize.
# ----------------------------------------------------------------------------
def _backbone_fc_norm_kernel(x_ref, w_ref, b_ref, emb_ref, emb_bf16_ref,
                             acc_ref):
    k = pl.program_id(0)

    @pl.when(k == 0)
    def _():
        acc_ref[...] = jnp.zeros_like(acc_ref)

    acc_ref[...] += jnp.dot(x_ref[...], w_ref[...],
                            preferred_element_type=jnp.float32)

    @pl.when(k == pl.num_programs(0) - 1)
    def _():
        feat = acc_ref[...] + b_ref[...]                      # (MB, D) f32
        inv_n = lax.rsqrt(jnp.maximum(
            jnp.sum(feat * feat, axis=-1, keepdims=True), 1e-24))
        emb = feat * inv_n
        emb_ref[...] = emb
        emb_bf16_ref[...] = emb.astype(jnp.bfloat16)


def backbone_fc_norm(x_bf16, w_bf16, b_f32, *, tk=_TK_BB):
    """x:(MB,Fp) bf16, w:(Fp,D) bf16, b:(1,D) f32 -> (emb f32, emb bf16)."""
    MB, Fp = x_bf16.shape
    D = w_bf16.shape[1]
    assert Fp % tk == 0
    ksteps = Fp // tk
    cost = pl.CostEstimate(
        flops=2 * MB * Fp * D + 3 * MB * D,
        transcendentals=MB,
        bytes_accessed=(MB * Fp + Fp * D) * 2 + D * 4 + MB * D * 6)
    return pl.pallas_call(
        _backbone_fc_norm_kernel,
        out_shape=(
            jax.ShapeDtypeStruct((MB, D), jnp.float32),       # normalized emb
            jax.ShapeDtypeStruct((MB, D), jnp.bfloat16),      # bf16 copy (head lhs)
        ),
        grid_spec=pltpu.PrefetchScalarGridSpec(
            num_scalar_prefetch=0,
            grid=(ksteps,),
            in_specs=[
                pl.BlockSpec((MB, tk), lambda k: (0, k)),
                pl.BlockSpec((tk, D), lambda k: (k, 0)),
                pl.BlockSpec((1, D), lambda k: (0, 0)),
            ],
            out_specs=(
                pl.BlockSpec((MB, D), lambda k: (0, 0)),
                pl.BlockSpec((MB, D), lambda k: (0, 0)),
            ),
            scratch_shapes=[pltpu.VMEM((MB, D), jnp.float32)]),
        compiler_params=pltpu.CompilerParams(
            dimension_semantics=("arbitrary",),
            vmem_limit_bytes=_VMEM_LIMIT),
        cost_estimate=cost,
    )(x_bf16, w_bf16, b_f32)


# ----------------------------------------------------------------------------
# Kernel 2: ElasticArcFace head, tiled over the class dimension (parallel axis).
#   cos     = clamp((emb_bf16 @ W_blk) * inv_wn_blk, -1, 1)
#   logits  = s * (cos*cos(m) - sqrt(1-cos^2)*sin(m))  at the label column
#             s * cos                                   elsewhere
#   inv_wn (per-class 1/||w_c||) and cos(m)/sin(m) are precomputed inputs.
# ----------------------------------------------------------------------------
def _elastic_head_kernel(emb_ref, w_ref, invwn_ref, lbl_ref, cosm_ref, sinm_ref,
                         log_ref, *, scale):
    c = pl.program_id(0)
    tc = log_ref.shape[1]

    raw = jnp.dot(emb_ref[...], w_ref[...],
                  preferred_element_type=jnp.float32)         # (MB, tc) f32
    cos_t = jnp.clip(raw * invwn_ref[...], -1.0, 1.0)
    # theta in [0, pi] => sin(theta) = sqrt(1 - cos^2) >= 0 (exact identity).
    sin_t = jnp.sqrt(jnp.maximum(1.0 - cos_t * cos_t, 0.0))

    lbl = lbl_ref[...]                                        # (MB, 1) int32
    cls = lax.broadcasted_iota(jnp.int32, cos_t.shape, 1) + c * tc
    is_lbl = (cls == lbl) & (lbl >= 0)
    cm = jnp.where(is_lbl, cosm_ref[...], 1.0)
    sm = jnp.where(is_lbl, sinm_ref[...], 0.0)

    log_ref[...] = (cos_t * cm - sin_t * sm) * scale


def elastic_head(emb_bf16, w_head_bf16, inv_wn, labels_col, cos_m, sin_m,
                 scale, *, tc):
    """emb:(MB,D) bf16, w:(D,Cp) bf16, inv_wn:(1,Cp) f32 -> logits (MB,Cp) f32."""
    MB, D = emb_bf16.shape
    Cp = w_head_bf16.shape[1]
    assert Cp % tc == 0
    cost = pl.CostEstimate(
        flops=2 * MB * D * Cp + 8 * MB * Cp,
        transcendentals=MB * Cp,       # 1 sqrt per logit
        bytes_accessed=(MB * D + D * Cp) * 2 + Cp * 4 + MB * Cp * 4 + MB * 16)
    kernel = functools.partial(_elastic_head_kernel, scale=float(scale))
    return pl.pallas_call(
        kernel,
        out_shape=jax.ShapeDtypeStruct((MB, Cp), jnp.float32),
        grid_spec=pltpu.PrefetchScalarGridSpec(
            num_scalar_prefetch=0,
            grid=(Cp // tc,),
            in_specs=[
                pl.BlockSpec((MB, D), lambda c: (0, 0)),      # resident lhs
                pl.BlockSpec((D, tc), lambda c: (0, c)),
                pl.BlockSpec((1, tc), lambda c: (0, c)),
                pl.BlockSpec((MB, 1), lambda c: (0, 0)),
                pl.BlockSpec((MB, 1), lambda c: (0, 0)),
                pl.BlockSpec((MB, 1), lambda c: (0, 0)),
            ],
            out_specs=pl.BlockSpec((MB, tc), lambda c: (0, c))),
        compiler_params=pltpu.CompilerParams(
            dimension_semantics=("parallel",),                # megacore on v7x
            vmem_limit_bytes=_VMEM_LIMIT),
        cost_estimate=cost,
    )(emb_bf16, w_head_bf16, inv_wn, labels_col, cos_m, sin_m)


# ----------------------------------------------------------------------------
# ElasticFace_backbone_inception forward
# ----------------------------------------------------------------------------
def elasticface_forward(x, labels, params, margin_key, *, num_classes,
                        scale=64.0, margin=0.1, margin_std=0.0125):
    """x: (B, 3, H, W) NCHW f32; labels: (B,) int32.
    Returns (id_features (B,512) f32, id_class (B,num_classes) f32)."""
    B = x.shape[0]
    x_flat = x.reshape(B, -1)
    F = x_flat.shape[1]

    w_bb = params["w_backbone"]          # (Fp, D) bf16, padded at init
    b_bb = params["b_backbone"]          # (1, D) f32
    w_hd = params["w_head"]              # (D, Cp) bf16, padded at init
    inv_wn = params["inv_wn_head"]       # (1, Cp) f32, padded at init
    Fp, D = w_bb.shape
    Cp = w_hd.shape[1]
    C = num_classes
    tc = _head_tile(C)
    assert F <= Fp and C <= Cp

    # ElasticArcFace: per-sample margin ~ Normal(m, std), sampled each forward.
    margins = margin + margin_std * jax.random.normal(
        margin_key, (B, 1), jnp.float32)

    # Pad only the small per-step tensors (activations, labels, margins).
    MB = _round_up(max(B, _TM_MIN), _TM_MIN)
    x_p = jnp.pad(x_flat.astype(jnp.bfloat16), ((0, MB - B), (0, Fp - F)))
    lbl_p = jnp.pad(labels.reshape(B, 1).astype(jnp.int32),
                    ((0, MB - B), (0, 0)), constant_values=-1)
    mrg_p = jnp.pad(margins, ((0, MB - B), (0, 0)))
    cos_m = jnp.cos(mrg_p)               # (MB,1) trig hoisted out of the kernel
    sin_m = jnp.sin(mrg_p)

    emb, emb_bf16 = backbone_fc_norm(x_p, w_bb, b_bb)          # (MB, D)
    logits = elastic_head(emb_bf16, w_hd, inv_wn, lbl_p, cos_m, sin_m,
                          scale, tc=tc)                        # (MB, Cp)
    return emb[:B], logits[:B, :C]


def init_params(key, *, flat_dim, emb_dim, num_classes):
    """Weights stored bf16 + padded (and per-class inv norms precomputed) so the
    jitted forward never re-casts or re-pads multi-MB weight tensors."""
    k1, k2 = jax.random.split(key)
    Fp = _round_up(flat_dim, _TK_BB)
    Cp = _round_up(num_classes, _head_tile(num_classes))

    # TODO(synk): InceptionResnetV1 trunk not reproduced; flatten->fc(512) tail
    #             stands in as the backbone (synthetic weights).
    w_bb = 0.01 * jax.random.normal(k1, (flat_dim, emb_dim), jnp.float32)
    # ElasticArcFace kernel: nn.init.normal_(std=0.01), stored as (in, out).
    w_hd = 0.01 * jax.random.normal(k2, (emb_dim, num_classes), jnp.float32)

    w_bb_p = jnp.pad(w_bb, ((0, Fp - flat_dim), (0, 0))).astype(jnp.bfloat16)
    w_hd_p = jnp.pad(w_hd, ((0, 0), (0, Cp - num_classes))).astype(jnp.bfloat16)
    # Per-class 1/||w_c|| (F.normalize over dim=0), precomputed once.
    inv_wn = lax.rsqrt(jnp.maximum(
        jnp.sum(jnp.square(w_hd_p.astype(jnp.float32)), axis=0, keepdims=True),
        1e-24))
    return {
        "w_backbone": w_bb_p,                                   # (Fp, D) bf16
        "b_backbone": jnp.zeros((1, emb_dim), jnp.float32),     # (1, D) f32
        "w_head": w_hd_p,                                       # (D, Cp) bf16
        "inv_wn_head": inv_wn.astype(jnp.float32),              # (1, Cp) f32
    }


if __name__ == "__main__":
    B, C_IN, H, W = 8, 3, 32, 32
    NUM_CLASSES = 1000
    EMB_DIM = _D_EMB
    FLAT = C_IN * H * W
    SCALE, MARGIN, MARGIN_STD = 64.0, 0.1, 0.0125

    root = jax.random.PRNGKey(0)
    k_x, k_lbl, k_p, k_m = jax.random.split(root, 4)

    x = jax.random.normal(k_x, (B, C_IN, H, W), jnp.float32)
    labels = jax.random.randint(k_lbl, (B,), 0, NUM_CLASSES, jnp.int32)
    params = init_params(k_p, flat_dim=FLAT, emb_dim=EMB_DIM,
                         num_classes=NUM_CLASSES)

    fwd = jax.jit(functools.partial(
        elasticface_forward, num_classes=NUM_CLASSES,
        scale=SCALE, margin=MARGIN, margin_std=MARGIN_STD))
    id_features, id_class = fwd(x, labels, params, k_m)
    jax.block_until_ready((id_features, id_class))

    # ---- shape / sanity checks ----
    assert id_features.shape == (B, EMB_DIM)
    assert id_class.shape == (B, NUM_CLASSES)
    assert bool(jnp.all(jnp.isfinite(id_features)))
    assert bool(jnp.all(jnp.isfinite(id_class)))
    norms = jnp.sqrt(jnp.sum(id_features * id_features, axis=-1))
    assert bool(jnp.all(jnp.abs(norms - 1.0) < 1e-2))            # F.normalize rows

    # ---- pure-JAX reference (same bf16 operands, f32 math) ----
    xb = x.reshape(B, -1).astype(jnp.bfloat16).astype(jnp.float32)
    wb = params["w_backbone"][:FLAT].astype(jnp.float32)
    feat = xb @ wb + params["b_backbone"]
    emb_ref = feat / jnp.linalg.norm(feat, axis=-1, keepdims=True)
    emb_bf = emb_ref.astype(jnp.bfloat16).astype(jnp.float32)
    wh = params["w_head"][:, :NUM_CLASSES].astype(jnp.float32)
    cos_t = jnp.clip((emb_bf @ wh) * params["inv_wn_head"][:, :NUM_CLASSES],
                     -1.0, 1.0)
    sin_t = jnp.sqrt(jnp.maximum(1.0 - cos_t * cos_t, 0.0))
    m_ref = MARGIN + MARGIN_STD * jax.random.normal(k_m, (B, 1), jnp.float32)
    onehot = jax.nn.one_hot(labels, NUM_CLASSES, dtype=jnp.float32)
    logits_ref = SCALE * jnp.where(
        onehot > 0, cos_t * jnp.cos(m_ref) - sin_t * jnp.sin(m_ref), cos_t)
    assert bool(jnp.allclose(id_features, emb_ref, rtol=1e-2, atol=1e-3))
    assert bool(jnp.allclose(id_class, logits_ref, rtol=1e-2, atol=5e-2))

    print("KERNEL_OK")
</pallas_src>

<mosaic_0001>
module attributes {stable_mosaic.version = 11 : i64} {
  func.func @_backbone_fc_norm_kernel(%arg0: i32, %arg1: memref<16x1536xbf16, #tpu.memory_space<vmem>>, %arg2: memref<1536x512xbf16, #tpu.memory_space<vmem>>, %arg3: memref<1x512xf32, #tpu.memory_space<vmem>>, %arg4: memref<16x512xf32, #tpu.memory_space<vmem>>, %arg5: memref<16x512xbf16, #tpu.memory_space<vmem>>, %arg6: memref<16x512xf32, #tpu.memory_space<vmem>>) attributes {dimension_semantics = [#tpu.dimension_semantics<arbitrary>], iteration_bounds = array<i64: 2>, scalar_prefetch = 0 : i64, scratch_operands = 1 : i64, tpu.core_type = #tpu.core_type<tc>, window_params = [{transform_indices = @transform_0, window_bounds = array<i64: 16, 1536>}, {transform_indices = @transform_1, window_bounds = array<i64: 1536, 512>}, {pipeline_mode = #tpu.pipeline_mode<synchronous>, transform_indices = @transform_2, window_bounds = array<i64: 1, 512>}, {pipeline_mode = #tpu.pipeline_mode<synchronous>, transform_indices = @transform_3, window_bounds = array<i64: 16, 512>}, {pipeline_mode = #tpu.pipeline_mode<synchronous>, transform_indices = @transform_4, window_bounds = array<i64: 16, 512>}]} {
    %c0_i32 = arith.constant 0 : i32
    %0 = arith.cmpi eq, %arg0, %c0_i32 : i32
    %1 = arith.extui %0 : i1 to i32
    %c0_i32_0 = arith.constant 0 : i32
    %2 = arith.cmpi ne, %1, %c0_i32_0 : i32
    scf.if %2 {
      %cst_9 = arith.constant 0.000000e+00 : f32
      %12 = vector.broadcast %cst_9 : f32 to vector<16x512xf32>
      %c0_10 = arith.constant 0 : index
      %c0_11 = arith.constant 0 : index
      %13 = vector.load %arg6[%c0_10, %c0_11] : memref<16x512xf32, #tpu.memory_space<vmem>>, vector<16x512xf32>
      tpu.vector_store %arg6[%c0_10, %c0_11], %12 {strides = array<i32>} : memref<16x512xf32, #tpu.memory_space<vmem>>, vector<16x512xf32>,
    } else {
    }
    %c0 = arith.constant 0 : index
    %c0_1 = arith.constant 0 : index
    %3 = vector.load %arg6[%c0, %c0_1] : memref<16x512xf32, #tpu.memory_space<vmem>>, vector<16x512xf32>
    %c0_2 = arith.constant 0 : index
    %c0_3 = arith.constant 0 : index
    %4 = vector.load %arg1[%c0_2, %c0_3] : memref<16x1536xbf16, #tpu.memory_space<vmem>>, vector<16x1536xbf16>
    %c0_4 = arith.constant 0 : index
    %c0_5 = arith.constant 0 : index
    %5 = vector.load %arg2[%c0_4, %c0_5] : memref<1536x512xbf16, #tpu.memory_space<vmem>>, vector<1536x512xbf16>
    %cst = arith.constant dense<0.000000e+00> : vector<16x512xf32>
    %6 = tpu.matmul %4, %5, %cst {dimension_numbers = #tpu.dot_dimension_numbers<[1], [0], [0], [1], [0, 0, 1, 1], [], []>} : vector<16x1536xbf16>, vector<1536x512xbf16>, vector<16x512xf32> -> vector<16x512xf32>
    %7 = arith.addf %3, %6 : vector<16x512xf32>
    %c0_6 = arith.constant 0 : index
    %c0_7 = arith.constant 0 : index
    %8 = vector.load %arg6[%c0_6, %c0_7] : memref<16x512xf32, #tpu.memory_space<vmem>>, vector<16x512xf32>
    tpu.vector_store %arg6[%c0_6, %c0_7], %7 {strides = array<i32>} : memref<16x512xf32, #tpu.memory_space<vmem>>, vector<16x512xf32>,
    %c1_i32 = arith.constant 1 : i32
    %9 = arith.cmpi eq, %arg0, %c1_i32 : i32
    %10 = arith.extui %9 : i1 to i32
    %c0_i32_8 = arith.constant 0 : i32
    %11 = arith.cmpi ne, %10, %c0_i32_8 : i32
    scf.if %11 {
      %c0_9 = arith.constant 0 : index
      %c0_10 = arith.constant 0 : index
      %12 = vector.load %arg6[%c0_9, %c0_10] : memref<16x512xf32, #tpu.memory_space<vmem>>, vector<16x512xf32>
      %c0_11 = arith.constant 0 : index
      %c0_12 = arith.constant 0 : index
      %13 = vector.load %arg3[%c0_11, %c0_12] : memref<1x512xf32, #tpu.memory_space<vmem>>, vector<1x512xf32>
      %14 = vector.broadcast %13 : vector<1x512xf32> to vector<16x512xf32>
      %15 = arith.addf %12, %14 : vector<16x512xf32>
      %16 = arith.mulf %15, %15 : vector<16x512xf32>
      %cst_13 = arith.constant dense<0.000000e+00> : vector<16xf32>
      %17 = vector.multi_reduction <add>, %16, %cst_13 [1] : vector<16x512xf32> to vector<16xf32>
      %18 = vector.shape_cast %17 : vector<16xf32> to vector<16x1xf32>
      %cst_14 = arith.constant 1.000000e-24 : f32
      %19 = vector.broadcast %cst_14 : f32 to vector<16x1xf32>
      %20 = arith.maximumf %18, %19 : vector<16x1xf32>
      %21 = math.rsqrt %20 : vector<16x1xf32>
      %22 = vector.broadcast %21 : vector<16x1xf32> to vector<16x512xf32>
      %23 = arith.mulf %15, %22 : vector<16x512xf32>
      %c0_15 = arith.constant 0 : index
      %c0_16 = arith.constant 0 : index
      %24 = vector.load %arg4[%c0_15, %c0_16] : memref<16x512xf32, #tpu.memory_space<vmem>>, vector<16x512xf32>
      tpu.vector_store %arg4[%c0_15, %c0_16], %23 {strides = array<i32>} : memref<16x512xf32, #tpu.memory_space<vmem>>, vector<16x512xf32>,
      %25 = arith.truncf %23 : vector<16x512xf32> to vector<16x512xbf16>
      %c0_17 = arith.constant 0 : index
      %c0_18 = arith.constant 0 : index
      %26 = vector.load %arg5[%c0_17, %c0_18] : memref<16x512xbf16, #tpu.memory_space<vmem>>, vector<16x512xbf16>
      tpu.vector_store %arg5[%c0_17, %c0_18], %25 {strides = array<i32>} : memref<16x512xbf16, #tpu.memory_space<vmem>>, vector<16x512xbf16>,
    } else {
    }
    return
  }
  func.func @transform_0(%arg0: i32) -> (i32, i32) {
    %c0_i32 = arith.constant 0 : i32
    %c0_i32_0 = arith.constant 0 : i32
    return %c0_i32, %arg0 : i32, i32
  }
  func.func @transform_1(%arg0: i32) -> (i32, i32) {
    %c0_i32 = arith.constant 0 : i32
    %c0_i32_0 = arith.constant 0 : i32
    return %arg0, %c0_i32 : i32, i32
  }
  func.func @transform_2(%arg0: i32) -> (i32, i32) {
    %c0_i32 = arith.constant 0 : i32
    %c0_i32_0 = arith.constant 0 : i32
    %c0_i32_1 = arith.constant 0 : i32
    return %c0_i32, %c0_i32_0 : i32, i32
  }
  func.func @transform_3(%arg0: i32) -> (i32, i32) {
    %c0_i32 = arith.constant 0 : i32
    %c0_i32_0 = arith.constant 0 : i32
    %c0_i32_1 = arith.constant 0 : i32
    return %c0_i32, %c0_i32_0 : i32, i32
  }
  func.func @transform_4(%arg0: i32) -> (i32, i32) {
    %c0_i32 = arith.constant 0 : i32
    %c0_i32_0 = arith.constant 0 : i32
    %c0_i32_1 = arith.constant 0 : i32
    return %c0_i32, %c0_i32_0 : i32, i32
  }
}

module attributes {stable_mosaic.version = 11 : i64} {
  func.func @_elastic_head_kernel(%arg0: i32, %arg1: memref<16x512xbf16, #tpu.memory_space<vmem>>, %arg2: memref<512x512xbf16, #tpu.memory_space<vmem>>, %arg3: memref<1x512xf32, #tpu.memory_space<vmem>>, %arg4: memref<16x1xi32, #tpu.memory_space<vmem>>, %arg5: memref<16x1xf32, #tpu.memory_space<vmem>>, %arg6: memref<16x1xf32, #tpu.memory_space<vmem>>, %arg7: memref<16x512xf32, #tpu.memory_space<vmem>>) attributes {dimension_semantics = [#tpu.dimension_semantics<parallel>], iteration_bounds = array<i64: 2>, scalar_prefetch = 0 : i64, scratch_operands = 0 : i64, tpu.core_type = #tpu.core_type<tc>, window_params = [{pipeline_mode = #tpu.pipeline_mode<synchronous>, transform_indices = @transform_0, window_bounds = array<i64: 16, 512>}, {transform_indices = @transform_1, window_bounds = array<i64: 512, 512>}, {transform_indices = @transform_2, window_bounds = array<i64: 1, 512>}, {pipeline_mode = #tpu.pipeline_mode<synchronous>, transform_indices = @transform_3, window_bounds = array<i64: 16, 1>}, {pipeline_mode = #tpu.pipeline_mode<synchronous>, transform_indices = @transform_4, window_bounds = array<i64: 16, 1>}, {pipeline_mode = #tpu.pipeline_mode<synchronous>, transform_indices = @transform_5, window_bounds = array<i64: 16, 1>}, {transform_indices = @transform_6, window_bounds = array<i64: 16, 512>}]} {
    %c0 = arith.constant 0 : index
    %c0_0 = arith.constant 0 : index
    %0 = vector.load %arg1[%c0, %c0_0] : memref<16x512xbf16, #tpu.memory_space<vmem>>, vector<16x512xbf16>
    %c0_1 = arith.constant 0 : index
    %c0_2 = arith.constant 0 : index
    %1 = vector.load %arg2[%c0_1, %c0_2] : memref<512x512xbf16, #tpu.memory_space<vmem>>, vector<512x512xbf16>
    %cst = arith.constant dense<0.000000e+00> : vector<16x512xf32>
    %2 = tpu.matmul %0, %1, %cst {dimension_numbers = #tpu.dot_dimension_numbers<[1], [0], [0], [1], [0, 0, 1, 1], [], []>} : vector<16x512xbf16>, vector<512x512xbf16>, vector<16x512xf32> -> vector<16x512xf32>
    %c0_3 = arith.constant 0 : index
    %c0_4 = arith.constant 0 : index
    %3 = vector.load %arg3[%c0_3, %c0_4] : memref<1x512xf32, #tpu.memory_space<vmem>>, vector<1x512xf32>
    %4 = vector.broadcast %3 : vector<1x512xf32> to vector<16x512xf32>
    %5 = arith.mulf %2, %4 : vector<16x512xf32>
    %cst_5 = arith.constant -1.000000e+00 : f32
    %cst_6 = arith.constant 1.000000e+00 : f32
    %6 = vector.broadcast %cst_5 : f32 to vector<16x512xf32>
    %7 = arith.maximumf %6, %5 : vector<16x512xf32>
    %8 = vector.broadcast %cst_6 : f32 to vector<16x512xf32>
    %9 = arith.minimumf %8, %7 : vector<16x512xf32>
    %10 = arith.mulf %9, %9 : vector<16x512xf32>
    %cst_7 = arith.constant 1.000000e+00 : f32
    %11 = vector.broadcast %cst_7 : f32 to vector<16x512xf32>
    %12 = arith.subf %11, %10 : vector<16x512xf32>
    %cst_8 = arith.constant 0.000000e+00 : f32
    %13 = vector.broadcast %cst_8 : f32 to vector<16x512xf32>
    %14 = arith.maximumf %12, %13 : vector<16x512xf32>
    %15 = math.sqrt %14 : vector<16x512xf32>
    %c0_9 = arith.constant 0 : index
    %c0_10 = arith.constant 0 : index
    %16 = vector.load %arg4[%c0_9, %c0_10] : memref<16x1xi32, #tpu.memory_space<vmem>>, vector<16x1xi32>
    %17 = tpu.iota {dimensions = array<i32: 1>} : vector<16x512xi32>
    %c512_i32 = arith.constant 512 : i32
    %18 = arith.muli %arg0, %c512_i32 : i32
    %19 = vector.broadcast %18 : i32 to vector<16x512xi32>
    %20 = arith.addi %17, %19 : vector<16x512xi32>
    %21 = vector.broadcast %16 : vector<16x1xi32> to vector<16x512xi32>
    %22 = arith.cmpi eq, %20, %21 : vector<16x512xi32>
    %c0_i32 = arith.constant 0 : i32
    %23 = vector.broadcast %c0_i32 : i32 to vector<16x1xi32>
    %24 = arith.cmpi sge, %16, %23 : vector<16x1xi32>
    %25 = vector.broadcast %24 : vector<16x1xi1> to vector<16x512xi1>
    %26 = arith.andi %22, %25 : vector<16x512xi1>
    %c0_11 = arith.constant 0 : index
    %c0_12 = arith.constant 0 : index
    %27 = vector.load %arg5[%c0_11, %c0_12] : memref<16x1xf32, #tpu.memory_space<vmem>>, vector<16x1xf32>
    %cst_13 = arith.constant 1.000000e+00 : f32
    %28 = vector.shape_cast %27 : vector<16x1xf32> to vector<16x1xf32>
    %29 = vector.broadcast %28 : vector<16x1xf32> to vector<16x512xf32>
    %30 = vector.broadcast %cst_13 : f32 to vector<16x512xf32>
    %31 = arith.select %26, %29, %30 : vector<16x512xi1>, vector<16x512xf32>
    %c0_14 = arith.constant 0 : index
    %c0_15 = arith.constant 0 : index
    %32 = vector.load %arg6[%c0_14, %c0_15] : memref<16x1xf32, #tpu.memory_space<vmem>>, vector<16x1xf32>
    %cst_16 = arith.constant 0.000000e+00 : f32
    %33 = vector.shape_cast %32 : vector<16x1xf32> to vector<16x1xf32>
    %34 = vector.broadcast %33 : vector<16x1xf32> to vector<16x512xf32>
    %35 = vector.broadcast %cst_16 : f32 to vector<16x512xf32>
    %36 = arith.select %26, %34, %35 : vector<16x512xi1>, vector<16x512xf32>
    %37 = arith.mulf %9, %31 : vector<16x512xf32>
    %38 = arith.mulf %15, %36 : vector<16x512xf32>
    %39 = arith.subf %37, %38 : vector<16x512xf32>
    %cst_17 = arith.constant 6.400000e+01 : f32
    %40 = vector.broadcast %cst_17 : f32 to vector<16x512xf32>
    %41 = arith.mulf %39, %40 : vector<16x512xf32>
    %c0_18 = arith.constant 0 : index
    %c0_19 = arith.constant 0 : index
    %42 = vector.load %arg7[%c0_18, %c0_19] : memref<16x512xf32, #tpu.memory_space<vmem>>, vector<16x512xf32>
    tpu.vector_store %arg7[%c0_18, %c0_19], %41 {strides = array<i32>} : memref<16x512xf32, #tpu.memory_space<vmem>>, vector<16x512xf32>,
    return
  }
  func.func @transform_0(%arg0: i32) -> (i32, i32) {
    %c0_i32 = arith.constant 0 : i32
    %c0_i32_0 = arith.constant 0 : i32
    %c0_i32_1 = arith.constant 0 : i32
    return %c0_i32, %c0_i32_0 : i32, i32
  }
  func.func @transform_1(%arg0: i32) -> (i32, i32) {
    %c0_i32 = arith.constant 0 : i32
    %c0_i32_0 = arith.constant 0 : i32
    return %c0_i32, %arg0 : i32, i32
  }
  func.func @transform_2(%arg0: i32) -> (i32, i32) {
    %c0_i32 = arith.constant 0 : i32
    %c0_i32_0 = arith.constant 0 : i32
    return %c0_i32, %arg0 : i32, i32
  }
  func.func @transform_3(%arg0: i32) -> (i32, i32) {
    %c0_i32 = arith.constant 0 : i32
    %c0_i32_0 = arith.constant 0 : i32
    %c0_i32_1 = arith.constant 0 : i32
    return %c0_i32, %c0_i32_0 : i32, i32
  }
  func.func @transform_4(%arg0: i32) -> (i32, i32) {
    %c0_i32 = arith.constant 0 : i32
    %c0_i32_0 = arith.constant 0 : i32
    %c0_i32_1 = arith.constant 0 : i32
    return %c0_i32, %c0_i32_0 : i32, i32
  }
  func.func @transform_5(%arg0: i32) -> (i32, i32) {
    %c0_i32 = arith.constant 0 : i32
    %c0_i32_0 = arith.constant 0 : i32
    %c0_i32_1 = arith.constant 0 : i32
    return %c0_i32, %c0_i32_0 : i32, i32
  }
  func.func @transform_6(%arg0: i32) -> (i32, i32) {
    %c0_i32 = arith.constant 0 : i32
    %c0_i32_0 = arith.constant 0 : i32
    return %c0_i32, %arg0 : i32, i32
  }
}

</mosaic_0001>

<bundles_post_ra>
// kernel: elasticface_forward.3
= control target key start
LH: loop header
LB: loop body
LE: loop exit
PB: predicated region body
PF: predicated region fallthrough
CT: control target
= control target key end

     0   :  { %s2332_s21 = smov 0   ;;  %s2334_s22 = smov 0   ;;  %s3180_s0 = inlined_call_operand.vmem [shape: bf16[16,512], index: 0, kind: input, shape index: {}]   ;;  %s3181_s1 = inlined_call_operand.vmem [shape: bf16[512,1024], index: 1, kind: input, shape index: {}]   ;;  %s3182_s2 = inlined_call_operand.vmem [shape: f32[1,1024], index: 2, kind: input, shape index: {}]   ;;  %s3183_s3 = inlined_call_operand.vmem [shape: s32[16,1], index: 3, kind: input, shape index: {}]   ;;  %s3184_s4 = inlined_call_operand.vmem [shape: f32[16,1], index: 4, kind: input, shape index: {}]   ;;  %s3185_s5 = inlined_call_operand.vmem [shape: f32[16,1], index: 5, kind: input, shape index: {}]   ;;  %s3186_s6 = inlined_call_operand.vmem [shape: f32[16,1024], index: 6, kind: output, shape index: {}]  }
   0x1   :  { %s2336_s23 = smov 0  }
   0x2 LB: > { %s2348_s24 = sadd.s32 4294967295, %s2294_s23   ;;  %s2351_s25 = sadd.s32 1, %s2294_s23   ;;  %s2294_s23 = sphi %s2336_s23, %s3215_s23   ;;  %s2290_s22 = sphi %s2334_s22, %s3214_s22   ;;  %s2286_s21 = sphi %s2332_s21, %s3213_s21  }
   0x3   : > { %s41_s26 = ssub.s32 %s2294_s23, %s2351_s25  ;;  %s44_s27 = sadd.s32 1, %s2290_s22 }
   0x4   : > { %p42_p0 = scmp.eq.s32.totalorder %s41_s26, 0  ;;  %p51_p1 = scmp.ne.s32.totalorder %s2290_s22, %s2286_s21 }
   0x5   : > { %p52_p2 = scmp.eq.s32.totalorder %s2294_s23, 0  ;;  %p170_p3 = scmp.eq.s32.totalorder %s2348_s24, 1 }
   0x6   : > { %s2361_s28 = scalar_select %p42_p0, %s2290_s22, %s44_s27  }
   0x7   : > { %p53_p4 = por %p52_p2, %p51_p1  ;;  %p2363_p5 = por %p170_p3, %p51_p1 }
   0x8   : > { %p1867_p6 = scmp.ge.s32.totalorder %s2294_s23, 2 }
   0xa   : > { %204 = sbr.rel (%p1867_p6) target bundleno = 85 (0x55), region = 32 }
  0x11   : > { %207 = sbr.rel (!%p53_p4) target bundleno = 85 (0x55), region = 36  ;;  %s209_s30 = sand.u32 (%p53_p4), 1, %s2290_s22  }
  0x12   : > { %s2021_s7 = sshll.u32 (%p53_p4), %s2294_s23, 4  ;;  %s1868_s8 = sshll.u32 (%p53_p4), %s209_s30, 10 }
  0x13   : > { %s2373_s11 = scalar_lea.vmem (%p53_p4), %s3181_s1, %s2021_s7  ;;  %s2378_s12 = scalar_lea.vmem (%p53_p4), [#allocation2], %s1868_s8 }
  0x14   : > { %v227_v0 = vld [vmem:[%s2373_s11] sm:$0xff] (%p53_p4)  ;;  %v229_v1 = vld [vmem:[%s2373_s11 + $0x8] sm:$0xff] (%p53_p4) }
  0x15   : > { %v231_v2 = vld [vmem:[%s2373_s11 + $0x20] sm:$0xff] (%p53_p4)  ;;  %228 = vst [vmem:[%s2378_s12] sm:$0xff] (%p53_p4), %v227_v0  ;;  %230 = vst [vmem:[%s2378_s12 + $0x8] sm:$0xff] (%p53_p4), %v229_v1  ;;  %v233_v3 = vld [vmem:[%s2373_s11 + $0x28] sm:$0xff] (%p53_p4) }
  0x16   : > { %232 = vst [vmem:[%s2378_s12 + $0x10] sm:$0xff] (%p53_p4), %v231_v2  ;;  %v235_v4 = vld [vmem:[%s2373_s11 + $0x40] sm:$0xff] (%p53_p4)  ;;  %v237_v5 = vld [vmem:[%s2373_s11 + $0x48] sm:$0xff] (%p53_p4)  ;;  %234 = vst [vmem:[%s2378_s12 + $0x18] sm:$0xff] (%p53_p4), %v233_v3 }
  0x17   : > { %236 = vst [vmem:[%s2378_s12 + $0x20] sm:$0xff] (%p53_p4), %v235_v4  ;;  %238 = vst [vmem:[%s2378_s12 + $0x28] sm:$0xff] (%p53_p4), %v237_v5  ;;  %v239_v6 = vld [vmem:[%s2373_s11 + $0x60] sm:$0xff] (%p53_p4)  ;;  %v241_v7 = vld [vmem:[%s2373_s11 + $0x68] sm:$0xff] (%p53_p4) }
  0x18   : > { %v243_v8 = vld [vmem:[%s2373_s11 + $0x80] sm:$0xff]  ;;  %240 = vst [vmem:[%s2378_s12 + $0x30] sm:$0xff] %v239_v6  ;;  %242 = vst [vmem:[%s2378_s12 + $0x38] sm:$0xff] %v241_v7  ;;  %v245_v9 = vld [vmem:[%s2373_s11 + $0x88] sm:$0xff] }
  0x19   : > { %244 = vst [vmem:[%s2378_s12 + $0x40] sm:$0xff] %v243_v8  ;;  %v247_v10 = vld [vmem:[%s2373_s11 + $0xa0] sm:$0xff]  ;;  %v249_v11 = vld [vmem:[%s2373_s11 + $0xa8] sm:$0xff]  ;;  %246 = vst [vmem:[%s2378_s12 + $0x48] sm:$0xff] %v245_v9 }
  0x1a   : > { %248 = vst [vmem:[%s2378_s12 + $0x50] sm:$0xff] %v247_v10  ;;  %250 = vst [vmem:[%s2378_s12 + $0x58] sm:$0xff] %v249_v11  ;;  %v251_v12 = vld [vmem:[%s2373_s11 + $0xc0] sm:$0xff]  ;;  %v253_v13 = vld [vmem:[%s2373_s11 + $0xc8] sm:$0xff] }
  0x1b   : > { %v255_v14 = vld [vmem:[%s2373_s11 + $0xe0] sm:$0xff]  ;;  %252 = vst [vmem:[%s2378_s12 + $0x60] sm:$0xff] %v251_v12  ;;  %254 = vst [vmem:[%s2378_s12 + $0x68] sm:$0xff] %v253_v13  ;;  %v257_v15 = vld [vmem:[%s2373_s11 + $0xe8] sm:$0xff] }
  0x1c   : > { %256 = vst [vmem:[%s2378_s12 + $0x70] sm:$0xff] %v255_v14  ;;  %v259_v16 = vld [vmem:[%s2373_s11 + $0x100] sm:$0xff]  ;;  %v261_v17 = vld [vmem:[%s2373_s11 + $0x108] sm:$0xff]  ;;  %258 = vst [vmem:[%s2378_s12 + $0x78] sm:$0xff] %v257_v15 }
  0x1d   : > { %260 = vst [vmem:[%s2378_s12 + $0x80] sm:$0xff] %v259_v16  ;;  %262 = vst [vmem:[%s2378_s12 + $0x88] sm:$0xff] %v261_v17  ;;  %v263_v18 = vld [vmem:[%s2373_s11 + $0x120] sm:$0xff]  ;;  %v265_v19 = vld [vmem:[%s2373_s11 + $0x128] sm:$0xff] }
  0x1e   : > { %v267_v20 = vld [vmem:[%s2373_s11 + $0x140] sm:$0xff]  ;;  %264 = vst [vmem:[%s2378_s12 + $0x90] sm:$0xff] %v263_v18  ;;  %266 = vst [vmem:[%s2378_s12 + $0x98] sm:$0xff] %v265_v19  ;;  %v269_v21 = vld [vmem:[%s2373_s11 + $0x148] sm:$0xff] }
  0x1f   : > { %268 = vst [vmem:[%s2378_s12 + $0xa0] sm:$0xff] %v267_v20  ;;  %v271_v22 = vld [vmem:[%s2373_s11 + $0x160] sm:$0xff]  ;;  %v273_v23 = vld [vmem:[%s2373_s11 + $0x168] sm:$0xff]  ;;  %270 = vst [vmem:[%s2378_s12 + $0xa8] sm:$0xff] %v269_v21 }
  0x20   : > { %272 = vst [vmem:[%s2378_s12 + $0xb0] sm:$0xff] %v271_v22  ;;  %274 = vst [vmem:[%s2378_s12 + $0xb8] sm:$0xff] %v273_v23  ;;  %v275_v24 = vld [vmem:[%s2373_s11 + $0x180] sm:$0xff]  ;;  %v277_v25 = vld [vmem:[%s2373_s11 + $0x188] sm:$0xff] }
  0x21   : > { %v279_v26 = vld [vmem:[%s2373_s11 + $0x1a0] sm:$0xff]  ;;  %276 = vst [vmem:[%s2378_s12 + $0xc0] sm:$0xff] %v275_v24  ;;  %278 = vst [vmem:[%s2378_s12 + $0xc8] sm:$0xff] %v277_v25  ;;  %v281_v27 = vld [vmem:[%s2373_s11 + $0x1a8] sm:$0xff] }
  0x22   : > { %280 = vst [vmem:[%s2378_s12 + $0xd0] sm:$0xff] %v279_v26  ;;  %v283_v28 = vld [vmem:[%s2373_s11 + $0x1c0] sm:$0xff]  ;;  %v285_v29 = vld [vmem:[%s2373_s11 + $0x1c8] sm:$0xff]  ;;  %282 = vst [vmem:[%s2378_s12 + $0xd8] sm:$0xff] %v281_v27 }
  0x23   : > { %284 = vst [vmem:[%s2378_s12 + $0xe0] sm:$0xff] %v283_v28  ;;  %286 = vst [vmem:[%s2378_s12 + $0xe8] sm:$0xff] %v285_v29  ;;  %v287_v30 = vld [vmem:[%s2373_s11 + $0x1e0] sm:$0xff]  ;;  %v289_v31 = vld [vmem:[%s2373_s11 + $0x1e8] sm:$0xff] }
  0x24   : > { %v291_v32 = vld [vmem:[%s2373_s11 + $0x200] sm:$0xff]  ;;  %288 = vst [vmem:[%s2378_s12 + $0xf0] sm:$0xff] %v287_v30  ;;  %290 = vst [vmem:[%s2378_s12 + $0xf8] sm:$0xff] %v289_v31  ;;  %v293_v33 = vld [vmem:[%s2373_s11 + $0x208] sm:$0xff] }
  0x25   : > { %292 = vst [vmem:[%s2378_s12 + $0x100] sm:$0xff] %v291_v32  ;;  %v295_v34 = vld [vmem:[%s2373_s11 + $0x220] sm:$0xff]  ;;  %v297_v35 = vld [vmem:[%s2373_s11 + $0x228] sm:$0xff]  ;;  %294 = vst [vmem:[%s2378_s12 + $0x108] sm:$0xff] %v293_v33 }
  0x26   : > { %296 = vst [vmem:[%s2378_s12 + $0x110] sm:$0xff] %v295_v34  ;;  %298 = vst [vmem:[%s2378_s12 + $0x118] sm:$0xff] %v297_v35  ;;  %v299_v36 = vld [vmem:[%s2373_s11 + $0x240] sm:$0xff]  ;;  %v301_v37 = vld [vmem:[%s2373_s11 + $0x248] sm:$0xff] }
  0x27   : > { %v303_v38 = vld [vmem:[%s2373_s11 + $0x260] sm:$0xff]  ;;  %300 = vst [vmem:[%s2378_s12 + $0x120] sm:$0xff] %v299_v36  ;;  %302 = vst [vmem:[%s2378_s12 + $0x128] sm:$0xff] %v301_v37  ;;  %v305_v39 = vld [vmem:[%s2373_s11 + $0x268] sm:$0xff] }
  0x28   : > { %304 = vst [vmem:[%s2378_s12 + $0x130] sm:$0xff] %v303_v38  ;;  %v307_v40 = vld [vmem:[%s2373_s11 + $0x280] sm:$0xff]  ;;  %v309_v41 = vld [vmem:[%s2373_s11 + $0x288] sm:$0xff]  ;;  %306 = vst [vmem:[%s2378_s12 + $0x138] sm:$0xff] %v305_v39 }
  0x29   : > { %308 = vst [vmem:[%s2378_s12 + $0x140] sm:$0xff] %v307_v40  ;;  %310 = vst [vmem:[%s2378_s12 + $0x148] sm:$0xff] %v309_v41  ;;  %v311_v42 = vld [vmem:[%s2373_s11 + $0x2a0] sm:$0xff]  ;;  %v313_v43 = vld [vmem:[%s2373_s11 + $0x2a8] sm:$0xff] }
  0x2a   : > { %v315_v44 = vld [vmem:[%s2373_s11 + $0x2c0] sm:$0xff]  ;;  %312 = vst [vmem:[%s2378_s12 + $0x150] sm:$0xff] %v311_v42  ;;  %314 = vst [vmem:[%s2378_s12 + $0x158] sm:$0xff] %v313_v43  ;;  %v317_v45 = vld [vmem:[%s2373_s11 + $0x2c8] sm:$0xff] }
  0x2b   : > { %316 = vst [vmem:[%s2378_s12 + $0x160] sm:$0xff] %v315_v44  ;;  %v319_v46 = vld [vmem:[%s2373_s11 + $0x2e0] sm:$0xff]  ;;  %v321_v47 = vld [vmem:[%s2373_s11 + $0x2e8] sm:$0xff]  ;;  %318 = vst [vmem:[%s2378_s12 + $0x168] sm:$0xff] %v317_v45 }
  0x2c   : > { %320 = vst [vmem:[%s2378_s12 + $0x170] sm:$0xff] %v319_v46  ;;  %322 = vst [vmem:[%s2378_s12 + $0x178] sm:$0xff] %v321_v47  ;;  %v323_v48 = vld [vmem:[%s2373_s11 + $0x300] sm:$0xff]  ;;  %v325_v49 = vld [vmem:[%s2373_s11 + $0x308] sm:$0xff] }
  0x2d   : > { %v327_v50 = vld [vmem:[%s2373_s11 + $0x320] sm:$0xff]  ;;  %324 = vst [vmem:[%s2378_s12 + $0x180] sm:$0xff] %v323_v48  ;;  %326 = vst [vmem:[%s2378_s12 + $0x188] sm:$0xff] %v325_v49  ;;  %v329_v51 = vld [vmem:[%s2373_s11 + $0x328] sm:$0xff] }
  0x2e   : > { %328 = vst [vmem:[%s2378_s12 + $0x190] sm:$0xff] %v327_v50  ;;  %v331_v52 = vld [vmem:[%s2373_s11 + $0x340] sm:$0xff]  ;;  %v333_v53 = vld [vmem:[%s2373_s11 + $0x348] sm:$0xff]  ;;  %330 = vst [vmem:[%s2378_s12 + $0x198] sm:$0xff] %v329_v51 }
  0x2f   : > { %332 = vst [vmem:[%s2378_s12 + $0x1a0] sm:$0xff] %v331_v52  ;;  %334 = vst [vmem:[%s2378_s12 + $0x1a8] sm:$0xff] %v333_v53  ;;  %v335_v54 = vld [vmem:[%s2373_s11 + $0x360] sm:$0xff]  ;;  %v337_v55 = vld [vmem:[%s2373_s11 + $0x368] sm:$0xff] }
  0x30   : > { %v339_v56 = vld [vmem:[%s2373_s11 + $0x380] sm:$0xff]  ;;  %336 = vst [vmem:[%s2378_s12 + $0x1b0] sm:$0xff] %v335_v54  ;;  %338 = vst [vmem:[%s2378_s12 + $0x1b8] sm:$0xff] %v337_v55  ;;  %v341_v57 = vld [vmem:[%s2373_s11 + $0x388] sm:$0xff] }
  0x31   : > { %340 = vst [vmem:[%s2378_s12 + $0x1c0] sm:$0xff] %v339_v56  ;;  %v343_v58 = vld [vmem:[%s2373_s11 + $0x3a0] sm:$0xff]  ;;  %v345_v59 = vld [vmem:[%s2373_s11 + $0x3a8] sm:$0xff]  ;;  %342 = vst [vmem:[%s2378_s12 + $0x1c8] sm:$0xff] %v341_v57 }
  0x32   : > { %344 = vst [vmem:[%s2378_s12 + $0x1d0] sm:$0xff] %v343_v58  ;;  %346 = vst [vmem:[%s2378_s12 + $0x1d8] sm:$0xff] %v345_v59  ;;  %v347_v60 = vld [vmem:[%s2373_s11 + $0x3c0] sm:$0xff]  ;;  %v349_v61 = vld [vmem:[%s2373_s11 + $0x3c8] sm:$0xff] }
  0x33   : > { %v351_v62 = vld [vmem:[%s2373_s11 + $0x3e0] sm:$0xff]  ;;  %348 = vst [vmem:[%s2378_s12 + $0x1e0] sm:$0xff] %v347_v60  ;;  %350 = vst [vmem:[%s2378_s12 + $0x1e8] sm:$0xff] %v349_v61  ;;  %v353_v63 = vld [vmem:[%s2373_s11 + $0x3e8] sm:$0xff] }
  0x34   : > { %352 = vst [vmem:[%s2378_s12 + $0x1f0] sm:$0xff] %v351_v62  ;;  %v355_v0 = vld [vmem:[%s2373_s11 + $0x400] sm:$0xff]  ;;  %v357_v1 = vld [vmem:[%s2373_s11 + $0x408] sm:$0xff]  ;;  %354 = vst [vmem:[%s2378_s12 + $0x1f8] sm:$0xff] %v353_v63 }
  0x35   : > { %356 = vst [vmem:[%s2378_s12 + $0x200] sm:$0xff] %v355_v0  ;;  %358 = vst [vmem:[%s2378_s12 + $0x208] sm:$0xff] %v357_v1  ;;  %v359_v2 = vld [vmem:[%s2373_s11 + $0x420] sm:$0xff]  ;;  %v361_v3 = vld [vmem:[%s2373_s11 + $0x428] sm:$0xff] }
  0x36   : > { %v363_v4 = vld [vmem:[%s2373_s11 + $0x440] sm:$0xff]  ;;  %360 = vst [vmem:[%s2378_s12 + $0x210] sm:$0xff] %v359_v2  ;;  %362 = vst [vmem:[%s2378_s12 + $0x218] sm:$0xff] %v361_v3  ;;  %v365_v5 = vld [vmem:[%s2373_s11 + $0x448] sm:$0xff] }
  0x37   : > { %364 = vst [vmem:[%s2378_s12 + $0x220] sm:$0xff] %v363_v4  ;;  %v367_v6 = vld [vmem:[%s2373_s11 + $0x460] sm:$0xff]  ;;  %v369_v7 = vld [vmem:[%s2373_s11 + $0x468] sm:$0xff]  ;;  %366 = vst [vmem:[%s2378_s12 + $0x228] sm:$0xff] %v365_v5 }
  0x38   : > { %368 = vst [vmem:[%s2378_s12 + $0x230] sm:$0xff] %v367_v6  ;;  %370 = vst [vmem:[%s2378_s12 + $0x238] sm:$0xff] %v369_v7  ;;  %v371_v8 = vld [vmem:[%s2373_s11 + $0x480] sm:$0xff]  ;;  %v373_v9 = vld [vmem:[%s2373_s11 + $0x488] sm:$0xff] }
  0x39   : > { %v375_v10 = vld [vmem:[%s2373_s11 + $0x4a0] sm:$0xff]  ;;  %372 = vst [vmem:[%s2378_s12 + $0x240] sm:$0xff] %v371_v8  ;;  %374 = vst [vmem:[%s2378_s12 + $0x248] sm:$0xff] %v373_v9  ;;  %v377_v11 = vld [vmem:[%s2373_s11 + $0x4a8] sm:$0xff] }
  0x3a   : > { %376 = vst [vmem:[%s2378_s12 + $0x250] sm:$0xff] %v375_v10  ;;  %v379_v12 = vld [vmem:[%s2373_s11 + $0x4c0] sm:$0xff]  ;;  %v381_v13 = vld [vmem:[%s2373_s11 + $0x4c8] sm:$0xff]  ;;  %378 = vst [vmem:[%s2378_s12 + $0x258] sm:$0xff] %v377_v11 }
  0x3b   : > { %380 = vst [vmem:[%s2378_s12 + $0x260] sm:$0xff] %v379_v12  ;;  %382 = vst [vmem:[%s2378_s12 + $0x268] sm:$0xff] %v381_v13  ;;  %v383_v14 = vld [vmem:[%s2373_s11 + $0x4e0] sm:$0xff]  ;;  %v385_v15 = vld [vmem:[%s2373_s11 + $0x4e8] sm:$0xff] }
  0x3c   : > { %v387_v16 = vld [vmem:[%s2373_s11 + $0x500] sm:$0xff]  ;;  %384 = vst [vmem:[%s2378_s12 + $0x270] sm:$0xff] %v383_v14  ;;  %386 = vst [vmem:[%s2378_s12 + $0x278] sm:$0xff] %v385_v15  ;;  %v389_v17 = vld [vmem:[%s2373_s11 + $0x508] sm:$0xff] }
  0x3d   : > { %388 = vst [vmem:[%s2378_s12 + $0x280] sm:$0xff] %v387_v16  ;;  %v391_v18 = vld [vmem:[%s2373_s11 + $0x520] sm:$0xff]  ;;  %v393_v19 = vld [vmem:[%s2373_s11 + $0x528] sm:$0xff]  ;;  %390 = vst [vmem:[%s2378_s12 + $0x288] sm:$0xff] %v389_v17 }
  0x3e   : > { %392 = vst [vmem:[%s2378_s12 + $0x290] sm:$0xff] %v391_v18  ;;  %394 = vst [vmem:[%s2378_s12 + $0x298] sm:$0xff] %v393_v19  ;;  %v395_v20 = vld [vmem:[%s2373_s11 + $0x540] sm:$0xff]  ;;  %v397_v21 = vld [vmem:[%s2373_s11 + $0x548] sm:$0xff] }
  0x3f   : > { %v399_v22 = vld [vmem:[%s2373_s11 + $0x560] sm:$0xff]  ;;  %396 = vst [vmem:[%s2378_s12 + $0x2a0] sm:$0xff] %v395_v20  ;;  %398 = vst [vmem:[%s2378_s12 + $0x2a8] sm:$0xff] %v397_v21  ;;  %v401_v23 = vld [vmem:[%s2373_s11 + $0x568] sm:$0xff] }
  0x40   : > { %400 = vst [vmem:[%s2378_s12 + $0x2b0] sm:$0xff] %v399_v22  ;;  %v403_v24 = vld [vmem:[%s2373_s11 + $0x580] sm:$0xff]  ;;  %v405_v25 = vld [vmem:[%s2373_s11 + $0x588] sm:$0xff]  ;;  %402 = vst [vmem:[%s2378_s12 + $0x2b8] sm:$0xff] %v401_v23 }
  0x41   : > { %404 = vst [vmem:[%s2378_s12 + $0x2c0] sm:$0xff] %v403_v24  ;;  %406 = vst [vmem:[%s2378_s12 + $0x2c8] sm:$0xff] %v405_v25  ;;  %v407_v26 = vld [vmem:[%s2373_s11 + $0x5a0] sm:$0xff]  ;;  %v409_v27 = vld [vmem:[%s2373_s11 + $0x5a8] sm:$0xff] }
  0x42   : > { %v411_v28 = vld [vmem:[%s2373_s11 + $0x5c0] sm:$0xff]  ;;  %408 = vst [vmem:[%s2378_s12 + $0x2d0] sm:$0xff] %v407_v26  ;;  %410 = vst [vmem:[%s2378_s12 + $0x2d8] sm:$0xff] %v409_v27  ;;  %v413_v29 = vld [vmem:[%s2373_s11 + $0x5c8] sm:$0xff] }
  0x43   : > { %412 = vst [vmem:[%s2378_s12 + $0x2e0] sm:$0xff] %v411_v28  ;;  %v415_v30 = vld [vmem:[%s2373_s11 + $0x5e0] sm:$0xff]  ;;  %v417_v31 = vld [vmem:[%s2373_s11 + $0x5e8] sm:$0xff]  ;;  %414 = vst [vmem:[%s2378_s12 + $0x2e8] sm:$0xff] %v413_v29 }
  0x44   : > { %416 = vst [vmem:[%s2378_s12 + $0x2f0] sm:$0xff] %v415_v30  ;;  %418 = vst [vmem:[%s2378_s12 + $0x2f8] sm:$0xff] %v417_v31  ;;  %v419_v32 = vld [vmem:[%s2373_s11 + $0x600] sm:$0xff]  ;;  %v421_v33 = vld [vmem:[%s2373_s11 + $0x608] sm:$0xff] }
  0x45   : > { %v423_v34 = vld [vmem:[%s2373_s11 + $0x620] sm:$0xff]  ;;  %420 = vst [vmem:[%s2378_s12 + $0x300] sm:$0xff] %v419_v32  ;;  %422 = vst [vmem:[%s2378_s12 + $0x308] sm:$0xff] %v421_v33  ;;  %v425_v35 = vld [vmem:[%s2373_s11 + $0x628] sm:$0xff] }
  0x46   : > { %424 = vst [vmem:[%s2378_s12 + $0x310] sm:$0xff] %v423_v34  ;;  %v427_v36 = vld [vmem:[%s2373_s11 + $0x640] sm:$0xff]  ;;  %v429_v37 = vld [vmem:[%s2373_s11 + $0x648] sm:$0xff]  ;;  %426 = vst [vmem:[%s2378_s12 + $0x318] sm:$0xff] %v425_v35 }
  0x47   : > { %428 = vst [vmem:[%s2378_s12 + $0x320] sm:$0xff] %v427_v36  ;;  %430 = vst [vmem:[%s2378_s12 + $0x328] sm:$0xff] %v429_v37  ;;  %v431_v38 = vld [vmem:[%s2373_s11 + $0x660] sm:$0xff]  ;;  %v433_v39 = vld [vmem:[%s2373_s11 + $0x668] sm:$0xff] }
  0x48   : > { %v435_v40 = vld [vmem:[%s2373_s11 + $0x680] sm:$0xff]  ;;  %432 = vst [vmem:[%s2378_s12 + $0x330] sm:$0xff] %v431_v38  ;;  %434 = vst [vmem:[%s2378_s12 + $0x338] sm:$0xff] %v433_v39  ;;  %v437_v41 = vld [vmem:[%s2373_s11 + $0x688] sm:$0xff] }
  0x49   : > { %436 = vst [vmem:[%s2378_s12 + $0x340] sm:$0xff] %v435_v40  ;;  %v439_v42 = vld [vmem:[%s2373_s11 + $0x6a0] sm:$0xff]  ;;  %v441_v43 = vld [vmem:[%s2373_s11 + $0x6a8] sm:$0xff]  ;;  %438 = vst [vmem:[%s2378_s12 + $0x348] sm:$0xff] %v437_v41 }
  0x4a   : > { %440 = vst [vmem:[%s2378_s12 + $0x350] sm:$0xff] %v439_v42  ;;  %442 = vst [vmem:[%s2378_s12 + $0x358] sm:$0xff] %v441_v43  ;;  %v443_v44 = vld [vmem:[%s2373_s11 + $0x6c0] sm:$0xff]  ;;  %v445_v45 = vld [vmem:[%s2373_s11 + $0x6c8] sm:$0xff] }
  0x4b   : > { %v447_v46 = vld [vmem:[%s2373_s11 + $0x6e0] sm:$0xff]  ;;  %444 = vst [vmem:[%s2378_s12 + $0x360] sm:$0xff] %v443_v44  ;;  %446 = vst [vmem:[%s2378_s12 + $0x368] sm:$0xff] %v445_v45  ;;  %v449_v47 = vld [vmem:[%s2373_s11 + $0x6e8] sm:$0xff] }
  0x4c   : > { %448 = vst [vmem:[%s2378_s12 + $0x370] sm:$0xff] %v447_v46  ;;  %v451_v48 = vld [vmem:[%s2373_s11 + $0x700] sm:$0xff]  ;;  %v453_v49 = vld [vmem:[%s2373_s11 + $0x708] sm:$0xff]  ;;  %450 = vst [vmem:[%s2378_s12 + $0x378] sm:$0xff] %v449_v47 }
  0x4d   : > { %452 = vst [vmem:[%s2378_s12 + $0x380] sm:$0xff] %v451_v48  ;;  %454 = vst [vmem:[%s2378_s12 + $0x388] sm:$0xff] %v453_v49  ;;  %v455_v50 = vld [vmem:[%s2373_s11 + $0x720] sm:$0xff]  ;;  %v457_v51 = vld [vmem:[%s2373_s11 + $0x728] sm:$0xff] }
  0x4e   : > { %v459_v52 = vld [vmem:[%s2373_s11 + $0x740] sm:$0xff]  ;;  %456 = vst [vmem:[%s2378_s12 + $0x390] sm:$0xff] %v455_v50  ;;  %458 = vst [vmem:[%s2378_s12 + $0x398] sm:$0xff] %v457_v51  ;;  %v461_v53 = vld [vmem:[%s2373_s11 + $0x748] sm:$0xff] }
  0x4f   : > { %460 = vst [vmem:[%s2378_s12 + $0x3a0] sm:$0xff] %v459_v52  ;;  %v463_v54 = vld [vmem:[%s2373_s11 + $0x760] sm:$0xff]  ;;  %v465_v55 = vld [vmem:[%s2373_s11 + $0x768] sm:$0xff]  ;;  %462 = vst [vmem:[%s2378_s12 + $0x3a8] sm:$0xff] %v461_v53 }
  0x50   : > { %464 = vst [vmem:[%s2378_s12 + $0x3b0] sm:$0xff] %v463_v54  ;;  %466 = vst [vmem:[%s2378_s12 + $0x3b8] sm:$0xff] %v465_v55  ;;  %v467_v56 = vld [vmem:[%s2373_s11 + $0x780] sm:$0xff]  ;;  %v469_v57 = vld [vmem:[%s2373_s11 + $0x788] sm:$0xff] }
  0x51   : > { %v471_v58 = vld [vmem:[%s2373_s11 + $0x7a0] sm:$0xff]  ;;  %468 = vst [vmem:[%s2378_s12 + $0x3c0] sm:$0xff] %v467_v56  ;;  %470 = vst [vmem:[%s2378_s12 + $0x3c8] sm:$0xff] %v469_v57  ;;  %v473_v59 = vld [vmem:[%s2373_s11 + $0x7a8] sm:$0xff] }
  0x52   : > { %472 = vst [vmem:[%s2378_s12 + $0x3d0] sm:$0xff] %v471_v58  ;;  %v475_v60 = vld [vmem:[%s2373_s11 + $0x7c0] sm:$0xff]  ;;  %v477_v61 = vld [vmem:[%s2373_s11 + $0x7c8] sm:$0xff]  ;;  %474 = vst [vmem:[%s2378_s12 + $0x3d8] sm:$0xff] %v473_v59 }
  0x53   : > { %476 = vst [vmem:[%s2378_s12 + $0x3e0] sm:$0xff] %v475_v60  ;;  %478 = vst [vmem:[%s2378_s12 + $0x3e8] sm:$0xff] %v477_v61  ;;  %v479_v62 = vld [vmem:[%s2373_s11 + $0x7e0] sm:$0xff]  ;;  %v481_v63 = vld [vmem:[%s2373_s11 + $0x7e8] sm:$0xff] }
  0x54   : > { %480 = vst [vmem:[%s2378_s12 + $0x3f0] sm:$0xff] %v479_v62  ;;  %482 = vst [vmem:[%s2378_s12 + $0x3f8] sm:$0xff] %v481_v63 }
  0x55 PF: > { %p1871_p7 = scmp.ge.s32.totalorder %s2294_s23, 1  ;;  %p495_p8 = scmp.lt.s32.totalorder %s2294_s23, 3 }
  0x57   : > { %p496_p9 = pnand %p1871_p7, %p495_p8 }
  0x58   : > { %s502_s13 = sand.u32 (!%p496_p9), 1, %s2286_s21   ;;  %v2156_v0 = vld [vmem:[%s3180_s0 + $0x4] ss:$16 sps:$4 sm:$0xff] (!%p496_p9)   ;;  %v2296_v9 = vmov (!%p496_p9), 0   ;;  %s1874_s20 = sshll.u32 (!%p496_p9), %s2348_s24, 2 }
  0x59   : > { %499 = sbr.rel (%p496_p9) target bundleno = 481 (0x1e1), region = 63  ;;  %s1872_s14 = sshll.u32 (!%p496_p9), %s502_s13, 10  ;;  %1365 = vmatprep.mubr.bf16.mxu0 (!%p496_p9), %v2156_v0  ;;  %1451 = vmatprep.mubr.bf16.mxu1 (!%p496_p9), %v2156_v0 }
  0x5a   : > { %s2641_s17 = scalar_lea.vmem (!%p496_p9), [#allocation2], %s1872_s14  ;;  %2056 = vset.pattern.permute.xlu0 (!%p496_p9), %v2296_v9  ;;  %2057 = vset.pattern.permute.xlu1 (!%p496_p9), %v2296_v9  ;;  %s2015_s23 = sshll.u32 (!%p496_p9), %s2348_s24, 9 }
  0x5b   : > { %v2058_v1 = vld [vmem:[%s2641_s17 + $0x4] ss:$16 sps:$4 sm:$0xff] (!%p496_p9)   ;;  %v2060_v2 = vld [vmem:[%s2641_s17 + $0xc] ss:$16 sps:$4 sm:$0xff] (!%p496_p9)   ;;  %v2062_v3 = vld [vmem:[%s2641_s17] ss:$16 sps:$4 sm:$0xff] (!%p496_p9)  }
  0x5c   : > { %1333 = vmatprep.subr.bf16.mxu0 (!%p496_p9), %v2058_v1  ;;  %v2063_v4 = vld [vmem:[%s2641_s17 + $0x8] ss:$16 sps:$4 sm:$0xff] (!%p496_p9)   ;;  %1419 = vmatprep.subr.bf16.mxu1 (!%p496_p9), %v2060_v2  ;;  %v2064_v5 = vld [vmem:[%s2641_s17 + $0x24] ss:$16 sps:$4 sm:$0xff] (!%p496_p9)   ;;  %v2066_v6 = vld [vmem:[%s2641_s17 + $0x2c] ss:$16 sps:$4 sm:$0xff] (!%p496_p9)  }
  0x5d   : > { %1334 = vmatpush1.bf16.msra.mxu0 (!%p496_p9), %v2062_v3  ;;  %1420 = vmatpush1.bf16.msra.mxu1 (!%p496_p9), %v2063_v4  ;;  %v2068_v7 = vld [vmem:[%s2641_s17 + $0x20] ss:$16 sps:$4 sm:$0xff] (!%p496_p9)   ;;  %v2069_v8 = vld [vmem:[%s2641_s17 + $0x28] ss:$16 sps:$4 sm:$0xff] (!%p496_p9)   ;;  %v2070_v10 = vld [vmem:[%s2641_s17 + $0x44] ss:$16 sps:$4 sm:$0xff] (!%p496_p9)  }
  0x5e   : > { %1335 = vmatprep.subr.bf16.mxu0 (!%p496_p9), %v2064_v5  ;;  %1421 = vmatprep.subr.bf16.mxu1 (!%p496_p9), %v2066_v6  ;;  %v2072_v11 = vld [vmem:[%s2641_s17 + $0x4c] ss:$16 sps:$4 sm:$0xff] (!%p496_p9)   ;;  %v2074_v12 = vld [vmem:[%s2641_s17 + $0x40] ss:$16 sps:$4 sm:$0xff] (!%p496_p9)   ;;  %v2075_v13 = vld [vmem:[%s2641_s17 + $0x48] ss:$16 sps:$4 sm:$0xff] (!%p496_p9)  }
  0x5f   : > { %v2076_v14 = vld [vmem:[%s2641_s17 + $0x64] ss:$16 sps:$4 sm:$0xff] (!%p496_p9)   ;;  %v2078_v15 = vld [vmem:[%s2641_s17 + $0x6c] ss:$16 sps:$4 sm:$0xff] (!%p496_p9)   ;;  %v2080_v16 = vld [vmem:[%s2641_s17 + $0x60] ss:$16 sps:$4 sm:$0xff] (!%p496_p9)  }
  0x60   : > { %v2081_v17 = vld [vmem:[%s2641_s17 + $0x68] ss:$16 sps:$4 sm:$0xff]   ;;  %v2082_v18 = vld [vmem:[%s2641_s17 + $0x84] ss:$16 sps:$4 sm:$0xff]   ;;  %v2084_v19 = vld [vmem:[%s2641_s17 + $0x8c] ss:$16 sps:$4 sm:$0xff]  }
  0x61   : > { %1336 = vmatpush1.bf16.msra.mxu0 %v2068_v7  ;;  %1422 = vmatpush1.bf16.msra.mxu1 %v2069_v8  ;;  %v2086_v20 = vld [vmem:[%s2641_s17 + $0x80] ss:$16 sps:$4 sm:$0xff]   ;;  %v2087_v21 = vld [vmem:[%s2641_s17 + $0x88] ss:$16 sps:$4 sm:$0xff]   ;;  %v2088_v22 = vld [vmem:[%s2641_s17 + $0xa4] ss:$16 sps:$4 sm:$0xff]  }
  0x62   : > { %1337 = vmatprep.subr.bf16.mxu0 %v2070_v10  ;;  %1423 = vmatprep.subr.bf16.mxu1 %v2072_v11  ;;  %v2090_v23 = vld [vmem:[%s2641_s17 + $0xac] ss:$16 sps:$4 sm:$0xff]   ;;  %v2092_v24 = vld [vmem:[%s2641_s17 + $0xa0] ss:$16 sps:$4 sm:$0xff]   ;;  %v2093_v25 = vld [vmem:[%s2641_s17 + $0xa8] ss:$16 sps:$4 sm:$0xff]  }
  0x63   : > { %v2094_v26 = vld [vmem:[%s2641_s17 + $0xc4] ss:$16 sps:$4 sm:$0xff]   ;;  %v2096_v27 = vld [vmem:[%s2641_s17 + $0xcc] ss:$16 sps:$4 sm:$0xff]   ;;  %v2098_v28 = vld [vmem:[%s2641_s17 + $0xc0] ss:$16 sps:$4 sm:$0xff]  }
  0x64   : > { %v2099_v29 = vld [vmem:[%s2641_s17 + $0xc8] ss:$16 sps:$4 sm:$0xff]   ;;  %v2100_v30 = vld [vmem:[%s2641_s17 + $0xe4] ss:$16 sps:$4 sm:$0xff]   ;;  %v2102_v31 = vld [vmem:[%s2641_s17 + $0xec] ss:$16 sps:$4 sm:$0xff]  }
  0x65   : > { %1338 = vmatpush1.bf16.msra.mxu0 %v2074_v12  ;;  %1424 = vmatpush1.bf16.msra.mxu1 %v2075_v13  ;;  %v2104_v32 = vld [vmem:[%s2641_s17 + $0xe0] ss:$16 sps:$4 sm:$0xff]   ;;  %v2105_v33 = vld [vmem:[%s2641_s17 + $0xe8] ss:$16 sps:$4 sm:$0xff]   ;;  %v2106_v34 = vld [vmem:[%s2641_s17 + $0x104] ss:$16 sps:$4 sm:$0xff]  }
  0x66   : > { %1339 = vmatprep.subr.bf16.mxu0 %v2076_v14  ;;  %1425 = vmatprep.subr.bf16.mxu1 %v2078_v15  ;;  %v2108_v35 = vld [vmem:[%s2641_s17 + $0x10c] ss:$16 sps:$4 sm:$0xff]   ;;  %v2110_v36 = vld [vmem:[%s2641_s17 + $0x100] ss:$16 sps:$4 sm:$0xff]   ;;  %v2111_v37 = vld [vmem:[%s2641_s17 + $0x108] ss:$16 sps:$4 sm:$0xff]  }
  0x67   : > { %v2112_v38 = vld [vmem:[%s2641_s17 + $0x124] ss:$16 sps:$4 sm:$0xff]   ;;  %v2114_v39 = vld [vmem:[%s2641_s17 + $0x12c] ss:$16 sps:$4 sm:$0xff]   ;;  %v2116_v40 = vld [vmem:[%s2641_s17 + $0x120] ss:$16 sps:$4 sm:$0xff]  }
  0x68   : > { %v2117_v41 = vld [vmem:[%s2641_s17 + $0x128] ss:$16 sps:$4 sm:$0xff]   ;;  %v2118_v42 = vld [vmem:[%s2641_s17 + $0x144] ss:$16 sps:$4 sm:$0xff]   ;;  %v2120_v43 = vld [vmem:[%s2641_s17 + $0x14c] ss:$16 sps:$4 sm:$0xff]  }
  0x69   : > { %1340 = vmatpush1.bf16.msra.mxu0 %v2080_v16  ;;  %1426 = vmatpush1.bf16.msra.mxu1 %v2081_v17  ;;  %v2122_v44 = vld [vmem:[%s2641_s17 + $0x140] ss:$16 sps:$4 sm:$0xff]   ;;  %v2123_v45 = vld [vmem:[%s2641_s17 + $0x148] ss:$16 sps:$4 sm:$0xff]   ;;  %v2124_v46 = vld [vmem:[%s2641_s17 + $0x164] ss:$16 sps:$4 sm:$0xff]  }
  0x6a   : > { %1341 = vmatprep.subr.bf16.mxu0 %v2082_v18  ;;  %1427 = vmatprep.subr.bf16.mxu1 %v2084_v19  ;;  %v2126_v47 = vld [vmem:[%s2641_s17 + $0x16c] ss:$16 sps:$4 sm:$0xff]   ;;  %v2128_v48 = vld [vmem:[%s2641_s17 + $0x160] ss:$16 sps:$4 sm:$0xff]   ;;  %v2129_v49 = vld [vmem:[%s2641_s17 + $0x168] ss:$16 sps:$4 sm:$0xff]  }
  0x6b   : > { %v2130_v50 = vld [vmem:[%s2641_s17 + $0x184] ss:$16 sps:$4 sm:$0xff]   ;;  %v2132_v51 = vld [vmem:[%s2641_s17 + $0x18c] ss:$16 sps:$4 sm:$0xff]   ;;  %v2134_v52 = vld [vmem:[%s2641_s17 + $0x180] ss:$16 sps:$4 sm:$0xff]  }
  0x6c   : > { %v2135_v53 = vld [vmem:[%s2641_s17 + $0x188] ss:$16 sps:$4 sm:$0xff]   ;;  %v2136_v54 = vld [vmem:[%s2641_s17 + $0x1a4] ss:$16 sps:$4 sm:$0xff]   ;;  %v2138_v55 = vld [vmem:[%s2641_s17 + $0x1ac] ss:$16 sps:$4 sm:$0xff]  }
  0x6d   : > { %1342 = vmatpush1.bf16.msra.mxu0 %v2086_v20  ;;  %1428 = vmatpush1.bf16.msra.mxu1 %v2087_v21  ;;  %v2140_v56 = vld [vmem:[%s2641_s17 + $0x1a0] ss:$16 sps:$4 sm:$0xff]   ;;  %v2141_v57 = vld [vmem:[%s2641_s17 + $0x1a8] ss:$16 sps:$4 sm:$0xff]   ;;  %v2142_v58 = vld [vmem:[%s2641_s17 + $0x1c4] ss:$16 sps:$4 sm:$0xff]  }
  0x6e   : > { %1343 = vmatprep.subr.bf16.mxu0 %v2088_v22  ;;  %1429 = vmatprep.subr.bf16.mxu1 %v2090_v23  ;;  %v2144_v59 = vld [vmem:[%s2641_s17 + $0x1cc] ss:$16 sps:$4 sm:$0xff]   ;;  %v2146_v60 = vld [vmem:[%s2641_s17 + $0x1c0] ss:$16 sps:$4 sm:$0xff]   ;;  %v2147_v61 = vld [vmem:[%s2641_s17 + $0x1c8] ss:$16 sps:$4 sm:$0xff]  }
  0x6f   : > { %v2148_v62 = vld [vmem:[%s2641_s17 + $0x1e4] ss:$16 sps:$4 sm:$0xff]   ;;  %v2150_v63 = vld [vmem:[%s2641_s17 + $0x1ec] ss:$16 sps:$4 sm:$0xff]   ;;  %v2152_v0 = vld [vmem:[%s2641_s17 + $0x1e0] ss:$16 sps:$4 sm:$0xff]  }
  0x70   : > { %v2153_v1 = vld [vmem:[%s2641_s17 + $0x1e8] ss:$16 sps:$4 sm:$0xff]   ;;  %v2159_v2 = vld [vmem:[%s2641_s17 + $0x204] ss:$16 sps:$4 sm:$0xff]   ;;  %v2162_v3 = vld [vmem:[%s2641_s17 + $0x20c] ss:$16 sps:$4 sm:$0xff]  }
  0x71   : > { %1344 = vmatpush1.bf16.msra.mxu0 %v2092_v24  ;;  %1430 = vmatpush1.bf16.msra.mxu1 %v2093_v25  ;;  %v2154_v4 = vld [vmem:[%s3180_s0] ss:$16 sps:$4 sm:$0xff]   ;;  %v2160_v6 = vld [vmem:[%s2641_s17 + $0x208] ss:$16 sps:$4 sm:$0xff]   ;;  %v2165_v7 = vld [vmem:[%s2641_s17 + $0x224] ss:$16 sps:$4 sm:$0xff]  }
  0x72   : > { %1345 = vmatprep.subr.bf16.mxu0 %v2094_v26  ;;  %1431 = vmatprep.subr.bf16.mxu1 %v2096_v27  ;;  %v2157_v5 = vld [vmem:[%s2641_s17 + $0x200] ss:$16 sps:$4 sm:$0xff]   ;;  %v2168_v8 = vld [vmem:[%s2641_s17 + $0x22c] ss:$16 sps:$4 sm:$0xff]   ;;  %v2166_v11 = vld [vmem:[%s2641_s17 + $0x228] ss:$16 sps:$4 sm:$0xff]  }
  0x73   : > { %v2163_v10 = vld [vmem:[%s2641_s17 + $0x220] ss:$16 sps:$4 sm:$0xff]   ;;  %v2171_v12 = vld [vmem:[%s2641_s17 + $0x244] ss:$16 sps:$4 sm:$0xff]   ;;  %v2174_v13 = vld [vmem:[%s2641_s17 + $0x24c] ss:$16 sps:$4 sm:$0xff]  }
  0x74   : > { %v2169_v14 = vld [vmem:[%s2641_s17 + $0x240] ss:$16 sps:$4 sm:$0xff]   ;;  %v2172_v15 = vld [vmem:[%s2641_s17 + $0x248] ss:$16 sps:$4 sm:$0xff]   ;;  %v2177_v16 = vld [vmem:[%s2641_s17 + $0x264] ss:$16 sps:$4 sm:$0xff]  }
  0x75   : > { %1346 = vmatpush1.bf16.msra.mxu0 %v2098_v28  ;;  %1432 = vmatpush1.bf16.msra.mxu1 %v2099_v29  ;;  %v2180_v17 = vld [vmem:[%s2641_s17 + $0x26c] ss:$16 sps:$4 sm:$0xff]   ;;  %v2175_v18 = vld [vmem:[%s2641_s17 + $0x260] ss:$16 sps:$4 sm:$0xff]   ;;  %v2178_v19 = vld [vmem:[%s2641_s17 + $0x268] ss:$16 sps:$4 sm:$0xff]  }
  0x76   : > { %1347 = vmatprep.subr.bf16.mxu0 %v2100_v30  ;;  %1433 = vmatprep.subr.bf16.mxu1 %v2102_v31  ;;  %v2183_v20 = vld [vmem:[%s2641_s17 + $0x284] ss:$16 sps:$4 sm:$0xff]   ;;  %v2186_v21 = vld [vmem:[%s2641_s17 + $0x28c] ss:$16 sps:$4 sm:$0xff]   ;;  %v2181_v22 = vld [vmem:[%s2641_s17 + $0x280] ss:$16 sps:$4 sm:$0xff]  }
  0x77   : > { %v2184_v23 = vld [vmem:[%s2641_s17 + $0x288] ss:$16 sps:$4 sm:$0xff]   ;;  %v2189_v24 = vld [vmem:[%s2641_s17 + $0x2a4] ss:$16 sps:$4 sm:$0xff]   ;;  %v2192_v25 = vld [vmem:[%s2641_s17 + $0x2ac] ss:$16 sps:$4 sm:$0xff]  }
  0x78   : > { %v2187_v26 = vld [vmem:[%s2641_s17 + $0x2a0] ss:$16 sps:$4 sm:$0xff]   ;;  %v2190_v27 = vld [vmem:[%s2641_s17 + $0x2a8] ss:$16 sps:$4 sm:$0xff]   ;;  %v2195_v28 = vld [vmem:[%s2641_s17 + $0x2c4] ss:$16 sps:$4 sm:$0xff]  }
  0x79   : > { %1348 = vmatpush1.bf16.msra.mxu0 %v2104_v32  ;;  %1434 = vmatpush1.bf16.msra.mxu1 %v2105_v33  ;;  %v2198_v29 = vld [vmem:[%s2641_s17 + $0x2cc] ss:$16 sps:$4 sm:$0xff]   ;;  %v1631_v31 = vld [vmem:[%s3183_s3] sm:$0xff]  ;;  %p536_p10 = scmp.lt.s32.totalorder %s1874_s20, 7  ;;  %s1873_s30 = sshll.u32 %s502_s13, 6 }
  0x7a   : > { %1349 = vmatprep.subr.bf16.mxu0 %v2106_v34  ;;  %1435 = vmatprep.subr.bf16.mxu1 %v2108_v35  ;;  %v2255_v30 = vld [vmem:[%s3180_s0 + $0xc] ss:$16 sps:$4 sm:$0xff]   ;;  %vm1658_vm0 = vcmp.ge.s32.totalorder %v1631_v31, 0  ;;  %v2193_v33 = vld [vmem:[%s2641_s17 + $0x2c0] ss:$16 sps:$4 sm:$0xff]   ;;  %s3118_s21 = scalar_lea.vmem [#allocation3], %s1873_s30 }
  0x7b   : > { %v1632_v32 = vld [vmem:[%s3183_s3 + $0x8] sm:$0xff]  ;;  %v1660_v35 = vsel %vm1658_vm0, 1, %v2296_v9  ;;  %1645 = vperm.xlu0 %2056, %v1631_v31   ;;  %s3217_s20 = smov (!%p536_p10, %s1874_s20), 7  ;;  %s2022_s13 = sshll.u32 (%p2363_p5), %s2348_s24, 5 }
  0x7c   : > { %v2196_v34 = vld [vmem:[%s2641_s17 + $0x2c8] ss:$16 sps:$4 sm:$0xff]   ;;  %vm1659_vm1 = vcmp.ge.s32.totalorder %v1632_v32, 0  ;;  %1663 = vperm.xlu1 %2057, %v1660_v35   ;;  %s538_s27 = scalar_lea.vmem %s3182_s2, %s3217_s20  ;;  %s1767_s9 = scalar_lea.vmem (%p2363_p5), %s3186_s6, %s2022_s13 }
  0x7d   : > { %1350 = vmatpush1.bf16.msra.mxu0 %v2110_v36  ;;  %1436 = vmatpush1.bf16.msra.mxu1 %v2111_v37  ;;  %v2201_v36 = vld [vmem:[%s2641_s17 + $0x2e4] ss:$16 sps:$4 sm:$0xff]   ;;  %v2204_v37 = vld [vmem:[%s2641_s17 + $0x2ec] ss:$16 sps:$4 sm:$0xff]  }
  0x7e   : > { %1351 = vmatprep.subr.bf16.mxu0 %v2112_v38  ;;  %1437 = vmatprep.subr.bf16.mxu1 %v2114_v39  ;;  %v1661_v38 = vsel %vm1659_vm1, 1, %v2296_v9  ;;  %v2199_v39 = vld [vmem:[%s2641_s17 + $0x2e0] ss:$16 sps:$4 sm:$0xff]   ;;  %v1679_v9 = vld [vmem:[%s3184_s4 + $0x8] sm:$0xff] }
  0x7f   : > { %1648 = vperm.xlu0 %2056, %v1632_v32  }
  0x80   : > { %1666 = vperm.xlu1 %2057, %v1661_v38  }
  0x81   : > { %1352 = vmatpush1.bf16.msra.mxu0 %v2116_v40  ;;  %1438 = vmatpush1.bf16.msra.mxu1 %v2117_v41  ;;  %v2202_v40 = vld [vmem:[%s2641_s17 + $0x2e8] ss:$16 sps:$4 sm:$0xff]   ;;  %v2207_v41 = vld [vmem:[%s2641_s17 + $0x304] ss:$16 sps:$4 sm:$0xff]  }
  0x82   : > { %1353 = vmatprep.subr.bf16.mxu0 %v2118_v42  ;;  %1439 = vmatprep.subr.bf16.mxu1 %v2120_v43  ;;  %v2210_v42 = vld [vmem:[%s2641_s17 + $0x30c] ss:$16 sps:$4 sm:$0xff]   ;;  %v1678_v43 = vld [vmem:[%s3184_s4] sm:$0xff] }
  0x83   : > { %1682 = vperm.xlu0 %2056, %v1678_v43  }
  0x84   : > { %1687 = vperm.xlu1 %2057, %v1679_v9  }
  0x85   : > { %1354 = vmatpush1.bf16.msra.mxu0 %v2122_v44  ;;  %1440 = vmatpush1.bf16.msra.mxu1 %v2123_v45  ;;  %v2205_v44 = vld [vmem:[%s2641_s17 + $0x300] ss:$16 sps:$4 sm:$0xff]   ;;  %v2208_v45 = vld [vmem:[%s2641_s17 + $0x308] ss:$16 sps:$4 sm:$0xff]  }
  0x86   : > { %1355 = vmatprep.subr.bf16.mxu0 %v2124_v46  ;;  %1441 = vmatprep.subr.bf16.mxu1 %v2126_v47  ;;  %v2213_v46 = vld [vmem:[%s2641_s17 + $0x324] ss:$16 sps:$4 sm:$0xff]   ;;  %v2216_v47 = vld [vmem:[%s2641_s17 + $0x32c] ss:$16 sps:$4 sm:$0xff]  }
  0x89   : > { %1356 = vmatpush1.bf16.msra.mxu0 %v2128_v48  ;;  %1442 = vmatpush1.bf16.msra.mxu1 %v2129_v49  ;;  %v1698_v48 = vld [vmem:[%s3185_s5] sm:$0xff]  ;;  %v1699_v49 = vld [vmem:[%s3185_s5 + $0x8] sm:$0xff] }
  0x8a   : > { %1357 = vmatprep.subr.bf16.mxu0 %v2130_v50  ;;  %1443 = vmatprep.subr.bf16.mxu1 %v2132_v51  ;;  %v2211_v50 = vld [vmem:[%s2641_s17 + $0x320] ss:$16 sps:$4 sm:$0xff]   ;;  %v2214_v51 = vld [vmem:[%s2641_s17 + $0x328] ss:$16 sps:$4 sm:$0xff]  }
  0x8b   : > { %1702 = vperm.xlu0 %2056, %v1698_v48   ;;  %1707 = vperm.xlu1 %2057, %v1699_v49  }
  0x8d   : > { %1358 = vmatpush1.bf16.msra.mxu0 %v2134_v52  ;;  %1444 = vmatpush1.bf16.msra.mxu1 %v2135_v53  ;;  %v2219_v52 = vld [vmem:[%s2641_s17 + $0x344] ss:$16 sps:$4 sm:$0xff]   ;;  %v2222_v53 = vld [vmem:[%s2641_s17 + $0x34c] ss:$16 sps:$4 sm:$0xff]  }
  0x8e   : > { %1359 = vmatprep.subr.bf16.mxu0 %v2136_v54  ;;  %1445 = vmatprep.subr.bf16.mxu1 %v2138_v55  ;;  %v2217_v54 = vld [vmem:[%s2641_s17 + $0x340] ss:$16 sps:$4 sm:$0xff]   ;;  %v2220_v55 = vld [vmem:[%s2641_s17 + $0x348] ss:$16 sps:$4 sm:$0xff]  }
  0x91   : > { %1360 = vmatpush1.bf16.msra.mxu0 %v2140_v56  ;;  %1446 = vmatpush1.bf16.msra.mxu1 %v2141_v57  ;;  %v2225_v56 = vld [vmem:[%s2641_s17 + $0x364] ss:$16 sps:$4 sm:$0xff]   ;;  %v2228_v57 = vld [vmem:[%s2641_s17 + $0x36c] ss:$16 sps:$4 sm:$0xff]  }
  0x92   : > { %1361 = vmatprep.subr.bf16.mxu0 %v2142_v58  ;;  %1447 = vmatprep.subr.bf16.mxu1 %v2144_v59  ;;  %v2223_v58 = vld [vmem:[%s2641_s17 + $0x360] ss:$16 sps:$4 sm:$0xff]   ;;  %v2226_v59 = vld [vmem:[%s2641_s17 + $0x368] ss:$16 sps:$4 sm:$0xff]  }
  0x95   : > { %1362 = vmatpush1.bf16.msra.mxu0 %v2146_v60  ;;  %1448 = vmatpush1.bf16.msra.mxu1 %v2147_v61  ;;  %v2231_v60 = vld [vmem:[%s2641_s17 + $0x384] ss:$16 sps:$4 sm:$0xff]   ;;  %v2234_v61 = vld [vmem:[%s2641_s17 + $0x38c] ss:$16 sps:$4 sm:$0xff]  }
  0x96   : > { %1363 = vmatprep.subr.bf16.mxu0 %v2148_v62  ;;  %1449 = vmatprep.subr.bf16.mxu1 %v2150_v63  ;;  %v2229_v62 = vld [vmem:[%s2641_s17 + $0x380] ss:$16 sps:$4 sm:$0xff]   ;;  %v2232_v63 = vld [vmem:[%s2641_s17 + $0x388] ss:$16 sps:$4 sm:$0xff]  }
  0x99   : > { %1364 = vmatpush1.bf16.msra.mxu0 %v2152_v0  ;;  %1450 = vmatpush1.bf16.msra.mxu1 %v2153_v1  ;;  %v2237_v0 = vld [vmem:[%s2641_s17 + $0x3a4] ss:$16 sps:$4 sm:$0xff]   ;;  %v2240_v1 = vld [vmem:[%s2641_s17 + $0x3ac] ss:$16 sps:$4 sm:$0xff]  }
  0x9a   : > { %1376 = vmatprep.subr.bf16.mxu0 %v2159_v2  ;;  %1462 = vmatprep.subr.bf16.mxu1 %v2162_v3  ;;  %v2235_v2 = vld [vmem:[%s2641_s17 + $0x3a0] ss:$16 sps:$4 sm:$0xff]   ;;  %v2238_v3 = vld [vmem:[%s2641_s17 + $0x3a8] ss:$16 sps:$4 sm:$0xff]  }
  0x9c   : > { %1366 = vmatmul.mubr.bf16.vlgmr.msra.gmra.mrb[0].mxu0 %v2154_v4  ;;  %1452 = vmatmul.mubr.bf16.vlgmr.msra.gmra.mrb[0].mxu1 %v2154_v4  ;;  %v2243_v4 = vld [vmem:[%s2641_s17 + $0x3c4] ss:$16 sps:$4 sm:$0xff]  }
  0x9d   : > { %1377 = vmatpush1.bf16.msra.mxu0 %v2157_v5  ;;  %1463 = vmatpush1.bf16.msra.mxu1 %v2160_v6  ;;  %v2246_v5 = vld [vmem:[%s2641_s17 + $0x3cc] ss:$16 sps:$4 sm:$0xff]   ;;  %v2241_v6 = vld [vmem:[%s2641_s17 + $0x3c0] ss:$16 sps:$4 sm:$0xff]  }
  0x9e   : > { %1378 = vmatprep.subr.bf16.mxu0 %v2165_v7  ;;  %1464 = vmatprep.subr.bf16.mxu1 %v2168_v8  ;;  %v2244_v7 = vld [vmem:[%s2641_s17 + $0x3c8] ss:$16 sps:$4 sm:$0xff]   ;;  %v2249_v8 = vld [vmem:[%s2641_s17 + $0x3e4] ss:$16 sps:$4 sm:$0xff]  }
  0x9f   : > { %1408 = vmatprep.mubr.bf16.mxu0 %v2255_v30  ;;  %1494 = vmatprep.mubr.bf16.mxu1 %v2255_v30 }
  0xa1   : > { %1379 = vmatpush1.bf16.msra.mxu0 %v2163_v10  ;;  %1465 = vmatpush1.bf16.msra.mxu1 %v2166_v11  ;;  %v2252_v10 = vld [vmem:[%s2641_s17 + $0x3ec] ss:$16 sps:$4 sm:$0xff]   ;;  %v2247_v11 = vld [vmem:[%s2641_s17 + $0x3e0] ss:$16 sps:$4 sm:$0xff]  }
  0xa2   : > { %1380 = vmatprep.subr.bf16.mxu0 %v2171_v12  ;;  %1466 = vmatprep.subr.bf16.mxu1 %v2174_v13  ;;  %v2250_v12 = vld [vmem:[%s2641_s17 + $0x3e8] ss:$16 sps:$4 sm:$0xff]  }
  0xa3   : > { %v2253_v13 = vld [vmem:[%s3180_s0 + $0x8] ss:$16 sps:$4 sm:$0xff]  }
  0xa5   : > { %1381 = vmatpush1.bf16.msra.mxu0 %v2169_v14  ;;  %1467 = vmatpush1.bf16.msra.mxu1 %v2172_v15  ;;  %v1507_v14 = vlaneseq }
  0xa6   : > { %1382 = vmatprep.subr.bf16.mxu0 %v2177_v16  ;;  %1468 = vmatprep.subr.bf16.mxu1 %v2180_v17  ;;  %v1639_v17 = vstv %s2015_s23 }
  0xa7   : > { %v1634_v15 = vand.u32 127, %v1507_v14 }
  0xa9   : > { %1383 = vmatpush1.bf16.msra.mxu0 %v2175_v18  ;;  %1469 = vmatpush1.bf16.msra.mxu1 %v2178_v19  ;;  %v1635_v18 = vadd.s32 128, %v1634_v15  ;;  %v1636_v19 = vadd.s32 256, %v1634_v15 }
  0xaa   : > { %1384 = vmatprep.subr.bf16.mxu0 %v2183_v20  ;;  %1470 = vmatprep.subr.bf16.mxu1 %v2186_v21  ;;  %v2806_v20 = vadd.s32 %v1639_v17, %v1634_v15  ;;  %v1508_v21 = vshrl.u32 %v1507_v14, 7 }
  0xac   : > { %v1513_v30 = vsub.s32 1, %v1508_v21  ;;  %v1521_v31 = vsub.s32 3, %v1508_v21 }
  0xad   : > { %1385 = vmatpush1.bf16.msra.mxu0 %v2181_v22  ;;  %1471 = vmatpush1.bf16.msra.mxu1 %v2184_v23  ;;  %v2808_v22 = vadd.s32 %v1639_v17, %v1635_v18  ;;  %v2810_v23 = vadd.s32 %v1639_v17, %v1636_v19 }
  0xae   : > { %1386 = vmatprep.subr.bf16.mxu0 %v2189_v24  ;;  %1472 = vmatprep.subr.bf16.mxu1 %v2192_v25 }
  0xb1   : > { %1387 = vmatpush1.bf16.msra.mxu0 %v2187_v26  ;;  %1473 = vmatpush1.bf16.msra.mxu1 %v2190_v27  ;;  %v1637_v26 = vadd.s32 384, %v1634_v15  ;;  %v1509_v27 = vsub.s32 0, %v1508_v21 }
  0xb2   : > { %1388 = vmatprep.subr.bf16.mxu0 %v2195_v28  ;;  %1474 = vmatprep.subr.bf16.mxu1 %v2198_v29  ;;  %v1517_v28 = vsub.s32 2, %v1508_v21  ;;  %v1505_v29 = vld [vmem:[%s538_s27] sm:$0xf] }
  0xb3   : > { %v2826_v32 = vadd.s32 %v1639_v17, %v1637_v26  ;;  %v1510_v35 = vrot.slane %v1505_v29, %v1509_v27 }
  0xb5   : > { %1389 = vmatpush1.bf16.msra.mxu0 %v2193_v33  ;;  %1475 = vmatpush1.bf16.msra.mxu1 %v2196_v34 }
  0xb6   : > { %1390 = vmatprep.subr.bf16.mxu0 %v2201_v36  ;;  %1476 = vmatprep.subr.bf16.mxu1 %v2204_v37  ;;  %v1518_v36 = vrot.slane %v1505_v29, %v1517_v28 }
  0xb9   : > { %1391 = vmatpush1.bf16.msra.mxu0 %v2199_v39  ;;  %1477 = vmatpush1.bf16.msra.mxu1 %v2202_v40  ;;  %v1514_v39 = vrot.slane %v1505_v29, %v1513_v30  ;;  %v1522_v40 = vrot.slane %v1505_v29, %v1521_v31 }
  0xba   : > { %1392 = vmatprep.subr.bf16.mxu0 %v2207_v41  ;;  %1478 = vmatprep.subr.bf16.mxu1 %v2210_v42 }
  0xbd   : > { %1393 = vmatpush1.bf16.msra.mxu0 %v2205_v44  ;;  %1479 = vmatpush1.bf16.msra.mxu1 %v2208_v45 }
  0xbe   : > { %1394 = vmatprep.subr.bf16.mxu0 %v2213_v46  ;;  %1480 = vmatprep.subr.bf16.mxu1 %v2216_v47 }
  0xc1   : > { %1395 = vmatpush1.bf16.msra.mxu0 %v2211_v50  ;;  %1481 = vmatpush1.bf16.msra.mxu1 %v2214_v51 }
  0xc2   : > { %1396 = vmatprep.subr.bf16.mxu0 %v2219_v52  ;;  %1482 = vmatprep.subr.bf16.mxu1 %v2222_v53 }
  0xc5   : > { %1397 = vmatpush1.bf16.msra.mxu0 %v2217_v54  ;;  %1483 = vmatpush1.bf16.msra.mxu1 %v2220_v55 }
  0xc6   : > { %1398 = vmatprep.subr.bf16.mxu0 %v2225_v56  ;;  %1484 = vmatprep.subr.bf16.mxu1 %v2228_v57 }
  0xc9   : > { %1399 = vmatpush1.bf16.msra.mxu0 %v2223_v58  ;;  %1485 = vmatpush1.bf16.msra.mxu1 %v2226_v59 }
  0xca   : > { %1400 = vmatprep.subr.bf16.mxu0 %v2231_v60  ;;  %1486 = vmatprep.subr.bf16.mxu1 %v2234_v61 }
  0xcd   : > { %1401 = vmatpush1.bf16.msra.mxu0 %v2229_v62  ;;  %1487 = vmatpush1.bf16.msra.mxu1 %v2232_v63 }
  0xce   : > { %1402 = vmatprep.subr.bf16.mxu0 %v2237_v0  ;;  %1488 = vmatprep.subr.bf16.mxu1 %v2240_v1 }
  0xd1   : > { %1403 = vmatpush1.bf16.msra.mxu0 %v2235_v2  ;;  %1489 = vmatpush1.bf16.msra.mxu1 %v2238_v3 }
  0xd2   : > { %1404 = vmatprep.subr.bf16.mxu0 %v2243_v4  ;;  %1490 = vmatprep.subr.bf16.mxu1 %v2246_v5 }
  0xd5   : > { %1405 = vmatpush1.bf16.msra.mxu0 %v2241_v6  ;;  %1491 = vmatpush1.bf16.msra.mxu1 %v2244_v7 }
  0xd6   : > { %1406 = vmatprep.subr.bf16.mxu0 %v2249_v8  ;;  %1492 = vmatprep.subr.bf16.mxu1 %v2252_v10 }
  0xd9   : > { %1407 = vmatpush1.bf16.msra.mxu0 %v2247_v11  ;;  %1493 = vmatpush1.bf16.msra.mxu1 %v2250_v12 }
  0xdc   : > { %1409 = vmatmul.mubr.bf16.vlgmr.msra.gmra.mrb[0].mxu0 %v2253_v13  ;;  %1495 = vmatmul.mubr.bf16.vlgmr.msra.gmra.mrb[0].mxu1 %v2253_v13 }
  0xfa   : > { %v2804_v16 = vpop.permute.xlu0 %1645 }
  0xfb   : > { %v2812_v24 = vpop.permute.xlu1 %1663  ;;  %vm1650_vm3 = vcmp.eq.s32.totalorder %v2806_v20, %v2804_v16  ;;  %vm1651_vm4 = vcmp.eq.s32.totalorder %v2808_v22, %v2804_v16  ;;  %vm1652_vm5 = vcmp.eq.s32.totalorder %v2810_v23, %v2804_v16  ;;  %vm1653_vm9 = vcmp.eq.s32.totalorder %v2826_v32, %v2804_v16 }
  0xfc   : > { %vm1668_vm2 = vcmp.eq.s32.totalorder %v2812_v24, 1 }
  0xfd   : > { %vm2830_vm6 = vmand %vm1650_vm3, %vm1668_vm2 }
  0xfe   : > { %v2814_v25 = vpop.permute.xlu0 %1648  ;;  %vm2836_vm7 = vmand %vm1651_vm4, %vm1668_vm2 }
  0xff   : > { %vm2844_vm8 = vmand %vm1652_vm5, %vm1668_vm2  ;;  %v2848_v41 = vpop.permute.xlu1 %1666  ;;  %vm1654_vm11 = vcmp.eq.s32.totalorder %v2806_v20, %v2814_v25  ;;  %vm1656_vm12 = vcmp.eq.s32.totalorder %v2810_v23, %v2814_v25  ;;  %vm1655_vm13 = vcmp.eq.s32.totalorder %v2808_v22, %v2814_v25  ;;  %vm1657_vm14 = vcmp.eq.s32.totalorder %v2826_v32, %v2814_v25 }
 0x100   : > { %vm1669_vm10 = vcmp.eq.s32.totalorder %v2848_v41, 1  ;;  %vm2903_vm15 = vmand %vm1653_vm9, %vm1668_vm2 }
 0x101   : > { %vm2918_vm0 = vmand %vm1654_vm11, %vm1669_vm10 }
 0x102   : > { %v2840_v37 = vpop.permute.xlu0 %1682  ;;  %vm2933_vm1 = vmand %vm1655_vm13, %vm1669_vm10 }
 0x103   : > { %v1690_v9 = vsel %vm2830_vm6, %v2840_v37, 1.0  ;;  %v1691_v44 = vsel %vm2836_vm7, %v2840_v37, 1.0  ;;  %v1692_v45 = vsel %vm2844_vm8, %v2840_v37, 1.0  ;;  %v2911_v19 = vpop.permute.xlu1 %1687  ;;  %vm2952_vm2 = vmand %vm1656_vm12, %vm1669_vm10 }
 0x104   : > { %vm2972_vm3 = vmand %vm1657_vm14, %vm1669_vm10 }
 0x10a   : > { %v2926_v28 = vpop.permute.xlu0 %1702 }
 0x10b   : > { %v1712_v25 = vsel %vm2844_vm8, %v2926_v28, 0.0  ;;  %v1713_v41 = vsel %vm2903_vm15, %v2926_v28, 0.0 }
 0x1af   : > { %v1410_v42 = vpop.f32.mrb[0].mxu0  ;;  %v1496_v43 = vpop.f32.mrb[0].mxu1 }
 0x1b0   : > { %v1527_v46 = vmul.f32 %v1510_v35, %v1410_v42  ;;  %v1529_v47 = vmul.f32 %v1518_v36, %v1496_v43  ;;  %v1412_v48 = vpop.f32.mrb[1].mxu0  ;;  %v1498_v49 = vpop.f32.mrb[1].mxu1  ;;  %v1710_v43 = vsel %vm2830_vm6, %v2926_v28, 0.0 }
 0x1b1   : > { %v1528_v50 = vmul.f32 %v1514_v39, %v1412_v48  ;;  %v1530_v51 = vmul.f32 %v1522_v40, %v1498_v49  ;;  %v1414_v52 = vpop.f32.mrb[2].mxu0  ;;  %v1500_v53 = vpop.f32.mrb[2].mxu1  ;;  %v1711_v49 = vsel %vm2836_vm7, %v2926_v28, 0.0 }
 0x1b2   : > { %v2870_v54 = vclamps-f32 %v1527_v46, 1.0  ;;  %v2872_v55 = vclamps-f32 %v1529_v47, 1.0  ;;  %v1531_v56 = vmul.f32 %v1510_v35, %v1414_v52  ;;  %v1533_v57 = vmul.f32 %v1518_v36, %v1500_v53  ;;  %v1416_v58 = vpop.f32.mrb[3].mxu0  ;;  %v1502_v59 = vpop.f32.mrb[3].mxu1 }
 0x1b3   : > { %v2874_v60 = vclamps-f32 %v1528_v50, 1.0  ;;  %v2876_v61 = vclamps-f32 %v1530_v51, 1.0  ;;  %v1532_v62 = vmul.f32 %v1514_v39, %v1416_v58  ;;  %v1534_v63 = vmul.f32 %v1522_v40, %v1502_v59  ;;  %v2965_v46 = vpop.permute.xlu1 %1707 }
 0x1b4   : > { %v1551_v0 = vmul.f32 %v2870_v54, %v2870_v54  ;;  %v1553_v1 = vmul.f32 %v2872_v55, %v2872_v55  ;;  %v2882_v2 = vclamps-f32 %v1531_v56, 1.0  ;;  %v2884_v3 = vclamps-f32 %v1533_v57, 1.0 }
 0x1b5   : > { %v1552_v4 = vmul.f32 %v2874_v60, %v2874_v60  ;;  %v1554_v5 = vmul.f32 %v2876_v61, %v2876_v61  ;;  %v2890_v6 = vclamps-f32 %v1532_v62, 1.0  ;;  %v2892_v7 = vclamps-f32 %v1534_v63, 1.0 }
 0x1b6   : > { %v1559_v8 = vsub.f32 1.0, %v1551_v0  ;;  %v1561_v10 = vsub.f32 1.0, %v1553_v1  ;;  %v1555_v11 = vmul.f32 %v2882_v2, %v2882_v2  ;;  %v1557_v12 = vmul.f32 %v2884_v3, %v2884_v3 }
 0x1b7   : > { %v1560_v14 = vsub.f32 1.0, %v1552_v4  ;;  %v1562_v15 = vsub.f32 1.0, %v1554_v5  ;;  %v1556_v17 = vmul.f32 %v2890_v6, %v2890_v6  ;;  %v1558_v18 = vmul.f32 %v2892_v7, %v2892_v7 }
 0x1b8   : > { %v2922_v21 = vmax.f32 %v1559_v8, 0.0  ;;  %v2924_v24 = vmax.f32 %v1561_v10, 0.0  ;;  %v1563_v26 = vsub.f32 1.0, %v1555_v11  ;;  %v1565_v27 = vsub.f32 1.0, %v1557_v12 }
 0x1b9   : > { %v2937_v20 = vmax.f32 %v1560_v14, 0.0  ;;  %v2939_v30 = vmax.f32 %v1562_v15, 0.0  ;;  %v1564_v31 = vsub.f32 1.0, %v1556_v17  ;;  %v1566_v35 = vsub.f32 1.0, %v1558_v18 }
 0x1ba   : > { %2256 = vrsqrt.f32 %v2922_v21  ;;  %v2942_v36 = vmax.f32 %v1563_v26, 0.0  ;;  %v1693_v39 = vsel %vm2903_vm15, %v2840_v37, 1.0  ;;  %v1694_v40 = vsel %vm2918_vm0, %v2911_v19, 1.0 }
 0x1bb   : > { %2258 = vrsqrt.f32 %v2924_v24  ;;  %v2960_v42 = vmax.f32 %v1565_v27, 0.0  ;;  %v1695_v47 = vsel %vm2933_vm1, %v2911_v19, 1.0  ;;  %v2980_v48 = vmax.f32 %v1564_v31, 0.0 }
 0x1bc   : > { %2260 = vrsqrt.f32 %v2937_v20  ;;  %v2989_v32 = vmax.f32 %v1566_v35, 0.0  ;;  %v1696_v50 = vsel %vm2952_vm2, %v2911_v19, 1.0  ;;  %v1697_v51 = vsel %vm2972_vm3, %v2911_v19, 1.0 }
 0x1bd   : > { %2262 = vrsqrt.f32 %v2939_v30  ;;  %v1714_v52 = vsel %vm2918_vm0, %v2965_v46, 0.0  ;;  %v1715_v53 = vsel %vm2933_vm1, %v2965_v46, 0.0  ;;  %vm1577_vm4 = vcmp.eq.f32.partialorder %v2922_v21, inf }
 0x1be   : > { %2264 = vrsqrt.f32 %v2942_v36  ;;  %v1716_v56 = vsel %vm2952_vm2, %v2965_v46, 0.0  ;;  %v1717_v57 = vsel %vm2972_vm3, %v2965_v46, 0.0  ;;  %vm1579_vm5 = vcmp.eq.f32.partialorder %v2922_v21, 0.0 }
 0x1bf   : > { %2266 = vrsqrt.f32 %v2960_v42  ;;  %v1580_v58 = vand.u32 2147483648, %v2922_v21  ;;  %v1587_v59 = vand.u32 2147483648, %v2937_v20  ;;  %vm1591_vm11 = vcmp.eq.f32.partialorder %v2924_v24, inf }
 0x1c0   : > { %2268 = vrsqrt.f32 %v2980_v48  ;;  %v1594_v62 = vand.u32 2147483648, %v2924_v24  ;;  %v1601_v63 = vand.u32 2147483648, %v2939_v30  ;;  %v1718_v0 = vmul.f32 %v2870_v54, %v1690_v9 }
 0x1c1   : > { %2270 = vrsqrt.f32 %v2989_v32  ;;  %v1719_v1 = vmul.f32 %v2874_v60, %v1691_v44  ;;  %v1720_v4 = vmul.f32 %v2872_v55, %v1692_v45  ;;  %v1721_v8 = vmul.f32 %v2876_v61, %v1693_v39 }
 0x1c2   : > { %v1608_v9 = vand.u32 2147483648, %v2942_v36  ;;  %vm1612_vm10 = vcmp.eq.f32.partialorder %v2980_v48, inf  ;;  %v1615_v44 = vand.u32 2147483648, %v2980_v48  ;;  %vm1619_vm12 = vcmp.eq.f32.partialorder %v2960_v42, inf }
 0x1c3   : > { %vm1614_vm14 = vcmp.eq.f32.partialorder %v2980_v48, 0.0  ;;  %v1622_v55 = vand.u32 2147483648, %v2960_v42  ;;  %vm1626_vm13 = vcmp.eq.f32.partialorder %v2989_v32, inf  ;;  %v1629_v60 = vand.u32 2147483648, %v2989_v32 }
 0x1c4   : > { %v2257_v5 = vpop.eup %2256  ;;  %v1722_v14 = vmul.f32 %v2882_v2, %v1694_v40  ;;  %v1723_v15 = vmul.f32 %v2890_v6, %v1695_v47  ;;  %v1724_v31 = vmul.f32 %v2884_v3, %v1696_v50  ;;  %vm3205_vm9 = vcmp.eq.f32.partialorder %v2924_v24, 0.0 }
 0x1c5   : > { %v2259_v54 = vpop.eup %2258  ;;  %v1576_v10 = vmul.f32 %v2257_v5, %v2922_v21  ;;  %vm3208_vm6 = vcmp.eq.f32.partialorder %v2939_v30, 0.0  ;;  %vm3210_vm8 = vcmp.eq.f32.partialorder %v2942_v36, 0.0  ;;  %vm3211_vm7 = vcmp.eq.f32.partialorder %v2960_v42, 0.0 }
 0x1c6   : > { %v2261_v37 = vpop.eup %2260  ;;  %v1590_v45 = vmul.f32 %v2259_v54, %v2924_v24  ;;  %vm3212_vm15 = vcmp.eq.f32.partialorder %v2989_v32, 0.0 }
 0x1c7   : > { %v2263_v61 = vpop.eup %2262  ;;  %v1578_v11 = vsel %vm1577_vm4, %v2922_v21, %v1576_v10  ;;  %v1583_v12 = vmul.f32 %v2261_v37, %v2937_v20  ;;  %vm3204_vm4 = vcmp.eq.f32.partialorder %v2937_v20, inf }
 0x1c8   : > { %v2265_v17 = vpop.eup %2264  ;;  %v1581_v18 = vsel %vm1579_vm5, %v1580_v58, %v1578_v11  ;;  %v1592_v26 = vsel %vm1591_vm11, %v2924_v24, %v1590_v45  ;;  %v1597_v27 = vmul.f32 %v2263_v61, %v2939_v30  ;;  %vm3206_vm5 = vcmp.eq.f32.partialorder %v2937_v20, 0.0 }
 0x1c9   : > { %v2267_v35 = vpop.eup %2266  ;;  %v1585_v2 = vsel %vm3204_vm4, %v2937_v20, %v1583_v12  ;;  %v1595_v6 = vsel %vm3205_vm9, %v1594_v62, %v1592_v26  ;;  %v1726_v21 = vmul.f32 %v1710_v43, %v1581_v18  ;;  %v1604_v39 = vmul.f32 %v2265_v17, %v2942_v36 }
 0x1ca   : > { %v2269_v40 = vpop.eup %2268  ;;  %v1588_v3 = vsel %vm3206_vm5, %v1587_v59, %v1585_v2  ;;  %vm3207_vm11 = vcmp.eq.f32.partialorder %v2939_v30, inf  ;;  %v1728_v24 = vmul.f32 %v1712_v25, %v1595_v6  ;;  %v1618_v33 = vmul.f32 %v2267_v35, %v2960_v42 }
 0x1cb   : > { %v1599_v47 = vsel %vm3207_vm11, %v2939_v30, %v1597_v27  ;;  %v2271_v50 = vpop.eup %2270  ;;  %v1727_v20 = vmul.f32 %v1711_v49, %v1588_v3  ;;  %v1734_v58 = vsub.f32 %v1718_v0, %v1726_v21  ;;  %vm3209_vm9 = vcmp.eq.f32.partialorder %v2942_v36, inf }
 0x1cc   : > { %v1602_v43 = vsel %vm3208_vm6, %v1601_v63, %v1599_v47  ;;  %v1606_v59 = vsel %vm3209_vm9, %v2942_v36, %v1604_v39  ;;  %v1736_v25 = vsub.f32 %v1720_v4, %v1728_v24  ;;  %v1611_v62 = vmul.f32 %v2269_v40, %v2980_v48 }
 0x1cd   : > { %v1729_v38 = vmul.f32 %v1713_v41, %v1602_v43  ;;  %v1609_v30 = vsel %vm3210_vm8, %v1608_v9, %v1606_v59  ;;  %v1735_v34 = vsub.f32 %v1719_v1, %v1727_v20  ;;  %v1742_v63 = vmul.f32 64.0, %v1734_v58 }
 0x1ce   : > { %v1620_v49 = vsel %vm1619_vm12, %v2960_v42, %v1618_v33  ;;  %v1625_v0 = vmul.f32 %v2271_v50, %v2989_v32  ;;  %v1744_v54 = vmul.f32 64.0, %v1736_v25  ;;  %v1613_v13 = vsel %vm1612_vm10, %v2980_v48, %v1611_v62 }
 0x1cf   : > { %v1737_v5 = vsub.f32 %v1721_v8, %v1729_v38  ;;  %v1623_v28 = vsel %vm3211_vm7, %v1622_v55, %v1620_v49  ;;  %v1743_v36 = vmul.f32 64.0, %v1735_v34  ;;  %1750 = vst [vmem:[%s3118_s21] sm:$0xff] %v1742_v63  ;;  %v1616_v41 = vsel %vm1614_vm14, %v1615_v44, %v1613_v13 }
 0x1d0   : > { %v1627_v1 = vsel %vm1626_vm13, %v2989_v32, %v1625_v0  ;;  %v1730_v42 = vmul.f32 %v1714_v52, %v1609_v30  ;;  %1752 = vst [vmem:[%s3118_s21 + $0x10] sm:$0xff] %v1744_v54  ;;  %v1731_v48 = vmul.f32 %v1715_v53, %v1616_v41  ;;  %v1732_v16 = vmul.f32 %v1716_v56, %v1623_v28 }
 0x1d1   : > { %v1745_v4 = vmul.f32 64.0, %v1737_v5  ;;  %v1630_v8 = vsel %vm3212_vm15, %v1629_v60, %v1627_v1  ;;  %1751 = vst [vmem:[%s3118_s21 + $0x8] sm:$0xff] %v1743_v36  ;;  %v1725_v32 = vmul.f32 %v2892_v7, %v1697_v51 }
 0x1d2   : > { %v1733_v29 = vmul.f32 %v1717_v57, %v1630_v8  ;;  %v1738_v52 = vsub.f32 %v1722_v14, %v1730_v42  ;;  %v1739_v22 = vsub.f32 %v1723_v15, %v1731_v48  ;;  %v1740_v53 = vsub.f32 %v1724_v31, %v1732_v16  ;;  %1764 = sbr.rel (!%p2363_p5) target bundleno = 481 (0x1e1), region = 71 }
 0x1d3   : > { %1753 = vst [vmem:[%s3118_s21 + $0x18] sm:$0xff] %v1745_v4 }
 0x1d4   : > { %v1741_v9 = vsub.f32 %v1725_v32, %v1733_v29  ;;  %v1746_v10 = vmul.f32 64.0, %v1738_v52  ;;  %v1747_v56 = vmul.f32 64.0, %v1739_v22  ;;  %v1748_v44 = vmul.f32 64.0, %v1740_v53 }
 0x1d6   : > { %v1749_v37 = vmul.f32 64.0, %v1741_v9  ;;  %1754 = vst [vmem:[%s3118_s21 + $0x20] sm:$0xff] %v1746_v10  ;;  %1755 = vst [vmem:[%s3118_s21 + $0x28] sm:$0xff] %v1747_v56  ;;  %v1780_v7 = vld [vmem:[%s3118_s21] sm:$0xff] (%p2363_p5) }
 0x1d7   : > { %1756 = vst [vmem:[%s3118_s21 + $0x30] sm:$0xff] %v1748_v44  ;;  %v1784_v46 = vld [vmem:[%s3118_s21 + $0x10] sm:$0xff] (%p2363_p5)  ;;  %1781 = vst [vmem:[%s1767_s9] sm:$0xff] (%p2363_p5), %v1780_v7 }
 0x1d8   : > { %1757 = vst [vmem:[%s3118_s21 + $0x38] sm:$0xff] %v1749_v37  ;;  %v1782_v19 = vld [vmem:[%s3118_s21 + $0x8] sm:$0xff] (%p2363_p5)  ;;  %1785 = vst [vmem:[%s1767_s9 + $0x10] sm:$0xff] (%p2363_p5), %v1784_v46 }
 0x1d9   : > { %1783 = vst [vmem:[%s1767_s9 + $0x8] sm:$0xff] %v1782_v19 }
 0x1da   : > { %v1786_v23 = vld [vmem:[%s3118_s21 + $0x18] sm:$0xff] }
 0x1db   : > { %1787 = vst [vmem:[%s1767_s9 + $0x18] sm:$0xff] %v1786_v23 }
 0x1dd   : > { %v1788_v51 = vld [vmem:[%s3118_s21 + $0x20] sm:$0xff]  ;;  %v1790_v57 = vld [vmem:[%s3118_s21 + $0x28] sm:$0xff] }
 0x1de   : > { %1789 = vst [vmem:[%s1767_s9 + $0x40] sm:$0xff] %v1788_v51  ;;  %1791 = vst [vmem:[%s1767_s9 + $0x48] sm:$0xff] %v1790_v57  ;;  %v1792_v45 = vld [vmem:[%s3118_s21 + $0x30] sm:$0xff] }
 0x1df   : > { %v1794_v55 = vld [vmem:[%s3118_s21 + $0x38] sm:$0xff]  ;;  %1793 = vst [vmem:[%s1767_s9 + $0x50] sm:$0xff] %v1792_v45 }
 0x1e0   : > { %1795 = vst [vmem:[%s1767_s9 + $0x58] sm:$0xff] %v1794_v55 }
 0x1e1 PF: > { %p13_p11 = scmp.ge.s32.totalorder %s2351_s25, 4   ;;  %s3213_s21 = smov %s2290_s22 }
 0x1e2   : > { %s3214_s22 = smov %s2361_s28  ;;  %s3215_s23 = smov %s2351_s25 }
 0x1e3   :  { %15 = sbr.rel (!%p13_p11) target bundleno = 2 (0x2), region = 128 }

// kernel: elasticface_forward.2
= control target key start
LH: loop header
LB: loop body
LE: loop exit
PB: predicated region body
PF: predicated region fallthrough
CT: control target
= control target key end

     0   :  { %10 = vsyncpa [#allocation5], 0  ;;  %s5205_s0 = inlined_call_operand.vmem [shape: bf16[16,3072], index: 0, kind: input, shape index: {}]   ;;  %s5206_s1 = inlined_call_operand.hbm [shape: bf16[3072,512], index: 1, kind: input, shape index: {}]   ;;  %s5207_s2 = inlined_call_operand.hbm [shape: f32[1,512], index: 2, kind: input, shape index: {}]   ;;  %s5208_s3 = inlined_call_operand.vmem [shape: f32[16,512], index: 3, kind: output, shape index: {0}]   ;;  %s5209_s4 = inlined_call_operand.vmem [shape: bf16[16,512], index: 4, kind: output, shape index: {1}]  }
   0x1   :  { %12 = vsyncpa [#allocation5 + $0x1], 0 }
   0x2   :  { %13 = vsyncpa [#allocation7], 0  ;;  %s4625_s15 = smov 0   ;;  %s4627_s16 = smov 0  }
   0x3   :  { %s4629_s17 = smov 0   ;;  %s4631_s18 = smov 0  }
   0x4 LB: > { %s4644_s19 = sadd.s32 4294967295, %s4593_s18   ;;  %s4647_s20 = sadd.s32 1, %s4593_s18   ;;  %s4593_s18 = sphi %s4631_s18, %s5228_s18   ;;  %s4589_s17 = sphi %s4629_s17, %s5227_s17   ;;  %s4585_s16 = sphi %s4627_s16, %s5226_s16   ;;  %s4581_s15 = sphi %s4625_s15, %s5225_s15  }
   0x5   : > { %s23_s21 = ssub.s32 %s4593_s18, %s4647_s20  ;;  %s26_s22 = sadd.s32 1, %s4589_s17 }
   0x6   : > { %p24_p0 = scmp.eq.s32.totalorder %s23_s21, 0  ;;  %p33_p1 = scmp.ne.s32.totalorder %s4589_s17, %s4585_s16 }
   0x7   : > { %p34_p2 = scmp.eq.s32.totalorder %s4593_s18, 0  ;;  %p65_p3 = scmp.ne.s32.totalorder %s4585_s16, %s4581_s15 }
   0x8   : > { %s4657_s23 = scalar_select %p24_p0, %s4589_s17, %s26_s22  }
   0x9   : > { %p4659_p4 = por %p34_p2, %p33_p1  ;;  %p5210_p5 = scmp.eq.s32.totalorder %s4644_s19, 0 }
   0xa   : > { %p3389_p6 = scmp.ge.s32.totalorder %s4593_s18, 1  ;;  %p139_p7 = scmp.lt.s32.totalorder %s4593_s18, 3 }
   0xb   : > { %s5214_s24 = scalar_select %p4659_p4, 1, 0 }
   0xc   : > { %p4668_p8 = por %p5210_p5, %p65_p3  ;;  %p4673_p10 = pnand %p3389_p6, %p139_p7 }
   0xd   : > { %s4595_s27 = smov [#allocation6]   ;;  %s4499_s6 = scalar_lea.hbm %s5207_s2, 64 }
   0xe   : > { %s5215_s25 = scalar_select %p4668_p8, 1, 0 }
   0xf   : > { %s5216_s26 = scalar_select %p4673_p10, 1, 0 }
  0x10   : > { %s152_s28 = sshll.u32 %s4595_s27, 4  ;;  %p3859_p11 = pneg %p4673_p10  ;;  %s153_s28 = int_to_ptr.vmem [resolvable:$true] %s152_s28 }
  0x11   : > { %p4500_p13 = scmp.ne.s32.totalorder %s5207_s2, %s4499_s6  ;;  %p4506_p3 = scmp.lt.u32.totalorder %s4499_s6, %s5207_s2 }
  0x12   : > { %p4681_p12 = pnand %p3859_p11, %p5210_p5 }
  0x14   : > { %p4501_p0 = pneg %p4681_p12 }
  0x16   : > { %p4502_p1 = pnand %p4501_p0, %p4500_p13 }
  0x18   : > { %p4503_p2 = pneg %p4502_p1 }
  0x1a   : > { %p4508_p6 = pnand %p4506_p3, %p4503_p2 }
  0x1c   : > { %4511 = shalt.err (!%p4508_p6)
}
  0x1d   : > { %s4512_s11 = scalar_lea.vmem %s153_s28, 64  ;;  %p4520_p5 = scmp.lt.s32.totalorder %s153_s28, %s153_s28 }
  0x1e   : > { %p4513_p7 = scmp.ne.s32.totalorder %s153_s28, %s4512_s11  ;;  %p4521_p8 = scmp.lt.s32.totalorder %s4512_s11, %s4512_s11 }
  0x20   : > { %p4515_p11 = pnand %p4513_p7, %p4501_p0  ;;  %p4522_p10 = por %p4521_p8, %p4520_p5 }
  0x22   : > { %p4516_p9 = pneg %p4515_p11 }
  0x24   : > { %p4523_p4 = pnand %p4522_p10, %p4516_p9 }
  0x26   : > { %4526 = shalt.err (!%p4523_p4)
}
  0x27   : > { %3862 = dma.hbm_to_vmem [thread:$0]  (!%p4681_p12), %s5207_s2, 64, %s153_s28, [#allocation7]  }
  0x28   : > { %p3391_p13 = scmp.ge.s32.totalorder %s4593_s18, 2 }
  0x29   : > { %p5218_p1 = scmp.ne.s32.totalorder (!%p3391_p13), %s5214_s24, 0 }
  0x2a   : > { %159 = sbr.rel (%p3391_p13) target bundleno = 87 (0x57), region = 20 }
  0x31   : > { %162 = sbr.rel (!%p5218_p1) target bundleno = 60 (0x3c), region = 24  ;;  %s164_s14 = sand.u32 (%p5218_p1), 1, %s4589_s17  }
  0x32   : > { %s3801_s15 = smul.u32 (%p5218_p1), 48, %s4593_s18 }
  0x33   : > { %s3849_s21 = smul.u32 (%p5218_p1), 96, %s164_s14 }
  0x34   : > { %s169_s30 = scalar_lea.vmem (%p5218_p1), %s5205_s0, %s3801_s15 }
  0x35   : > { %v182_v0 = vld [vmem:[%s169_s30] sm:$0xff] (%p5218_p1)  ;;  %v184_v1 = vld [vmem:[%s169_s30 + $0x8] sm:$0xff] (%p5218_p1)  ;;  %v186_v2 = vld [vmem:[%s169_s30 + $0x10] sm:$0xff] (%p5218_p1)  ;;  %s166_s29 = scalar_lea.vmem (%p5218_p1), [#allocation3], %s3849_s21 }
  0x36   : > { %183 = vst [vmem:[%s166_s29] sm:$0xff] (%p5218_p1), %v182_v0  ;;  %185 = vst [vmem:[%s166_s29 + $0x8] sm:$0xff] (%p5218_p1), %v184_v1  ;;  %v188_v3 = vld [vmem:[%s169_s30 + $0x18] sm:$0xff] (%p5218_p1)  ;;  %v190_v4 = vld [vmem:[%s169_s30 + $0x20] sm:$0xff] (%p5218_p1) }
  0x37   : > { %187 = vst [vmem:[%s166_s29 + $0x10] sm:$0xff] (%p5218_p1), %v186_v2  ;;  %v192_v5 = vld [vmem:[%s169_s30 + $0x28] sm:$0xff] (%p5218_p1)  ;;  %189 = vst [vmem:[%s166_s29 + $0x18] sm:$0xff] (%p5218_p1), %v188_v3  ;;  %v194_v6 = vld [vmem:[%s169_s30 + $0x60] sm:$0xff] (%p5218_p1) }
  0x38   : > { %191 = vst [vmem:[%s166_s29 + $0x20] sm:$0xff] %v190_v4  ;;  %193 = vst [vmem:[%s166_s29 + $0x28] sm:$0xff] %v192_v5  ;;  %v196_v7 = vld [vmem:[%s169_s30 + $0x68] sm:$0xff]  ;;  %v198_v8 = vld [vmem:[%s169_s30 + $0x70] sm:$0xff] }
  0x39   : > { %195 = vst [vmem:[%s166_s29 + $0x30] sm:$0xff] %v194_v6  ;;  %197 = vst [vmem:[%s166_s29 + $0x38] sm:$0xff] %v196_v7  ;;  %v200_v9 = vld [vmem:[%s169_s30 + $0x78] sm:$0xff]  ;;  %v202_v10 = vld [vmem:[%s169_s30 + $0x80] sm:$0xff] }
  0x3a   : > { %199 = vst [vmem:[%s166_s29 + $0x40] sm:$0xff] %v198_v8  ;;  %v204_v11 = vld [vmem:[%s169_s30 + $0x88] sm:$0xff]  ;;  %201 = vst [vmem:[%s166_s29 + $0x48] sm:$0xff] %v200_v9 }
  0x3b   : > { %203 = vst [vmem:[%s166_s29 + $0x50] sm:$0xff] %v202_v10  ;;  %205 = vst [vmem:[%s166_s29 + $0x58] sm:$0xff] %v204_v11 }
  0x3c PF: > { %s212_s28 = sand.u32 1, %s4589_s17   ;;  %s3808_s5 = smul.u32 49152, %s4593_s18 }
  0x3d   : > { %s3850_s6 = smul.u32 3072, %s212_s28  ;;  %s4718_s12 = scalar_lea.sflag [#allocation5], %s212_s28 }
  0x3e   : > { %s4714_s9 = scalar_lea.hbm %s5206_s1, %s3808_s5  ;;  %p5219_p5 = scmp.ne.s32.totalorder %s5214_s24, 0 }
  0x3f   : > { %s216_s10 = scalar_lea.vmem [#allocation4], %s3850_s6  ;;  %s4527_s13 = scalar_lea.hbm %s4714_s9, 49152 }
  0x40   : > { %s224_s11 = sshll.u32 %s216_s10, 4  ;;  %p4528_p4 = scmp.ne.s32.totalorder %s4714_s9, %s4527_s13  ;;  %s4716_s11 = int_to_ptr.vmem [resolvable:$true] %s224_s11 }
  0x41   : > { %s4531_s15 = scalar_lea.hbm %s5206_s1, 98304  ;;  %p4532_p10 = scmp.lt.u32.totalorder %s4714_s9, %s5206_s1 }
  0x42   : > { %p4529_p8 = pnand %p4528_p4, %p5219_p5  ;;  %p4533_p12 = scmp.lt.u32.totalorder %s4531_s15, %s4527_s13 }
  0x43   : > { %p4535_p2 = scmp.lt.u32.totalorder %s4527_s13, %s4714_s9 }
  0x44   : > { %p4530_p9 = pneg %p4529_p8  ;;  %p4534_p0 = por %p4533_p12, %p4532_p10 }
  0x46   : > { %p4536_p3 = por %p4535_p2, %p4534_p0 }
  0x48   : > { %p4537_p6 = pnand %p4536_p3, %p4530_p9 }
  0x4a   : > { %4540 = shalt.err (!%p4537_p6)
}
  0x4b   : > { %s4541_s27 = scalar_lea.vmem %s4716_s11, 49152  ;;  %s4596_s30 = smov [#allocation4]  }
  0x4c   : > { %p4542_p7 = scmp.ne.s32.totalorder %s4716_s11, %s4541_s27  ;;  %s4545_s29 = sshll.u32 %s4596_s30, 4  ;;  %s4546_s29 = int_to_ptr.vmem [resolvable:$false] %s4545_s29 }
  0x4d   : > { %s4547_s28 = scalar_lea.vmem %s4546_s29, 98304  ;;  %p4548_p1 = scmp.lt.s32.totalorder %s4716_s11, %s4546_s29 }
  0x4e   : > { %p4543_p11 = pnand %p4542_p7, %p5219_p5  ;;  %p4549_p4 = scmp.lt.s32.totalorder %s4547_s28, %s4541_s27 }
  0x50   : > { %p4544_p13 = pneg %p4543_p11  ;;  %p4550_p8 = por %p4549_p4, %p4548_p1 }
  0x52   : > { %p4551_p10 = pnand %p4550_p8, %p4544_p13 }
  0x54   : > { %4554 = shalt.err (!%p4551_p10)
}
  0x55   : > { %s4597_s5 = smov 256   ;;  %s4598_s6 = smov 16  }
  0x56   : > { %3855 = dma.hbm_to_vmem [thread:$0]  (%p5219_p5), %s4714_s9, 49152, %s4716_s11, %s4718_s12, %s4597_s5, %s4597_s5, %s4598_s6  }
  0x57 PF: > { %p5220_p9 = scmp.ne.s32.totalorder %s5216_s26, 0 }
  0x58   : > { %s239_s7 = sand.u32 (!%p5220_p9), 1, %s4585_s16   ;;  %p5221_p12 = scmp.ne.s32.totalorder (!%p5220_p9), %s5215_s25, 0 }
  0x59   : > { %236 = sbr.rel (%p5220_p9) target bundleno = 892 (0x37c), region = 51  ;;  %s246_s18 = scalar_lea.sflag (!%p5220_p9), [#allocation5], %s239_s7 }
  0x5a   : > { %s3851_s8 = smul.u32 (!%p5220_p9), 96, %s239_s7 }
  0x5b   : > { %s3852_s10 = smul.u32 (!%p5220_p9), 3072, %s239_s7 }
  0x5c   : > { %s4745_s13 = scalar_lea.vmem (!%p5220_p9), [#allocation3], %s3851_s8 }
  0x5d   : > { %s4747_s14 = scalar_lea.vmem (!%p5220_p9), [#allocation4], %s3852_s10 }
  0x60   : > { %4572 = dma.done.wait (%p5221_p12), %s246_s18, 49152  }
  0x61   : > { %4574 = vsyncadd (%p5221_p12), %s246_s18, 4294918144  ;;  %p5222_p5 = scmp.eq.s32.totalorder %s4644_s19, 0 }
  0x63   : > { %4576 = dma.done.wait (%p5222_p5), [#allocation7], 64   ;;  %p5223_p0 = pmov %p5222_p5 }
  0x64   : > { %p5224_p2 = scmp.ne.s32.totalorder %s4644_s19, 0 }
  0x65   : > { %4578 = vsyncadd (%p5223_p0), [#allocation7], 4294967232  ;;  %v4599_v12 = vmov (!%p5224_p2), 0.0  }
  0x66   : > { %282 = sbr.rel (%p5224_p2) target bundleno = 109 (0x6d), region = 67  ;;  %283 = vst [vmem:[#allocation2] sm:$0xff] (!%p5224_p2), %v4599_v12  ;;  %284 = vst [vmem:[#allocation2 + $0x8] sm:$0xff] (!%p5224_p2), %v4599_v12 }
  0x67   : > { %285 = vst [vmem:[#allocation2 + $0x10] sm:$0xff] (!%p5224_p2), %v4599_v12  ;;  %286 = vst [vmem:[#allocation2 + $0x18] sm:$0xff] (!%p5224_p2), %v4599_v12 }
  0x68   : > { %287 = vst [vmem:[#allocation2 + $0x20] sm:$0xff] (!%p5224_p2), %v4599_v12  ;;  %288 = vst [vmem:[#allocation2 + $0x28] sm:$0xff] (!%p5224_p2), %v4599_v12 }
  0x69   : > { %289 = vst [vmem:[#allocation2 + $0x30] sm:$0xff] (!%p5224_p2), %v4599_v12  ;;  %290 = vst [vmem:[#allocation2 + $0x38] sm:$0xff] (!%p5224_p2), %v4599_v12 }
  0x6d PF: > { %v3901_v13 = vld [vmem:[%s4747_s14 + $0x4] ss:$16 sps:$4 sm:$0xff]   ;;  %v3903_v14 = vld [vmem:[%s4747_s14 + $0xc] ss:$16 sps:$4 sm:$0xff]   ;;  %v3905_v15 = vld [vmem:[%s4747_s14] ss:$16 sps:$4 sm:$0xff]  }
  0x6e   : > { %2675 = vmatprep.subr.bf16.mxu0 %v3901_v13  ;;  %v3906_v16 = vld [vmem:[%s4747_s14 + $0x8] ss:$16 sps:$4 sm:$0xff]   ;;  %2933 = vmatprep.subr.bf16.mxu1 %v3903_v14  ;;  %v3907_v17 = vld [vmem:[%s4747_s14 + $0x24] ss:$16 sps:$4 sm:$0xff]   ;;  %v3909_v18 = vld [vmem:[%s4747_s14 + $0x2c] ss:$16 sps:$4 sm:$0xff]  }
  0x6f   : > { %2676 = vmatpush1.bf16.msra.mxu0 %v3905_v15  ;;  %2934 = vmatpush1.bf16.msra.mxu1 %v3906_v16  ;;  %v3911_v19 = vld [vmem:[%s4747_s14 + $0x20] ss:$16 sps:$4 sm:$0xff]   ;;  %v3912_v20 = vld [vmem:[%s4747_s14 + $0x28] ss:$16 sps:$4 sm:$0xff]   ;;  %v3913_v21 = vld [vmem:[%s4747_s14 + $0x44] ss:$16 sps:$4 sm:$0xff]  }
  0x70   : > { %2677 = vmatprep.subr.bf16.mxu0 %v3907_v17  ;;  %2935 = vmatprep.subr.bf16.mxu1 %v3909_v18  ;;  %v3915_v22 = vld [vmem:[%s4747_s14 + $0x4c] ss:$16 sps:$4 sm:$0xff]   ;;  %v3917_v23 = vld [vmem:[%s4747_s14 + $0x40] ss:$16 sps:$4 sm:$0xff]   ;;  %v3918_v24 = vld [vmem:[%s4747_s14 + $0x48] ss:$16 sps:$4 sm:$0xff]  }
  0x71   : > { %v3919_v25 = vld [vmem:[%s4747_s14 + $0x64] ss:$16 sps:$4 sm:$0xff]   ;;  %v3921_v26 = vld [vmem:[%s4747_s14 + $0x6c] ss:$16 sps:$4 sm:$0xff]   ;;  %v3923_v27 = vld [vmem:[%s4747_s14 + $0x60] ss:$16 sps:$4 sm:$0xff]  }
  0x72   : > { %v3924_v28 = vld [vmem:[%s4747_s14 + $0x68] ss:$16 sps:$4 sm:$0xff]   ;;  %v3925_v29 = vld [vmem:[%s4747_s14 + $0x84] ss:$16 sps:$4 sm:$0xff]   ;;  %v3927_v30 = vld [vmem:[%s4747_s14 + $0x8c] ss:$16 sps:$4 sm:$0xff]  }
  0x73   : > { %2678 = vmatpush1.bf16.msra.mxu0 %v3911_v19  ;;  %2936 = vmatpush1.bf16.msra.mxu1 %v3912_v20  ;;  %v3929_v31 = vld [vmem:[%s4747_s14 + $0x80] ss:$16 sps:$4 sm:$0xff]   ;;  %v3930_v32 = vld [vmem:[%s4747_s14 + $0x88] ss:$16 sps:$4 sm:$0xff]   ;;  %v3931_v33 = vld [vmem:[%s4747_s14 + $0xa4] ss:$16 sps:$4 sm:$0xff]  }
  0x74   : > { %2679 = vmatprep.subr.bf16.mxu0 %v3913_v21  ;;  %2937 = vmatprep.subr.bf16.mxu1 %v3915_v22  ;;  %v3933_v34 = vld [vmem:[%s4747_s14 + $0xac] ss:$16 sps:$4 sm:$0xff]   ;;  %v3935_v35 = vld [vmem:[%s4747_s14 + $0xa0] ss:$16 sps:$4 sm:$0xff]   ;;  %v3936_v36 = vld [vmem:[%s4747_s14 + $0xa8] ss:$16 sps:$4 sm:$0xff]  }
  0x75   : > { %v3937_v37 = vld [vmem:[%s4747_s14 + $0xc4] ss:$16 sps:$4 sm:$0xff]   ;;  %v3939_v38 = vld [vmem:[%s4747_s14 + $0xcc] ss:$16 sps:$4 sm:$0xff]   ;;  %v3941_v39 = vld [vmem:[%s4747_s14 + $0xc0] ss:$16 sps:$4 sm:$0xff]  }
  0x76   : > { %v3942_v40 = vld [vmem:[%s4747_s14 + $0xc8] ss:$16 sps:$4 sm:$0xff]   ;;  %v3943_v41 = vld [vmem:[%s4747_s14 + $0xe4] ss:$16 sps:$4 sm:$0xff]   ;;  %v3945_v42 = vld [vmem:[%s4747_s14 + $0xec] ss:$16 sps:$4 sm:$0xff]  }
  0x77   : > { %2680 = vmatpush1.bf16.msra.mxu0 %v3917_v23  ;;  %2938 = vmatpush1.bf16.msra.mxu1 %v3918_v24  ;;  %v3947_v43 = vld [vmem:[%s4747_s14 + $0xe0] ss:$16 sps:$4 sm:$0xff]   ;;  %v3948_v44 = vld [vmem:[%s4747_s14 + $0xe8] ss:$16 sps:$4 sm:$0xff]   ;;  %v3949_v45 = vld [vmem:[%s4747_s14 + $0x104] ss:$16 sps:$4 sm:$0xff]  }
  0x78   : > { %2681 = vmatprep.subr.bf16.mxu0 %v3919_v25  ;;  %2939 = vmatprep.subr.bf16.mxu1 %v3921_v26  ;;  %v3951_v46 = vld [vmem:[%s4747_s14 + $0x10c] ss:$16 sps:$4 sm:$0xff]   ;;  %v3953_v47 = vld [vmem:[%s4747_s14 + $0x100] ss:$16 sps:$4 sm:$0xff]   ;;  %v3954_v48 = vld [vmem:[%s4747_s14 + $0x108] ss:$16 sps:$4 sm:$0xff]  }
  0x79   : > { %v3955_v49 = vld [vmem:[%s4747_s14 + $0x124] ss:$16 sps:$4 sm:$0xff]   ;;  %v3957_v50 = vld [vmem:[%s4747_s14 + $0x12c] ss:$16 sps:$4 sm:$0xff]   ;;  %v3959_v51 = vld [vmem:[%s4747_s14 + $0x120] ss:$16 sps:$4 sm:$0xff]  }
  0x7a   : > { %v3960_v52 = vld [vmem:[%s4747_s14 + $0x128] ss:$16 sps:$4 sm:$0xff]   ;;  %v3961_v53 = vld [vmem:[%s4747_s14 + $0x144] ss:$16 sps:$4 sm:$0xff]   ;;  %v3963_v54 = vld [vmem:[%s4747_s14 + $0x14c] ss:$16 sps:$4 sm:$0xff]  }
  0x7b   : > { %2682 = vmatpush1.bf16.msra.mxu0 %v3923_v27  ;;  %2940 = vmatpush1.bf16.msra.mxu1 %v3924_v28  ;;  %v3965_v55 = vld [vmem:[%s4747_s14 + $0x140] ss:$16 sps:$4 sm:$0xff]   ;;  %v3966_v56 = vld [vmem:[%s4747_s14 + $0x148] ss:$16 sps:$4 sm:$0xff]   ;;  %v3967_v57 = vld [vmem:[%s4747_s14 + $0x164] ss:$16 sps:$4 sm:$0xff]  }
  0x7c   : > { %2683 = vmatprep.subr.bf16.mxu0 %v3925_v29  ;;  %2941 = vmatprep.subr.bf16.mxu1 %v3927_v30  ;;  %v3969_v58 = vld [vmem:[%s4747_s14 + $0x16c] ss:$16 sps:$4 sm:$0xff]   ;;  %v3971_v59 = vld [vmem:[%s4747_s14 + $0x160] ss:$16 sps:$4 sm:$0xff]   ;;  %v3972_v60 = vld [vmem:[%s4747_s14 + $0x168] ss:$16 sps:$4 sm:$0xff]  }
  0x7d   : > { %v3999_v61 = vld [vmem:[%s4745_s13 + $0x4] ss:$48 sps:$4 sm:$0xff]   ;;  %v3975_v63 = vld [vmem:[%s4747_s14 + $0x18c] ss:$16 sps:$4 sm:$0xff]   ;;  %v3977_v0 = vld [vmem:[%s4747_s14 + $0x180] ss:$16 sps:$4 sm:$0xff]  }
  0x7e   : > { %v3973_v62 = vld [vmem:[%s4747_s14 + $0x184] ss:$16 sps:$4 sm:$0xff]   ;;  %2707 = vmatprep.mubr.bf16.mxu0 %v3999_v61  ;;  %2965 = vmatprep.mubr.bf16.mxu1 %v3999_v61  ;;  %v3978_v1 = vld [vmem:[%s4747_s14 + $0x188] ss:$16 sps:$4 sm:$0xff]   ;;  %v3981_v3 = vld [vmem:[%s4747_s14 + $0x1ac] ss:$16 sps:$4 sm:$0xff]  }
  0x7f   : > { %2684 = vmatpush1.bf16.msra.mxu0 %v3929_v31  ;;  %2942 = vmatpush1.bf16.msra.mxu1 %v3930_v32  ;;  %v3979_v2 = vld [vmem:[%s4747_s14 + $0x1a4] ss:$16 sps:$4 sm:$0xff]   ;;  %v3983_v4 = vld [vmem:[%s4747_s14 + $0x1a0] ss:$16 sps:$4 sm:$0xff]   ;;  %v3984_v5 = vld [vmem:[%s4747_s14 + $0x1a8] ss:$16 sps:$4 sm:$0xff]  }
  0x80   : > { %2685 = vmatprep.subr.bf16.mxu0 %v3931_v33  ;;  %2943 = vmatprep.subr.bf16.mxu1 %v3933_v34  ;;  %v3985_v6 = vld [vmem:[%s4747_s14 + $0x1c4] ss:$16 sps:$4 sm:$0xff]   ;;  %v3987_v7 = vld [vmem:[%s4747_s14 + $0x1cc] ss:$16 sps:$4 sm:$0xff]   ;;  %v3989_v8 = vld [vmem:[%s4747_s14 + $0x1c0] ss:$16 sps:$4 sm:$0xff]  }
  0x81   : > { %v3990_v9 = vld [vmem:[%s4747_s14 + $0x1c8] ss:$16 sps:$4 sm:$0xff]   ;;  %v3991_v10 = vld [vmem:[%s4747_s14 + $0x1e4] ss:$16 sps:$4 sm:$0xff]   ;;  %v3993_v11 = vld [vmem:[%s4747_s14 + $0x1ec] ss:$16 sps:$4 sm:$0xff]  }
  0x82   : > { %v3995_v12 = vld [vmem:[%s4747_s14 + $0x1e0] ss:$16 sps:$4 sm:$0xff]   ;;  %v3996_v13 = vld [vmem:[%s4747_s14 + $0x1e8] ss:$16 sps:$4 sm:$0xff]   ;;  %v4002_v14 = vld [vmem:[%s4747_s14 + $0x204] ss:$16 sps:$4 sm:$0xff]  }
  0x83   : > { %2686 = vmatpush1.bf16.msra.mxu0 %v3935_v35  ;;  %2944 = vmatpush1.bf16.msra.mxu1 %v3936_v36  ;;  %v4005_v15 = vld [vmem:[%s4747_s14 + $0x20c] ss:$16 sps:$4 sm:$0xff]   ;;  %v3997_v16 = vld [vmem:[%s4745_s13] ss:$48 sps:$4 sm:$0xff]   ;;  %v4003_v18 = vld [vmem:[%s4747_s14 + $0x208] ss:$16 sps:$4 sm:$0xff]  }
  0x84   : > { %2687 = vmatprep.subr.bf16.mxu0 %v3937_v37  ;;  %2945 = vmatprep.subr.bf16.mxu1 %v3939_v38  ;;  %v4000_v17 = vld [vmem:[%s4747_s14 + $0x200] ss:$16 sps:$4 sm:$0xff]   ;;  %v4008_v19 = vld [vmem:[%s4747_s14 + $0x224] ss:$16 sps:$4 sm:$0xff]   ;;  %v4011_v20 = vld [vmem:[%s4747_s14 + $0x22c] ss:$16 sps:$4 sm:$0xff]  }
  0x85   : > { %v4006_v21 = vld [vmem:[%s4747_s14 + $0x220] ss:$16 sps:$4 sm:$0xff]   ;;  %v4009_v22 = vld [vmem:[%s4747_s14 + $0x228] ss:$16 sps:$4 sm:$0xff]   ;;  %v4014_v23 = vld [vmem:[%s4747_s14 + $0x244] ss:$16 sps:$4 sm:$0xff]  }
  0x86   : > { %v4017_v24 = vld [vmem:[%s4747_s14 + $0x24c] ss:$16 sps:$4 sm:$0xff]   ;;  %v4012_v25 = vld [vmem:[%s4747_s14 + $0x240] ss:$16 sps:$4 sm:$0xff]   ;;  %v4015_v26 = vld [vmem:[%s4747_s14 + $0x248] ss:$16 sps:$4 sm:$0xff]  }
  0x87   : > { %2688 = vmatpush1.bf16.msra.mxu0 %v3941_v39  ;;  %2946 = vmatpush1.bf16.msra.mxu1 %v3942_v40  ;;  %v4020_v27 = vld [vmem:[%s4747_s14 + $0x264] ss:$16 sps:$4 sm:$0xff]   ;;  %v4023_v28 = vld [vmem:[%s4747_s14 + $0x26c] ss:$16 sps:$4 sm:$0xff]   ;;  %v4018_v29 = vld [vmem:[%s4747_s14 + $0x260] ss:$16 sps:$4 sm:$0xff]  }
  0x88   : > { %2689 = vmatprep.subr.bf16.mxu0 %v3943_v41  ;;  %2947 = vmatprep.subr.bf16.mxu1 %v3945_v42  ;;  %v4021_v30 = vld [vmem:[%s4747_s14 + $0x268] ss:$16 sps:$4 sm:$0xff]   ;;  %v4026_v31 = vld [vmem:[%s4747_s14 + $0x284] ss:$16 sps:$4 sm:$0xff]   ;;  %v4029_v32 = vld [vmem:[%s4747_s14 + $0x28c] ss:$16 sps:$4 sm:$0xff]  }
  0x89   : > { %v4024_v33 = vld [vmem:[%s4747_s14 + $0x280] ss:$16 sps:$4 sm:$0xff]   ;;  %v4027_v34 = vld [vmem:[%s4747_s14 + $0x288] ss:$16 sps:$4 sm:$0xff]   ;;  %v4032_v35 = vld [vmem:[%s4747_s14 + $0x2a4] ss:$16 sps:$4 sm:$0xff]  }
  0x8a   : > { %v4035_v36 = vld [vmem:[%s4747_s14 + $0x2ac] ss:$16 sps:$4 sm:$0xff]   ;;  %v4030_v37 = vld [vmem:[%s4747_s14 + $0x2a0] ss:$16 sps:$4 sm:$0xff]   ;;  %v4033_v38 = vld [vmem:[%s4747_s14 + $0x2a8] ss:$16 sps:$4 sm:$0xff]  }
  0x8b   : > { %2690 = vmatpush1.bf16.msra.mxu0 %v3947_v43  ;;  %2948 = vmatpush1.bf16.msra.mxu1 %v3948_v44  ;;  %v4038_v39 = vld [vmem:[%s4747_s14 + $0x2c4] ss:$16 sps:$4 sm:$0xff]   ;;  %v4041_v40 = vld [vmem:[%s4747_s14 + $0x2cc] ss:$16 sps:$4 sm:$0xff]   ;;  %v4036_v41 = vld [vmem:[%s4747_s14 + $0x2c0] ss:$16 sps:$4 sm:$0xff]  }
  0x8c   : > { %2691 = vmatprep.subr.bf16.mxu0 %v3949_v45  ;;  %2949 = vmatprep.subr.bf16.mxu1 %v3951_v46  ;;  %v4039_v42 = vld [vmem:[%s4747_s14 + $0x2c8] ss:$16 sps:$4 sm:$0xff]   ;;  %v4098_v43 = vld [vmem:[%s4745_s13 + $0xc] ss:$48 sps:$4 sm:$0xff]   ;;  %v4044_v44 = vld [vmem:[%s4747_s14 + $0x2e4] ss:$16 sps:$4 sm:$0xff]  }
  0x8d   : > { %v4047_v45 = vld [vmem:[%s4747_s14 + $0x2ec] ss:$16 sps:$4 sm:$0xff]   ;;  %v4042_v46 = vld [vmem:[%s4747_s14 + $0x2e0] ss:$16 sps:$4 sm:$0xff]   ;;  %p3794_p3 = scmp.ne.s32.totalorder %s4644_s19, 1 }
  0x8e   : > { %v4071_v61 = vld [vmem:[%s4747_s14 + $0x36c] ss:$16 sps:$4 sm:$0xff]  }
  0x8f   : > { %2692 = vmatpush1.bf16.msra.mxu0 %v3953_v47  ;;  %2950 = vmatpush1.bf16.msra.mxu1 %v3954_v48  ;;  %v4045_v47 = vld [vmem:[%s4747_s14 + $0x2e8] ss:$16 sps:$4 sm:$0xff]   ;;  %v4050_v48 = vld [vmem:[%s4747_s14 + $0x304] ss:$16 sps:$4 sm:$0xff]  }
  0x90   : > { %2693 = vmatprep.subr.bf16.mxu0 %v3955_v49  ;;  %2951 = vmatprep.subr.bf16.mxu1 %v3957_v50  ;;  %v4053_v49 = vld [vmem:[%s4747_s14 + $0x30c] ss:$16 sps:$4 sm:$0xff]   ;;  %v4048_v50 = vld [vmem:[%s4747_s14 + $0x300] ss:$16 sps:$4 sm:$0xff]  }
  0x93   : > { %2694 = vmatpush1.bf16.msra.mxu0 %v3959_v51  ;;  %2952 = vmatpush1.bf16.msra.mxu1 %v3960_v52  ;;  %v4051_v51 = vld [vmem:[%s4747_s14 + $0x308] ss:$16 sps:$4 sm:$0xff]   ;;  %v4056_v52 = vld [vmem:[%s4747_s14 + $0x324] ss:$16 sps:$4 sm:$0xff]  }
  0x94   : > { %2695 = vmatprep.subr.bf16.mxu0 %v3961_v53  ;;  %2953 = vmatprep.subr.bf16.mxu1 %v3963_v54  ;;  %v4059_v53 = vld [vmem:[%s4747_s14 + $0x32c] ss:$16 sps:$4 sm:$0xff]   ;;  %v4054_v54 = vld [vmem:[%s4747_s14 + $0x320] ss:$16 sps:$4 sm:$0xff]  }
  0x97   : > { %2696 = vmatpush1.bf16.msra.mxu0 %v3965_v55  ;;  %2954 = vmatpush1.bf16.msra.mxu1 %v3966_v56  ;;  %v4057_v55 = vld [vmem:[%s4747_s14 + $0x328] ss:$16 sps:$4 sm:$0xff]   ;;  %v4062_v56 = vld [vmem:[%s4747_s14 + $0x344] ss:$16 sps:$4 sm:$0xff]  }
  0x98   : > { %2697 = vmatprep.subr.bf16.mxu0 %v3967_v57  ;;  %2955 = vmatprep.subr.bf16.mxu1 %v3969_v58  ;;  %v4065_v57 = vld [vmem:[%s4747_s14 + $0x34c] ss:$16 sps:$4 sm:$0xff]   ;;  %v4060_v58 = vld [vmem:[%s4747_s14 + $0x340] ss:$16 sps:$4 sm:$0xff]  }
  0x9b   : > { %2698 = vmatpush1.bf16.msra.mxu0 %v3971_v59  ;;  %2956 = vmatpush1.bf16.msra.mxu1 %v3972_v60  ;;  %v4063_v59 = vld [vmem:[%s4747_s14 + $0x348] ss:$16 sps:$4 sm:$0xff]   ;;  %v4068_v60 = vld [vmem:[%s4747_s14 + $0x364] ss:$16 sps:$4 sm:$0xff]  }
  0x9c   : > { %2699 = vmatprep.subr.bf16.mxu0 %v3973_v62  ;;  %2957 = vmatprep.subr.bf16.mxu1 %v3975_v63  ;;  %v4066_v62 = vld [vmem:[%s4747_s14 + $0x360] ss:$16 sps:$4 sm:$0xff]   ;;  %v4069_v63 = vld [vmem:[%s4747_s14 + $0x368] ss:$16 sps:$4 sm:$0xff]  }
  0x9f   : > { %2700 = vmatpush1.bf16.msra.mxu0 %v3977_v0  ;;  %2958 = vmatpush1.bf16.msra.mxu1 %v3978_v1  ;;  %v4074_v0 = vld [vmem:[%s4747_s14 + $0x384] ss:$16 sps:$4 sm:$0xff]   ;;  %v4077_v1 = vld [vmem:[%s4747_s14 + $0x38c] ss:$16 sps:$4 sm:$0xff]  }
  0xa0   : > { %2701 = vmatprep.subr.bf16.mxu0 %v3979_v2  ;;  %2959 = vmatprep.subr.bf16.mxu1 %v3981_v3  ;;  %v4072_v2 = vld [vmem:[%s4747_s14 + $0x380] ss:$16 sps:$4 sm:$0xff]   ;;  %v4075_v3 = vld [vmem:[%s4747_s14 + $0x388] ss:$16 sps:$4 sm:$0xff]  }
  0xa3   : > { %2702 = vmatpush1.bf16.msra.mxu0 %v3983_v4  ;;  %2960 = vmatpush1.bf16.msra.mxu1 %v3984_v5  ;;  %v4080_v4 = vld [vmem:[%s4747_s14 + $0x3a4] ss:$16 sps:$4 sm:$0xff]   ;;  %v4083_v5 = vld [vmem:[%s4747_s14 + $0x3ac] ss:$16 sps:$4 sm:$0xff]  }
  0xa4   : > { %2703 = vmatprep.subr.bf16.mxu0 %v3985_v6  ;;  %2961 = vmatprep.subr.bf16.mxu1 %v3987_v7  ;;  %v4078_v6 = vld [vmem:[%s4747_s14 + $0x3a0] ss:$16 sps:$4 sm:$0xff]   ;;  %v4081_v7 = vld [vmem:[%s4747_s14 + $0x3a8] ss:$16 sps:$4 sm:$0xff]  }
  0xa7   : > { %2704 = vmatpush1.bf16.msra.mxu0 %v3989_v8  ;;  %2962 = vmatpush1.bf16.msra.mxu1 %v3990_v9  ;;  %v4086_v8 = vld [vmem:[%s4747_s14 + $0x3c4] ss:$16 sps:$4 sm:$0xff]   ;;  %v4089_v9 = vld [vmem:[%s4747_s14 + $0x3cc] ss:$16 sps:$4 sm:$0xff]  }
  0xa8   : > { %2705 = vmatprep.subr.bf16.mxu0 %v3991_v10  ;;  %2963 = vmatprep.subr.bf16.mxu1 %v3993_v11  ;;  %v4084_v10 = vld [vmem:[%s4747_s14 + $0x3c0] ss:$16 sps:$4 sm:$0xff]   ;;  %v4087_v11 = vld [vmem:[%s4747_s14 + $0x3c8] ss:$16 sps:$4 sm:$0xff]  }
  0xab   : > { %2706 = vmatpush1.bf16.msra.mxu0 %v3995_v12  ;;  %2964 = vmatpush1.bf16.msra.mxu1 %v3996_v13  ;;  %v4092_v12 = vld [vmem:[%s4747_s14 + $0x3e4] ss:$16 sps:$4 sm:$0xff]   ;;  %v4095_v13 = vld [vmem:[%s4747_s14 + $0x3ec] ss:$16 sps:$4 sm:$0xff]  }
  0xac   : > { %2718 = vmatprep.subr.bf16.mxu0 %v4002_v14  ;;  %2976 = vmatprep.subr.bf16.mxu1 %v4005_v15  ;;  %v4090_v14 = vld [vmem:[%s4747_s14 + $0x3e0] ss:$16 sps:$4 sm:$0xff]   ;;  %v4093_v15 = vld [vmem:[%s4747_s14 + $0x3e8] ss:$16 sps:$4 sm:$0xff]  }
  0xae   : > { %2708 = vmatmul.mubr.bf16.vlgmr.msra.gmra.mrb[0].mxu0 %v3997_v16  ;;  %2966 = vmatmul.mubr.bf16.vlgmr.msra.gmra.mrb[0].mxu1 %v3997_v16  ;;  %v4101_v16 = vld [vmem:[%s4747_s14 + $0x404] ss:$16 sps:$4 sm:$0xff]  }
  0xaf   : > { %2719 = vmatpush1.bf16.msra.mxu0 %v4000_v17  ;;  %2977 = vmatpush1.bf16.msra.mxu1 %v4003_v18  ;;  %v4104_v17 = vld [vmem:[%s4747_s14 + $0x40c] ss:$16 sps:$4 sm:$0xff]   ;;  %v4096_v18 = vld [vmem:[%s4745_s13 + $0x8] ss:$48 sps:$4 sm:$0xff]  }
  0xb0   : > { %2720 = vmatprep.subr.bf16.mxu0 %v4008_v19  ;;  %2978 = vmatprep.subr.bf16.mxu1 %v4011_v20  ;;  %v4099_v19 = vld [vmem:[%s4747_s14 + $0x400] ss:$16 sps:$4 sm:$0xff]   ;;  %v4102_v20 = vld [vmem:[%s4747_s14 + $0x408] ss:$16 sps:$4 sm:$0xff]  }
  0xb1   : > { %2750 = vmatprep.mubr.bf16.mxu0 %v4098_v43  ;;  %3008 = vmatprep.mubr.bf16.mxu1 %v4098_v43  ;;  %v4140_v43 = vld [vmem:[%s4747_s14 + $0x4cc] ss:$16 sps:$4 sm:$0xff]  }
  0xb3   : > { %2721 = vmatpush1.bf16.msra.mxu0 %v4006_v21  ;;  %2979 = vmatpush1.bf16.msra.mxu1 %v4009_v22  ;;  %v4107_v21 = vld [vmem:[%s4747_s14 + $0x424] ss:$16 sps:$4 sm:$0xff]   ;;  %v4110_v22 = vld [vmem:[%s4747_s14 + $0x42c] ss:$16 sps:$4 sm:$0xff]  }
  0xb4   : > { %2722 = vmatprep.subr.bf16.mxu0 %v4014_v23  ;;  %2980 = vmatprep.subr.bf16.mxu1 %v4017_v24  ;;  %v4105_v23 = vld [vmem:[%s4747_s14 + $0x420] ss:$16 sps:$4 sm:$0xff]   ;;  %v4108_v24 = vld [vmem:[%s4747_s14 + $0x428] ss:$16 sps:$4 sm:$0xff]  }
  0xb7   : > { %2723 = vmatpush1.bf16.msra.mxu0 %v4012_v25  ;;  %2981 = vmatpush1.bf16.msra.mxu1 %v4015_v26  ;;  %v4197_v25 = vld [vmem:[%s4745_s13 + $0x14] ss:$48 sps:$4 sm:$0xff]  }
  0xb8   : > { %2724 = vmatprep.subr.bf16.mxu0 %v4020_v27  ;;  %2982 = vmatprep.subr.bf16.mxu1 %v4023_v28  ;;  %v4113_v26 = vld [vmem:[%s4747_s14 + $0x444] ss:$16 sps:$4 sm:$0xff]   ;;  %v4116_v27 = vld [vmem:[%s4747_s14 + $0x44c] ss:$16 sps:$4 sm:$0xff]   ;;  %v4111_v28 = vld [vmem:[%s4747_s14 + $0x440] ss:$16 sps:$4 sm:$0xff]  }
  0xbb   : > { %2725 = vmatpush1.bf16.msra.mxu0 %v4018_v29  ;;  %2983 = vmatpush1.bf16.msra.mxu1 %v4021_v30  ;;  %v4114_v29 = vld [vmem:[%s4747_s14 + $0x448] ss:$16 sps:$4 sm:$0xff]   ;;  %v4119_v30 = vld [vmem:[%s4747_s14 + $0x464] ss:$16 sps:$4 sm:$0xff]  }
  0xbc   : > { %2726 = vmatprep.subr.bf16.mxu0 %v4026_v31  ;;  %2984 = vmatprep.subr.bf16.mxu1 %v4029_v32  ;;  %v4122_v31 = vld [vmem:[%s4747_s14 + $0x46c] ss:$16 sps:$4 sm:$0xff]   ;;  %v4117_v32 = vld [vmem:[%s4747_s14 + $0x460] ss:$16 sps:$4 sm:$0xff]  }
  0xbf   : > { %2727 = vmatpush1.bf16.msra.mxu0 %v4024_v33  ;;  %2985 = vmatpush1.bf16.msra.mxu1 %v4027_v34  ;;  %v4120_v33 = vld [vmem:[%s4747_s14 + $0x468] ss:$16 sps:$4 sm:$0xff]   ;;  %v4125_v34 = vld [vmem:[%s4747_s14 + $0x484] ss:$16 sps:$4 sm:$0xff]  }
  0xc0   : > { %2728 = vmatprep.subr.bf16.mxu0 %v4032_v35  ;;  %2986 = vmatprep.subr.bf16.mxu1 %v4035_v36  ;;  %v4128_v35 = vld [vmem:[%s4747_s14 + $0x48c] ss:$16 sps:$4 sm:$0xff]   ;;  %v4123_v36 = vld [vmem:[%s4747_s14 + $0x480] ss:$16 sps:$4 sm:$0xff]  }
  0xc3   : > { %2729 = vmatpush1.bf16.msra.mxu0 %v4030_v37  ;;  %2987 = vmatpush1.bf16.msra.mxu1 %v4033_v38  ;;  %v4126_v37 = vld [vmem:[%s4747_s14 + $0x488] ss:$16 sps:$4 sm:$0xff]   ;;  %v4131_v38 = vld [vmem:[%s4747_s14 + $0x4a4] ss:$16 sps:$4 sm:$0xff]  }
  0xc4   : > { %2730 = vmatprep.subr.bf16.mxu0 %v4038_v39  ;;  %2988 = vmatprep.subr.bf16.mxu1 %v4041_v40  ;;  %v4134_v39 = vld [vmem:[%s4747_s14 + $0x4ac] ss:$16 sps:$4 sm:$0xff]   ;;  %v4129_v40 = vld [vmem:[%s4747_s14 + $0x4a0] ss:$16 sps:$4 sm:$0xff]  }
  0xc7   : > { %2731 = vmatpush1.bf16.msra.mxu0 %v4036_v41  ;;  %2989 = vmatpush1.bf16.msra.mxu1 %v4039_v42  ;;  %v4132_v41 = vld [vmem:[%s4747_s14 + $0x4a8] ss:$16 sps:$4 sm:$0xff]   ;;  %v4137_v42 = vld [vmem:[%s4747_s14 + $0x4c4] ss:$16 sps:$4 sm:$0xff]  }
  0xc8   : > { %2732 = vmatprep.subr.bf16.mxu0 %v4044_v44  ;;  %2990 = vmatprep.subr.bf16.mxu1 %v4047_v45  ;;  %v4135_v44 = vld [vmem:[%s4747_s14 + $0x4c0] ss:$16 sps:$4 sm:$0xff]   ;;  %v4138_v45 = vld [vmem:[%s4747_s14 + $0x4c8] ss:$16 sps:$4 sm:$0xff]  }
  0xcb   : > { %2733 = vmatpush1.bf16.msra.mxu0 %v4042_v46  ;;  %2991 = vmatpush1.bf16.msra.mxu1 %v4045_v47  ;;  %v4143_v46 = vld [vmem:[%s4747_s14 + $0x4e4] ss:$16 sps:$4 sm:$0xff]   ;;  %v4146_v47 = vld [vmem:[%s4747_s14 + $0x4ec] ss:$16 sps:$4 sm:$0xff]  }
  0xcc   : > { %2734 = vmatprep.subr.bf16.mxu0 %v4050_v48  ;;  %2992 = vmatprep.subr.bf16.mxu1 %v4053_v49  ;;  %v4141_v48 = vld [vmem:[%s4747_s14 + $0x4e0] ss:$16 sps:$4 sm:$0xff]   ;;  %v4144_v49 = vld [vmem:[%s4747_s14 + $0x4e8] ss:$16 sps:$4 sm:$0xff]  }
  0xcf   : > { %2735 = vmatpush1.bf16.msra.mxu0 %v4048_v50  ;;  %2993 = vmatpush1.bf16.msra.mxu1 %v4051_v51  ;;  %v4149_v50 = vld [vmem:[%s4747_s14 + $0x504] ss:$16 sps:$4 sm:$0xff]   ;;  %v4152_v51 = vld [vmem:[%s4747_s14 + $0x50c] ss:$16 sps:$4 sm:$0xff]  }
  0xd0   : > { %2736 = vmatprep.subr.bf16.mxu0 %v4056_v52  ;;  %2994 = vmatprep.subr.bf16.mxu1 %v4059_v53  ;;  %v4147_v52 = vld [vmem:[%s4747_s14 + $0x500] ss:$16 sps:$4 sm:$0xff]   ;;  %v4150_v53 = vld [vmem:[%s4747_s14 + $0x508] ss:$16 sps:$4 sm:$0xff]  }
  0xd3   : > { %2737 = vmatpush1.bf16.msra.mxu0 %v4054_v54  ;;  %2995 = vmatpush1.bf16.msra.mxu1 %v4057_v55  ;;  %v4155_v54 = vld [vmem:[%s4747_s14 + $0x524] ss:$16 sps:$4 sm:$0xff]   ;;  %v4158_v55 = vld [vmem:[%s4747_s14 + $0x52c] ss:$16 sps:$4 sm:$0xff]  }
  0xd4   : > { %2738 = vmatprep.subr.bf16.mxu0 %v4062_v56  ;;  %2996 = vmatprep.subr.bf16.mxu1 %v4065_v57  ;;  %v4153_v56 = vld [vmem:[%s4747_s14 + $0x520] ss:$16 sps:$4 sm:$0xff]   ;;  %v4156_v57 = vld [vmem:[%s4747_s14 + $0x528] ss:$16 sps:$4 sm:$0xff]  }
  0xd7   : > { %2739 = vmatpush1.bf16.msra.mxu0 %v4060_v58  ;;  %2997 = vmatpush1.bf16.msra.mxu1 %v4063_v59  ;;  %v4161_v58 = vld [vmem:[%s4747_s14 + $0x544] ss:$16 sps:$4 sm:$0xff]   ;;  %v4164_v59 = vld [vmem:[%s4747_s14 + $0x54c] ss:$16 sps:$4 sm:$0xff]  }
  0xd8   : > { %2740 = vmatprep.subr.bf16.mxu0 %v4068_v60  ;;  %2998 = vmatprep.subr.bf16.mxu1 %v4071_v61  ;;  %v4159_v60 = vld [vmem:[%s4747_s14 + $0x540] ss:$16 sps:$4 sm:$0xff]   ;;  %v4162_v61 = vld [vmem:[%s4747_s14 + $0x548] ss:$16 sps:$4 sm:$0xff]  }
  0xdb   : > { %2741 = vmatpush1.bf16.msra.mxu0 %v4066_v62  ;;  %2999 = vmatpush1.bf16.msra.mxu1 %v4069_v63  ;;  %v4167_v62 = vld [vmem:[%s4747_s14 + $0x564] ss:$16 sps:$4 sm:$0xff]   ;;  %v4170_v63 = vld [vmem:[%s4747_s14 + $0x56c] ss:$16 sps:$4 sm:$0xff]  }
  0xdc   : > { %2742 = vmatprep.subr.bf16.mxu0 %v4074_v0  ;;  %3000 = vmatprep.subr.bf16.mxu1 %v4077_v1  ;;  %v4165_v0 = vld [vmem:[%s4747_s14 + $0x560] ss:$16 sps:$4 sm:$0xff]   ;;  %v4168_v1 = vld [vmem:[%s4747_s14 + $0x568] ss:$16 sps:$4 sm:$0xff]  }
  0xdf   : > { %2743 = vmatpush1.bf16.msra.mxu0 %v4072_v2  ;;  %3001 = vmatpush1.bf16.msra.mxu1 %v4075_v3  ;;  %v4173_v2 = vld [vmem:[%s4747_s14 + $0x584] ss:$16 sps:$4 sm:$0xff]   ;;  %v4176_v3 = vld [vmem:[%s4747_s14 + $0x58c] ss:$16 sps:$4 sm:$0xff]  }
  0xe0   : > { %2744 = vmatprep.subr.bf16.mxu0 %v4080_v4  ;;  %3002 = vmatprep.subr.bf16.mxu1 %v4083_v5  ;;  %v4171_v4 = vld [vmem:[%s4747_s14 + $0x580] ss:$16 sps:$4 sm:$0xff]   ;;  %v4174_v5 = vld [vmem:[%s4747_s14 + $0x588] ss:$16 sps:$4 sm:$0xff]  }
  0xe3   : > { %2745 = vmatpush1.bf16.msra.mxu0 %v4078_v6  ;;  %3003 = vmatpush1.bf16.msra.mxu1 %v4081_v7  ;;  %v4179_v6 = vld [vmem:[%s4747_s14 + $0x5a4] ss:$16 sps:$4 sm:$0xff]   ;;  %v4182_v7 = vld [vmem:[%s4747_s14 + $0x5ac] ss:$16 sps:$4 sm:$0xff]  }
  0xe4   : > { %2746 = vmatprep.subr.bf16.mxu0 %v4086_v8  ;;  %3004 = vmatprep.subr.bf16.mxu1 %v4089_v9  ;;  %v4177_v8 = vld [vmem:[%s4747_s14 + $0x5a0] ss:$16 sps:$4 sm:$0xff]   ;;  %v4180_v9 = vld [vmem:[%s4747_s14 + $0x5a8] ss:$16 sps:$4 sm:$0xff]  }
  0xe7   : > { %2747 = vmatpush1.bf16.msra.mxu0 %v4084_v10  ;;  %3005 = vmatpush1.bf16.msra.mxu1 %v4087_v11  ;;  %v4185_v10 = vld [vmem:[%s4747_s14 + $0x5c4] ss:$16 sps:$4 sm:$0xff]   ;;  %v4188_v11 = vld [vmem:[%s4747_s14 + $0x5cc] ss:$16 sps:$4 sm:$0xff]  }
  0xe8   : > { %2748 = vmatprep.subr.bf16.mxu0 %v4092_v12  ;;  %3006 = vmatprep.subr.bf16.mxu1 %v4095_v13  ;;  %v4183_v12 = vld [vmem:[%s4747_s14 + $0x5c0] ss:$16 sps:$4 sm:$0xff]   ;;  %v4186_v13 = vld [vmem:[%s4747_s14 + $0x5c8] ss:$16 sps:$4 sm:$0xff]  }
  0xeb   : > { %2749 = vmatpush1.bf16.msra.mxu0 %v4090_v14  ;;  %3007 = vmatpush1.bf16.msra.mxu1 %v4093_v15  ;;  %v4191_v14 = vld [vmem:[%s4747_s14 + $0x5e4] ss:$16 sps:$4 sm:$0xff]   ;;  %v4194_v15 = vld [vmem:[%s4747_s14 + $0x5ec] ss:$16 sps:$4 sm:$0xff]  }
  0xec   : > { %2761 = vmatprep.subr.bf16.mxu0 %v4101_v16  ;;  %3019 = vmatprep.subr.bf16.mxu1 %v4104_v17  ;;  %v4189_v16 = vld [vmem:[%s4747_s14 + $0x5e0] ss:$16 sps:$4 sm:$0xff]   ;;  %v4192_v17 = vld [vmem:[%s4747_s14 + $0x5e8] ss:$16 sps:$4 sm:$0xff]  }
  0xee   : > { %2751 = vmatmul.mubr.bf16.vlgmr.msra.gmra.mrb[0].mxu0 %v4096_v18  ;;  %3009 = vmatmul.mubr.bf16.vlgmr.msra.gmra.mrb[0].mxu1 %v4096_v18  ;;  %v4200_v18 = vld [vmem:[%s4747_s14 + $0x604] ss:$16 sps:$4 sm:$0xff]  }
  0xef   : > { %2762 = vmatpush1.bf16.msra.mxu0 %v4099_v19  ;;  %3020 = vmatpush1.bf16.msra.mxu1 %v4102_v20  ;;  %v4203_v19 = vld [vmem:[%s4747_s14 + $0x60c] ss:$16 sps:$4 sm:$0xff]   ;;  %v4195_v20 = vld [vmem:[%s4745_s13 + $0x10] ss:$48 sps:$4 sm:$0xff]  }
  0xf0   : > { %2763 = vmatprep.subr.bf16.mxu0 %v4107_v21  ;;  %3021 = vmatprep.subr.bf16.mxu1 %v4110_v22  ;;  %v4198_v21 = vld [vmem:[%s4747_s14 + $0x600] ss:$16 sps:$4 sm:$0xff]   ;;  %v4201_v22 = vld [vmem:[%s4747_s14 + $0x608] ss:$16 sps:$4 sm:$0xff]  }
  0xf1   : > { %2793 = vmatprep.mubr.bf16.mxu0 %v4197_v25  ;;  %3051 = vmatprep.mubr.bf16.mxu1 %v4197_v25  ;;  %v4296_v25 = vld [vmem:[%s4745_s13 + $0x1c] ss:$48 sps:$4 sm:$0xff]  }
  0xf3   : > { %2764 = vmatpush1.bf16.msra.mxu0 %v4105_v23  ;;  %3022 = vmatpush1.bf16.msra.mxu1 %v4108_v24  ;;  %v4206_v23 = vld [vmem:[%s4747_s14 + $0x624] ss:$16 sps:$4 sm:$0xff]   ;;  %v4209_v24 = vld [vmem:[%s4747_s14 + $0x62c] ss:$16 sps:$4 sm:$0xff]  }
  0xf4   : > { %2765 = vmatprep.subr.bf16.mxu0 %v4113_v26  ;;  %3023 = vmatprep.subr.bf16.mxu1 %v4116_v27  ;;  %v4204_v26 = vld [vmem:[%s4747_s14 + $0x620] ss:$16 sps:$4 sm:$0xff]   ;;  %v4207_v27 = vld [vmem:[%s4747_s14 + $0x628] ss:$16 sps:$4 sm:$0xff]  }
  0xf7   : > { %2766 = vmatpush1.bf16.msra.mxu0 %v4111_v28  ;;  %3024 = vmatpush1.bf16.msra.mxu1 %v4114_v29  ;;  %v4212_v28 = vld [vmem:[%s4747_s14 + $0x644] ss:$16 sps:$4 sm:$0xff]   ;;  %v4215_v29 = vld [vmem:[%s4747_s14 + $0x64c] ss:$16 sps:$4 sm:$0xff]  }
  0xf8   : > { %2767 = vmatprep.subr.bf16.mxu0 %v4119_v30  ;;  %3025 = vmatprep.subr.bf16.mxu1 %v4122_v31  ;;  %v4210_v30 = vld [vmem:[%s4747_s14 + $0x640] ss:$16 sps:$4 sm:$0xff]   ;;  %v4213_v31 = vld [vmem:[%s4747_s14 + $0x648] ss:$16 sps:$4 sm:$0xff]  }
  0xfb   : > { %2768 = vmatpush1.bf16.msra.mxu0 %v4117_v32  ;;  %3026 = vmatpush1.bf16.msra.mxu1 %v4120_v33  ;;  %v4218_v32 = vld [vmem:[%s4747_s14 + $0x664] ss:$16 sps:$4 sm:$0xff]   ;;  %v4221_v33 = vld [vmem:[%s4747_s14 + $0x66c] ss:$16 sps:$4 sm:$0xff]  }
  0xfc   : > { %2769 = vmatprep.subr.bf16.mxu0 %v4125_v34  ;;  %3027 = vmatprep.subr.bf16.mxu1 %v4128_v35  ;;  %v4216_v34 = vld [vmem:[%s4747_s14 + $0x660] ss:$16 sps:$4 sm:$0xff]   ;;  %v4219_v35 = vld [vmem:[%s4747_s14 + $0x668] ss:$16 sps:$4 sm:$0xff]  }
  0xff   : > { %2770 = vmatpush1.bf16.msra.mxu0 %v4123_v36  ;;  %3028 = vmatpush1.bf16.msra.mxu1 %v4126_v37  ;;  %v4224_v36 = vld [vmem:[%s4747_s14 + $0x684] ss:$16 sps:$4 sm:$0xff]   ;;  %v4227_v37 = vld [vmem:[%s4747_s14 + $0x68c] ss:$16 sps:$4 sm:$0xff]  }
 0x100   : > { %2771 = vmatprep.subr.bf16.mxu0 %v4131_v38  ;;  %3029 = vmatprep.subr.bf16.mxu1 %v4134_v39  ;;  %v4222_v38 = vld [vmem:[%s4747_s14 + $0x680] ss:$16 sps:$4 sm:$0xff]   ;;  %v4225_v39 = vld [vmem:[%s4747_s14 + $0x688] ss:$16 sps:$4 sm:$0xff]  }
 0x103   : > { %2772 = vmatpush1.bf16.msra.mxu0 %v4129_v40  ;;  %3030 = vmatpush1.bf16.msra.mxu1 %v4132_v41  ;;  %v4230_v40 = vld [vmem:[%s4747_s14 + $0x6a4] ss:$16 sps:$4 sm:$0xff]   ;;  %v4233_v41 = vld [vmem:[%s4747_s14 + $0x6ac] ss:$16 sps:$4 sm:$0xff]  }
 0x104   : > { %2773 = vmatprep.subr.bf16.mxu0 %v4137_v42  ;;  %3031 = vmatprep.subr.bf16.mxu1 %v4140_v43  ;;  %v4228_v42 = vld [vmem:[%s4747_s14 + $0x6a0] ss:$16 sps:$4 sm:$0xff]   ;;  %v4231_v43 = vld [vmem:[%s4747_s14 + $0x6a8] ss:$16 sps:$4 sm:$0xff]  }
 0x107   : > { %2774 = vmatpush1.bf16.msra.mxu0 %v4135_v44  ;;  %3032 = vmatpush1.bf16.msra.mxu1 %v4138_v45  ;;  %v4236_v44 = vld [vmem:[%s4747_s14 + $0x6c4] ss:$16 sps:$4 sm:$0xff]   ;;  %v4239_v45 = vld [vmem:[%s4747_s14 + $0x6cc] ss:$16 sps:$4 sm:$0xff]  }
 0x108   : > { %2775 = vmatprep.subr.bf16.mxu0 %v4143_v46  ;;  %3033 = vmatprep.subr.bf16.mxu1 %v4146_v47  ;;  %v4234_v46 = vld [vmem:[%s4747_s14 + $0x6c0] ss:$16 sps:$4 sm:$0xff]   ;;  %v4237_v47 = vld [vmem:[%s4747_s14 + $0x6c8] ss:$16 sps:$4 sm:$0xff]  }
 0x10b   : > { %2776 = vmatpush1.bf16.msra.mxu0 %v4141_v48  ;;  %3034 = vmatpush1.bf16.msra.mxu1 %v4144_v49  ;;  %v4242_v48 = vld [vmem:[%s4747_s14 + $0x6e4] ss:$16 sps:$4 sm:$0xff]   ;;  %v4245_v49 = vld [vmem:[%s4747_s14 + $0x6ec] ss:$16 sps:$4 sm:$0xff]  }
 0x10c   : > { %2777 = vmatprep.subr.bf16.mxu0 %v4149_v50  ;;  %3035 = vmatprep.subr.bf16.mxu1 %v4152_v51  ;;  %v4240_v50 = vld [vmem:[%s4747_s14 + $0x6e0] ss:$16 sps:$4 sm:$0xff]   ;;  %v4243_v51 = vld [vmem:[%s4747_s14 + $0x6e8] ss:$16 sps:$4 sm:$0xff]  }
 0x10f   : > { %2778 = vmatpush1.bf16.msra.mxu0 %v4147_v52  ;;  %3036 = vmatpush1.bf16.msra.mxu1 %v4150_v53  ;;  %v4248_v52 = vld [vmem:[%s4747_s14 + $0x704] ss:$16 sps:$4 sm:$0xff]   ;;  %v4251_v53 = vld [vmem:[%s4747_s14 + $0x70c] ss:$16 sps:$4 sm:$0xff]  }
 0x110   : > { %2779 = vmatprep.subr.bf16.mxu0 %v4155_v54  ;;  %3037 = vmatprep.subr.bf16.mxu1 %v4158_v55  ;;  %v4246_v54 = vld [vmem:[%s4747_s14 + $0x700] ss:$16 sps:$4 sm:$0xff]   ;;  %v4249_v55 = vld [vmem:[%s4747_s14 + $0x708] ss:$16 sps:$4 sm:$0xff]  }
 0x113   : > { %2780 = vmatpush1.bf16.msra.mxu0 %v4153_v56  ;;  %3038 = vmatpush1.bf16.msra.mxu1 %v4156_v57  ;;  %v4254_v56 = vld [vmem:[%s4747_s14 + $0x724] ss:$16 sps:$4 sm:$0xff]   ;;  %v4257_v57 = vld [vmem:[%s4747_s14 + $0x72c] ss:$16 sps:$4 sm:$0xff]  }
 0x114   : > { %2781 = vmatprep.subr.bf16.mxu0 %v4161_v58  ;;  %3039 = vmatprep.subr.bf16.mxu1 %v4164_v59  ;;  %v4252_v58 = vld [vmem:[%s4747_s14 + $0x720] ss:$16 sps:$4 sm:$0xff]   ;;  %v4255_v59 = vld [vmem:[%s4747_s14 + $0x728] ss:$16 sps:$4 sm:$0xff]  }
 0x117   : > { %2782 = vmatpush1.bf16.msra.mxu0 %v4159_v60  ;;  %3040 = vmatpush1.bf16.msra.mxu1 %v4162_v61  ;;  %v4260_v60 = vld [vmem:[%s4747_s14 + $0x744] ss:$16 sps:$4 sm:$0xff]   ;;  %v4263_v61 = vld [vmem:[%s4747_s14 + $0x74c] ss:$16 sps:$4 sm:$0xff]  }
 0x118   : > { %2783 = vmatprep.subr.bf16.mxu0 %v4167_v62  ;;  %3041 = vmatprep.subr.bf16.mxu1 %v4170_v63  ;;  %v4258_v62 = vld [vmem:[%s4747_s14 + $0x740] ss:$16 sps:$4 sm:$0xff]   ;;  %v4261_v63 = vld [vmem:[%s4747_s14 + $0x748] ss:$16 sps:$4 sm:$0xff]  }
 0x11b   : > { %2784 = vmatpush1.bf16.msra.mxu0 %v4165_v0  ;;  %3042 = vmatpush1.bf16.msra.mxu1 %v4168_v1  ;;  %v4266_v0 = vld [vmem:[%s4747_s14 + $0x764] ss:$16 sps:$4 sm:$0xff]   ;;  %v4269_v1 = vld [vmem:[%s4747_s14 + $0x76c] ss:$16 sps:$4 sm:$0xff]  }
 0x11c   : > { %2785 = vmatprep.subr.bf16.mxu0 %v4173_v2  ;;  %3043 = vmatprep.subr.bf16.mxu1 %v4176_v3  ;;  %v4264_v2 = vld [vmem:[%s4747_s14 + $0x760] ss:$16 sps:$4 sm:$0xff]   ;;  %v4267_v3 = vld [vmem:[%s4747_s14 + $0x768] ss:$16 sps:$4 sm:$0xff]  }
 0x11f   : > { %2786 = vmatpush1.bf16.msra.mxu0 %v4171_v4  ;;  %3044 = vmatpush1.bf16.msra.mxu1 %v4174_v5  ;;  %v4272_v4 = vld [vmem:[%s4747_s14 + $0x784] ss:$16 sps:$4 sm:$0xff]   ;;  %v4275_v5 = vld [vmem:[%s4747_s14 + $0x78c] ss:$16 sps:$4 sm:$0xff]  }
 0x120   : > { %2787 = vmatprep.subr.bf16.mxu0 %v4179_v6  ;;  %3045 = vmatprep.subr.bf16.mxu1 %v4182_v7  ;;  %v4270_v6 = vld [vmem:[%s4747_s14 + $0x780] ss:$16 sps:$4 sm:$0xff]   ;;  %v4273_v7 = vld [vmem:[%s4747_s14 + $0x788] ss:$16 sps:$4 sm:$0xff]  }
 0x123   : > { %2788 = vmatpush1.bf16.msra.mxu0 %v4177_v8  ;;  %3046 = vmatpush1.bf16.msra.mxu1 %v4180_v9  ;;  %v4278_v8 = vld [vmem:[%s4747_s14 + $0x7a4] ss:$16 sps:$4 sm:$0xff]   ;;  %v4281_v9 = vld [vmem:[%s4747_s14 + $0x7ac] ss:$16 sps:$4 sm:$0xff]  }
 0x124   : > { %2789 = vmatprep.subr.bf16.mxu0 %v4185_v10  ;;  %3047 = vmatprep.subr.bf16.mxu1 %v4188_v11  ;;  %v4276_v10 = vld [vmem:[%s4747_s14 + $0x7a0] ss:$16 sps:$4 sm:$0xff]   ;;  %v4279_v11 = vld [vmem:[%s4747_s14 + $0x7a8] ss:$16 sps:$4 sm:$0xff]  }
 0x127   : > { %2790 = vmatpush1.bf16.msra.mxu0 %v4183_v12  ;;  %3048 = vmatpush1.bf16.msra.mxu1 %v4186_v13  ;;  %v4284_v12 = vld [vmem:[%s4747_s14 + $0x7c4] ss:$16 sps:$4 sm:$0xff]   ;;  %v4287_v13 = vld [vmem:[%s4747_s14 + $0x7cc] ss:$16 sps:$4 sm:$0xff]  }
 0x128   : > { %2791 = vmatprep.subr.bf16.mxu0 %v4191_v14  ;;  %3049 = vmatprep.subr.bf16.mxu1 %v4194_v15  ;;  %v4282_v14 = vld [vmem:[%s4747_s14 + $0x7c0] ss:$16 sps:$4 sm:$0xff]   ;;  %v4285_v15 = vld [vmem:[%s4747_s14 + $0x7c8] ss:$16 sps:$4 sm:$0xff]  }
 0x12b   : > { %2792 = vmatpush1.bf16.msra.mxu0 %v4189_v16  ;;  %3050 = vmatpush1.bf16.msra.mxu1 %v4192_v17  ;;  %v4290_v16 = vld [vmem:[%s4747_s14 + $0x7e4] ss:$16 sps:$4 sm:$0xff]   ;;  %v4293_v17 = vld [vmem:[%s4747_s14 + $0x7ec] ss:$16 sps:$4 sm:$0xff]  }
 0x12c   : > { %2804 = vmatprep.subr.bf16.mxu0 %v4200_v18  ;;  %3062 = vmatprep.subr.bf16.mxu1 %v4203_v19  ;;  %v4288_v18 = vld [vmem:[%s4747_s14 + $0x7e0] ss:$16 sps:$4 sm:$0xff]   ;;  %v4291_v19 = vld [vmem:[%s4747_s14 + $0x7e8] ss:$16 sps:$4 sm:$0xff]  }
 0x12e   : > { %2794 = vmatmul.mubr.bf16.vlgmr.msra.gmra.mrb[0].mxu0 %v4195_v20  ;;  %3052 = vmatmul.mubr.bf16.vlgmr.msra.gmra.mrb[0].mxu1 %v4195_v20  ;;  %v4299_v20 = vld [vmem:[%s4747_s14 + $0x804] ss:$16 sps:$4 sm:$0xff]  }
 0x12f   : > { %2805 = vmatpush1.bf16.msra.mxu0 %v4198_v21  ;;  %3063 = vmatpush1.bf16.msra.mxu1 %v4201_v22  ;;  %v4302_v21 = vld [vmem:[%s4747_s14 + $0x80c] ss:$16 sps:$4 sm:$0xff]   ;;  %v4294_v22 = vld [vmem:[%s4745_s13 + $0x18] ss:$48 sps:$4 sm:$0xff]  }
 0x130   : > { %2806 = vmatprep.subr.bf16.mxu0 %v4206_v23  ;;  %3064 = vmatprep.subr.bf16.mxu1 %v4209_v24  ;;  %v4297_v23 = vld [vmem:[%s4747_s14 + $0x800] ss:$16 sps:$4 sm:$0xff]   ;;  %v4300_v24 = vld [vmem:[%s4747_s14 + $0x808] ss:$16 sps:$4 sm:$0xff]  }
 0x131   : > { %2836 = vmatprep.mubr.bf16.mxu0 %v4296_v25  ;;  %3094 = vmatprep.mubr.bf16.mxu1 %v4296_v25  ;;  %v4305_v25 = vld [vmem:[%s4747_s14 + $0x824] ss:$16 sps:$4 sm:$0xff]  }
 0x133   : > { %2807 = vmatpush1.bf16.msra.mxu0 %v4204_v26  ;;  %3065 = vmatpush1.bf16.msra.mxu1 %v4207_v27  ;;  %v4308_v26 = vld [vmem:[%s4747_s14 + $0x82c] ss:$16 sps:$4 sm:$0xff]   ;;  %v4395_v27 = vld [vmem:[%s4745_s13 + $0x24] ss:$48 sps:$4 sm:$0xff]  }
 0x134   : > { %2808 = vmatprep.subr.bf16.mxu0 %v4212_v28  ;;  %3066 = vmatprep.subr.bf16.mxu1 %v4215_v29  ;;  %v4303_v28 = vld [vmem:[%s4747_s14 + $0x820] ss:$16 sps:$4 sm:$0xff]   ;;  %v4306_v29 = vld [vmem:[%s4747_s14 + $0x828] ss:$16 sps:$4 sm:$0xff]  }
 0x137   : > { %2809 = vmatpush1.bf16.msra.mxu0 %v4210_v30  ;;  %3067 = vmatpush1.bf16.msra.mxu1 %v4213_v31  ;;  %v4311_v30 = vld [vmem:[%s4747_s14 + $0x844] ss:$16 sps:$4 sm:$0xff]   ;;  %v4314_v31 = vld [vmem:[%s4747_s14 + $0x84c] ss:$16 sps:$4 sm:$0xff]  }
 0x138   : > { %2810 = vmatprep.subr.bf16.mxu0 %v4218_v32  ;;  %3068 = vmatprep.subr.bf16.mxu1 %v4221_v33  ;;  %v4309_v32 = vld [vmem:[%s4747_s14 + $0x840] ss:$16 sps:$4 sm:$0xff]   ;;  %v4312_v33 = vld [vmem:[%s4747_s14 + $0x848] ss:$16 sps:$4 sm:$0xff]  }
 0x13b   : > { %2811 = vmatpush1.bf16.msra.mxu0 %v4216_v34  ;;  %3069 = vmatpush1.bf16.msra.mxu1 %v4219_v35  ;;  %v4317_v34 = vld [vmem:[%s4747_s14 + $0x864] ss:$16 sps:$4 sm:$0xff]   ;;  %v4320_v35 = vld [vmem:[%s4747_s14 + $0x86c] ss:$16 sps:$4 sm:$0xff]  }
 0x13c   : > { %2812 = vmatprep.subr.bf16.mxu0 %v4224_v36  ;;  %3070 = vmatprep.subr.bf16.mxu1 %v4227_v37  ;;  %v4315_v36 = vld [vmem:[%s4747_s14 + $0x860] ss:$16 sps:$4 sm:$0xff]   ;;  %v4318_v37 = vld [vmem:[%s4747_s14 + $0x868] ss:$16 sps:$4 sm:$0xff]  }
 0x13f   : > { %2813 = vmatpush1.bf16.msra.mxu0 %v4222_v38  ;;  %3071 = vmatpush1.bf16.msra.mxu1 %v4225_v39  ;;  %v4323_v38 = vld [vmem:[%s4747_s14 + $0x884] ss:$16 sps:$4 sm:$0xff]   ;;  %v4326_v39 = vld [vmem:[%s4747_s14 + $0x88c] ss:$16 sps:$4 sm:$0xff]  }
 0x140   : > { %2814 = vmatprep.subr.bf16.mxu0 %v4230_v40  ;;  %3072 = vmatprep.subr.bf16.mxu1 %v4233_v41  ;;  %v4321_v40 = vld [vmem:[%s4747_s14 + $0x880] ss:$16 sps:$4 sm:$0xff]   ;;  %v4324_v41 = vld [vmem:[%s4747_s14 + $0x888] ss:$16 sps:$4 sm:$0xff]  }
 0x143   : > { %2815 = vmatpush1.bf16.msra.mxu0 %v4228_v42  ;;  %3073 = vmatpush1.bf16.msra.mxu1 %v4231_v43  ;;  %v4329_v42 = vld [vmem:[%s4747_s14 + $0x8a4] ss:$16 sps:$4 sm:$0xff]   ;;  %v4332_v43 = vld [vmem:[%s4747_s14 + $0x8ac] ss:$16 sps:$4 sm:$0xff]  }
 0x144   : > { %2816 = vmatprep.subr.bf16.mxu0 %v4236_v44  ;;  %3074 = vmatprep.subr.bf16.mxu1 %v4239_v45  ;;  %v4327_v44 = vld [vmem:[%s4747_s14 + $0x8a0] ss:$16 sps:$4 sm:$0xff]   ;;  %v4330_v45 = vld [vmem:[%s4747_s14 + $0x8a8] ss:$16 sps:$4 sm:$0xff]  }
 0x147   : > { %2817 = vmatpush1.bf16.msra.mxu0 %v4234_v46  ;;  %3075 = vmatpush1.bf16.msra.mxu1 %v4237_v47  ;;  %v4335_v46 = vld [vmem:[%s4747_s14 + $0x8c4] ss:$16 sps:$4 sm:$0xff]   ;;  %v4338_v47 = vld [vmem:[%s4747_s14 + $0x8cc] ss:$16 sps:$4 sm:$0xff]  }
 0x148   : > { %2818 = vmatprep.subr.bf16.mxu0 %v4242_v48  ;;  %3076 = vmatprep.subr.bf16.mxu1 %v4245_v49  ;;  %v4333_v48 = vld [vmem:[%s4747_s14 + $0x8c0] ss:$16 sps:$4 sm:$0xff]   ;;  %v4336_v49 = vld [vmem:[%s4747_s14 + $0x8c8] ss:$16 sps:$4 sm:$0xff]  }
 0x14b   : > { %2819 = vmatpush1.bf16.msra.mxu0 %v4240_v50  ;;  %3077 = vmatpush1.bf16.msra.mxu1 %v4243_v51  ;;  %v4341_v50 = vld [vmem:[%s4747_s14 + $0x8e4] ss:$16 sps:$4 sm:$0xff]   ;;  %v4344_v51 = vld [vmem:[%s4747_s14 + $0x8ec] ss:$16 sps:$4 sm:$0xff]  }
 0x14c   : > { %2820 = vmatprep.subr.bf16.mxu0 %v4248_v52  ;;  %3078 = vmatprep.subr.bf16.mxu1 %v4251_v53  ;;  %v4339_v52 = vld [vmem:[%s4747_s14 + $0x8e0] ss:$16 sps:$4 sm:$0xff]   ;;  %v4342_v53 = vld [vmem:[%s4747_s14 + $0x8e8] ss:$16 sps:$4 sm:$0xff]  }
 0x14f   : > { %2821 = vmatpush1.bf16.msra.mxu0 %v4246_v54  ;;  %3079 = vmatpush1.bf16.msra.mxu1 %v4249_v55  ;;  %v4347_v54 = vld [vmem:[%s4747_s14 + $0x904] ss:$16 sps:$4 sm:$0xff]   ;;  %v4350_v55 = vld [vmem:[%s4747_s14 + $0x90c] ss:$16 sps:$4 sm:$0xff]  }
 0x150   : > { %2822 = vmatprep.subr.bf16.mxu0 %v4254_v56  ;;  %3080 = vmatprep.subr.bf16.mxu1 %v4257_v57  ;;  %v4345_v56 = vld [vmem:[%s4747_s14 + $0x900] ss:$16 sps:$4 sm:$0xff]   ;;  %v4348_v57 = vld [vmem:[%s4747_s14 + $0x908] ss:$16 sps:$4 sm:$0xff]  }
 0x153   : > { %2823 = vmatpush1.bf16.msra.mxu0 %v4252_v58  ;;  %3081 = vmatpush1.bf16.msra.mxu1 %v4255_v59  ;;  %v4353_v58 = vld [vmem:[%s4747_s14 + $0x924] ss:$16 sps:$4 sm:$0xff]   ;;  %v4356_v59 = vld [vmem:[%s4747_s14 + $0x92c] ss:$16 sps:$4 sm:$0xff]  }
 0x154   : > { %2824 = vmatprep.subr.bf16.mxu0 %v4260_v60  ;;  %3082 = vmatprep.subr.bf16.mxu1 %v4263_v61  ;;  %v4351_v60 = vld [vmem:[%s4747_s14 + $0x920] ss:$16 sps:$4 sm:$0xff]   ;;  %v4354_v61 = vld [vmem:[%s4747_s14 + $0x928] ss:$16 sps:$4 sm:$0xff]  }
 0x157   : > { %2825 = vmatpush1.bf16.msra.mxu0 %v4258_v62  ;;  %3083 = vmatpush1.bf16.msra.mxu1 %v4261_v63  ;;  %v4359_v62 = vld [vmem:[%s4747_s14 + $0x944] ss:$16 sps:$4 sm:$0xff]   ;;  %v4362_v63 = vld [vmem:[%s4747_s14 + $0x94c] ss:$16 sps:$4 sm:$0xff]  }
 0x158   : > { %2826 = vmatprep.subr.bf16.mxu0 %v4266_v0  ;;  %3084 = vmatprep.subr.bf16.mxu1 %v4269_v1  ;;  %v4357_v0 = vld [vmem:[%s4747_s14 + $0x940] ss:$16 sps:$4 sm:$0xff]   ;;  %v4360_v1 = vld [vmem:[%s4747_s14 + $0x948] ss:$16 sps:$4 sm:$0xff]  }
 0x15b   : > { %2827 = vmatpush1.bf16.msra.mxu0 %v4264_v2  ;;  %3085 = vmatpush1.bf16.msra.mxu1 %v4267_v3  ;;  %v4365_v2 = vld [vmem:[%s4747_s14 + $0x964] ss:$16 sps:$4 sm:$0xff]   ;;  %v4368_v3 = vld [vmem:[%s4747_s14 + $0x96c] ss:$16 sps:$4 sm:$0xff]  }
 0x15c   : > { %2828 = vmatprep.subr.bf16.mxu0 %v4272_v4  ;;  %3086 = vmatprep.subr.bf16.mxu1 %v4275_v5  ;;  %v4363_v4 = vld [vmem:[%s4747_s14 + $0x960] ss:$16 sps:$4 sm:$0xff]   ;;  %v4366_v5 = vld [vmem:[%s4747_s14 + $0x968] ss:$16 sps:$4 sm:$0xff]  }
 0x15f   : > { %2829 = vmatpush1.bf16.msra.mxu0 %v4270_v6  ;;  %3087 = vmatpush1.bf16.msra.mxu1 %v4273_v7  ;;  %v4371_v6 = vld [vmem:[%s4747_s14 + $0x984] ss:$16 sps:$4 sm:$0xff]   ;;  %v4374_v7 = vld [vmem:[%s4747_s14 + $0x98c] ss:$16 sps:$4 sm:$0xff]  }
 0x160   : > { %2830 = vmatprep.subr.bf16.mxu0 %v4278_v8  ;;  %3088 = vmatprep.subr.bf16.mxu1 %v4281_v9  ;;  %v4369_v8 = vld [vmem:[%s4747_s14 + $0x980] ss:$16 sps:$4 sm:$0xff]   ;;  %v4372_v9 = vld [vmem:[%s4747_s14 + $0x988] ss:$16 sps:$4 sm:$0xff]  }
 0x163   : > { %2831 = vmatpush1.bf16.msra.mxu0 %v4276_v10  ;;  %3089 = vmatpush1.bf16.msra.mxu1 %v4279_v11  ;;  %v4377_v10 = vld [vmem:[%s4747_s14 + $0x9a4] ss:$16 sps:$4 sm:$0xff]   ;;  %v4380_v11 = vld [vmem:[%s4747_s14 + $0x9ac] ss:$16 sps:$4 sm:$0xff]  }
 0x164   : > { %2832 = vmatprep.subr.bf16.mxu0 %v4284_v12  ;;  %3090 = vmatprep.subr.bf16.mxu1 %v4287_v13  ;;  %v4375_v12 = vld [vmem:[%s4747_s14 + $0x9a0] ss:$16 sps:$4 sm:$0xff]   ;;  %v4378_v13 = vld [vmem:[%s4747_s14 + $0x9a8] ss:$16 sps:$4 sm:$0xff]  }
 0x167   : > { %2833 = vmatpush1.bf16.msra.mxu0 %v4282_v14  ;;  %3091 = vmatpush1.bf16.msra.mxu1 %v4285_v15  ;;  %v4383_v14 = vld [vmem:[%s4747_s14 + $0x9c4] ss:$16 sps:$4 sm:$0xff]   ;;  %v4386_v15 = vld [vmem:[%s4747_s14 + $0x9cc] ss:$16 sps:$4 sm:$0xff]  }
 0x168   : > { %2834 = vmatprep.subr.bf16.mxu0 %v4290_v16  ;;  %3092 = vmatprep.subr.bf16.mxu1 %v4293_v17  ;;  %v4381_v16 = vld [vmem:[%s4747_s14 + $0x9c0] ss:$16 sps:$4 sm:$0xff]   ;;  %v4384_v17 = vld [vmem:[%s4747_s14 + $0x9c8] ss:$16 sps:$4 sm:$0xff]  }
 0x16b   : > { %2835 = vmatpush1.bf16.msra.mxu0 %v4288_v18  ;;  %3093 = vmatpush1.bf16.msra.mxu1 %v4291_v19  ;;  %v4389_v18 = vld [vmem:[%s4747_s14 + $0x9e4] ss:$16 sps:$4 sm:$0xff]   ;;  %v4392_v19 = vld [vmem:[%s4747_s14 + $0x9ec] ss:$16 sps:$4 sm:$0xff]  }
 0x16c   : > { %2847 = vmatprep.subr.bf16.mxu0 %v4299_v20  ;;  %3105 = vmatprep.subr.bf16.mxu1 %v4302_v21  ;;  %v4387_v20 = vld [vmem:[%s4747_s14 + $0x9e0] ss:$16 sps:$4 sm:$0xff]   ;;  %v4390_v21 = vld [vmem:[%s4747_s14 + $0x9e8] ss:$16 sps:$4 sm:$0xff]  }
 0x16e   : > { %2837 = vmatmul.mubr.bf16.vlgmr.msra.gmra.mrb[0].mxu0 %v4294_v22  ;;  %3095 = vmatmul.mubr.bf16.vlgmr.msra.gmra.mrb[0].mxu1 %v4294_v22  ;;  %v4398_v22 = vld [vmem:[%s4747_s14 + $0xa04] ss:$16 sps:$4 sm:$0xff]  }
 0x16f   : > { %2848 = vmatpush1.bf16.msra.mxu0 %v4297_v23  ;;  %3106 = vmatpush1.bf16.msra.mxu1 %v4300_v24  ;;  %v4401_v23 = vld [vmem:[%s4747_s14 + $0xa0c] ss:$16 sps:$4 sm:$0xff]   ;;  %v4393_v24 = vld [vmem:[%s4745_s13 + $0x20] ss:$48 sps:$4 sm:$0xff]  }
 0x170   : > { %2849 = vmatprep.subr.bf16.mxu0 %v4305_v25  ;;  %3107 = vmatprep.subr.bf16.mxu1 %v4308_v26  ;;  %v4396_v25 = vld [vmem:[%s4747_s14 + $0xa00] ss:$16 sps:$4 sm:$0xff]   ;;  %v4399_v26 = vld [vmem:[%s4747_s14 + $0xa08] ss:$16 sps:$4 sm:$0xff]  }
 0x171   : > { %2879 = vmatprep.mubr.bf16.mxu0 %v4395_v27  ;;  %3137 = vmatprep.mubr.bf16.mxu1 %v4395_v27  ;;  %v4404_v27 = vld [vmem:[%s4747_s14 + $0xa24] ss:$16 sps:$4 sm:$0xff]  }
 0x173   : > { %2850 = vmatpush1.bf16.msra.mxu0 %v4303_v28  ;;  %3108 = vmatpush1.bf16.msra.mxu1 %v4306_v29  ;;  %v4407_v28 = vld [vmem:[%s4747_s14 + $0xa2c] ss:$16 sps:$4 sm:$0xff]  }
 0x174   : > { %2851 = vmatprep.subr.bf16.mxu0 %v4311_v30  ;;  %3109 = vmatprep.subr.bf16.mxu1 %v4314_v31  ;;  %v4494_v29 = vld [vmem:[%s4745_s13 + $0x2c] ss:$48 sps:$4 sm:$0xff]   ;;  %v4402_v30 = vld [vmem:[%s4747_s14 + $0xa20] ss:$16 sps:$4 sm:$0xff]   ;;  %v4405_v31 = vld [vmem:[%s4747_s14 + $0xa28] ss:$16 sps:$4 sm:$0xff]  }
 0x177   : > { %2852 = vmatpush1.bf16.msra.mxu0 %v4309_v32  ;;  %3110 = vmatpush1.bf16.msra.mxu1 %v4312_v33  ;;  %v4410_v32 = vld [vmem:[%s4747_s14 + $0xa44] ss:$16 sps:$4 sm:$0xff]   ;;  %v4413_v33 = vld [vmem:[%s4747_s14 + $0xa4c] ss:$16 sps:$4 sm:$0xff]  }
 0x178   : > { %2853 = vmatprep.subr.bf16.mxu0 %v4317_v34  ;;  %3111 = vmatprep.subr.bf16.mxu1 %v4320_v35  ;;  %v4408_v34 = vld [vmem:[%s4747_s14 + $0xa40] ss:$16 sps:$4 sm:$0xff]   ;;  %v4411_v35 = vld [vmem:[%s4747_s14 + $0xa48] ss:$16 sps:$4 sm:$0xff]  }
 0x17b   : > { %2854 = vmatpush1.bf16.msra.mxu0 %v4315_v36  ;;  %3112 = vmatpush1.bf16.msra.mxu1 %v4318_v37  ;;  %v4416_v36 = vld [vmem:[%s4747_s14 + $0xa64] ss:$16 sps:$4 sm:$0xff]   ;;  %v4419_v37 = vld [vmem:[%s4747_s14 + $0xa6c] ss:$16 sps:$4 sm:$0xff]  }
 0x17c   : > { %2855 = vmatprep.subr.bf16.mxu0 %v4323_v38  ;;  %3113 = vmatprep.subr.bf16.mxu1 %v4326_v39  ;;  %v4414_v38 = vld [vmem:[%s4747_s14 + $0xa60] ss:$16 sps:$4 sm:$0xff]   ;;  %v4417_v39 = vld [vmem:[%s4747_s14 + $0xa68] ss:$16 sps:$4 sm:$0xff]  }
 0x17f   : > { %2856 = vmatpush1.bf16.msra.mxu0 %v4321_v40  ;;  %3114 = vmatpush1.bf16.msra.mxu1 %v4324_v41  ;;  %v4422_v40 = vld [vmem:[%s4747_s14 + $0xa84] ss:$16 sps:$4 sm:$0xff]   ;;  %v4425_v41 = vld [vmem:[%s4747_s14 + $0xa8c] ss:$16 sps:$4 sm:$0xff]  }
 0x180   : > { %2857 = vmatprep.subr.bf16.mxu0 %v4329_v42  ;;  %3115 = vmatprep.subr.bf16.mxu1 %v4332_v43  ;;  %v4420_v42 = vld [vmem:[%s4747_s14 + $0xa80] ss:$16 sps:$4 sm:$0xff]   ;;  %v4423_v43 = vld [vmem:[%s4747_s14 + $0xa88] ss:$16 sps:$4 sm:$0xff]  }
 0x183   : > { %2858 = vmatpush1.bf16.msra.mxu0 %v4327_v44  ;;  %3116 = vmatpush1.bf16.msra.mxu1 %v4330_v45  ;;  %v4428_v44 = vld [vmem:[%s4747_s14 + $0xaa4] ss:$16 sps:$4 sm:$0xff]   ;;  %v4431_v45 = vld [vmem:[%s4747_s14 + $0xaac] ss:$16 sps:$4 sm:$0xff]  }
 0x184   : > { %2859 = vmatprep.subr.bf16.mxu0 %v4335_v46  ;;  %3117 = vmatprep.subr.bf16.mxu1 %v4338_v47  ;;  %v4426_v46 = vld [vmem:[%s4747_s14 + $0xaa0] ss:$16 sps:$4 sm:$0xff]   ;;  %v4429_v47 = vld [vmem:[%s4747_s14 + $0xaa8] ss:$16 sps:$4 sm:$0xff]  }
 0x187   : > { %2860 = vmatpush1.bf16.msra.mxu0 %v4333_v48  ;;  %3118 = vmatpush1.bf16.msra.mxu1 %v4336_v49  ;;  %v4434_v48 = vld [vmem:[%s4747_s14 + $0xac4] ss:$16 sps:$4 sm:$0xff]   ;;  %v4437_v49 = vld [vmem:[%s4747_s14 + $0xacc] ss:$16 sps:$4 sm:$0xff]  }
 0x188   : > { %2861 = vmatprep.subr.bf16.mxu0 %v4341_v50  ;;  %3119 = vmatprep.subr.bf16.mxu1 %v4344_v51  ;;  %v4432_v50 = vld [vmem:[%s4747_s14 + $0xac0] ss:$16 sps:$4 sm:$0xff]   ;;  %v4435_v51 = vld [vmem:[%s4747_s14 + $0xac8] ss:$16 sps:$4 sm:$0xff]  }
 0x18b   : > { %2862 = vmatpush1.bf16.msra.mxu0 %v4339_v52  ;;  %3120 = vmatpush1.bf16.msra.mxu1 %v4342_v53  ;;  %v4440_v52 = vld [vmem:[%s4747_s14 + $0xae4] ss:$16 sps:$4 sm:$0xff]   ;;  %v4443_v53 = vld [vmem:[%s4747_s14 + $0xaec] ss:$16 sps:$4 sm:$0xff]  }
 0x18c   : > { %2863 = vmatprep.subr.bf16.mxu0 %v4347_v54  ;;  %3121 = vmatprep.subr.bf16.mxu1 %v4350_v55  ;;  %v4438_v54 = vld [vmem:[%s4747_s14 + $0xae0] ss:$16 sps:$4 sm:$0xff]   ;;  %v4441_v55 = vld [vmem:[%s4747_s14 + $0xae8] ss:$16 sps:$4 sm:$0xff]  }
 0x18f   : > { %2864 = vmatpush1.bf16.msra.mxu0 %v4345_v56  ;;  %3122 = vmatpush1.bf16.msra.mxu1 %v4348_v57  ;;  %v4446_v56 = vld [vmem:[%s4747_s14 + $0xb04] ss:$16 sps:$4 sm:$0xff]   ;;  %v4449_v57 = vld [vmem:[%s4747_s14 + $0xb0c] ss:$16 sps:$4 sm:$0xff]  }
 0x190   : > { %2865 = vmatprep.subr.bf16.mxu0 %v4353_v58  ;;  %3123 = vmatprep.subr.bf16.mxu1 %v4356_v59  ;;  %v4444_v58 = vld [vmem:[%s4747_s14 + $0xb00] ss:$16 sps:$4 sm:$0xff]   ;;  %v4447_v59 = vld [vmem:[%s4747_s14 + $0xb08] ss:$16 sps:$4 sm:$0xff]  }
 0x193   : > { %2866 = vmatpush1.bf16.msra.mxu0 %v4351_v60  ;;  %3124 = vmatpush1.bf16.msra.mxu1 %v4354_v61  ;;  %v4452_v60 = vld [vmem:[%s4747_s14 + $0xb24] ss:$16 sps:$4 sm:$0xff]   ;;  %v4455_v61 = vld [vmem:[%s4747_s14 + $0xb2c] ss:$16 sps:$4 sm:$0xff]  }
 0x194   : > { %2867 = vmatprep.subr.bf16.mxu0 %v4359_v62  ;;  %3125 = vmatprep.subr.bf16.mxu1 %v4362_v63  ;;  %v4450_v62 = vld [vmem:[%s4747_s14 + $0xb20] ss:$16 sps:$4 sm:$0xff]   ;;  %v4453_v63 = vld [vmem:[%s4747_s14 + $0xb28] ss:$16 sps:$4 sm:$0xff]  }
 0x197   : > { %2868 = vmatpush1.bf16.msra.mxu0 %v4357_v0  ;;  %3126 = vmatpush1.bf16.msra.mxu1 %v4360_v1  ;;  %v4458_v0 = vld [vmem:[%s4747_s14 + $0xb44] ss:$16 sps:$4 sm:$0xff]   ;;  %v4461_v1 = vld [vmem:[%s4747_s14 + $0xb4c] ss:$16 sps:$4 sm:$0xff]  }
 0x198   : > { %2869 = vmatprep.subr.bf16.mxu0 %v4365_v2  ;;  %3127 = vmatprep.subr.bf16.mxu1 %v4368_v3  ;;  %v4456_v2 = vld [vmem:[%s4747_s14 + $0xb40] ss:$16 sps:$4 sm:$0xff]   ;;  %v4459_v3 = vld [vmem:[%s4747_s14 + $0xb48] ss:$16 sps:$4 sm:$0xff]  }
 0x19b   : > { %2870 = vmatpush1.bf16.msra.mxu0 %v4363_v4  ;;  %3128 = vmatpush1.bf16.msra.mxu1 %v4366_v5  ;;  %v4464_v4 = vld [vmem:[%s4747_s14 + $0xb64] ss:$16 sps:$4 sm:$0xff]   ;;  %v4467_v5 = vld [vmem:[%s4747_s14 + $0xb6c] ss:$16 sps:$4 sm:$0xff]  }
 0x19c   : > { %2871 = vmatprep.subr.bf16.mxu0 %v4371_v6  ;;  %3129 = vmatprep.subr.bf16.mxu1 %v4374_v7  ;;  %v4462_v6 = vld [vmem:[%s4747_s14 + $0xb60] ss:$16 sps:$4 sm:$0xff]   ;;  %v4465_v7 = vld [vmem:[%s4747_s14 + $0xb68] ss:$16 sps:$4 sm:$0xff]  }
 0x19f   : > { %2872 = vmatpush1.bf16.msra.mxu0 %v4369_v8  ;;  %3130 = vmatpush1.bf16.msra.mxu1 %v4372_v9  ;;  %v4470_v8 = vld [vmem:[%s4747_s14 + $0xb84] ss:$16 sps:$4 sm:$0xff]   ;;  %v4473_v9 = vld [vmem:[%s4747_s14 + $0xb8c] ss:$16 sps:$4 sm:$0xff]  }
 0x1a0   : > { %2873 = vmatprep.subr.bf16.mxu0 %v4377_v10  ;;  %3131 = vmatprep.subr.bf16.mxu1 %v4380_v11  ;;  %v4468_v10 = vld [vmem:[%s4747_s14 + $0xb80] ss:$16 sps:$4 sm:$0xff]   ;;  %v4471_v11 = vld [vmem:[%s4747_s14 + $0xb88] ss:$16 sps:$4 sm:$0xff]  }
 0x1a3   : > { %2874 = vmatpush1.bf16.msra.mxu0 %v4375_v12  ;;  %3132 = vmatpush1.bf16.msra.mxu1 %v4378_v13  ;;  %v4476_v12 = vld [vmem:[%s4747_s14 + $0xba4] ss:$16 sps:$4 sm:$0xff]   ;;  %v4479_v13 = vld [vmem:[%s4747_s14 + $0xbac] ss:$16 sps:$4 sm:$0xff]  }
 0x1a4   : > { %2875 = vmatprep.subr.bf16.mxu0 %v4383_v14  ;;  %3133 = vmatprep.subr.bf16.mxu1 %v4386_v15  ;;  %v4474_v14 = vld [vmem:[%s4747_s14 + $0xba0] ss:$16 sps:$4 sm:$0xff]   ;;  %v4477_v15 = vld [vmem:[%s4747_s14 + $0xba8] ss:$16 sps:$4 sm:$0xff]  }
 0x1a7   : > { %2876 = vmatpush1.bf16.msra.mxu0 %v4381_v16  ;;  %3134 = vmatpush1.bf16.msra.mxu1 %v4384_v17  ;;  %v4482_v16 = vld [vmem:[%s4747_s14 + $0xbc4] ss:$16 sps:$4 sm:$0xff]   ;;  %v4485_v17 = vld [vmem:[%s4747_s14 + $0xbcc] ss:$16 sps:$4 sm:$0xff]  }
 0x1a8   : > { %2877 = vmatprep.subr.bf16.mxu0 %v4389_v18  ;;  %3135 = vmatprep.subr.bf16.mxu1 %v4392_v19  ;;  %v4480_v18 = vld [vmem:[%s4747_s14 + $0xbc0] ss:$16 sps:$4 sm:$0xff]   ;;  %v4483_v19 = vld [vmem:[%s4747_s14 + $0xbc8] ss:$16 sps:$4 sm:$0xff]  }
 0x1ab   : > { %2878 = vmatpush1.bf16.msra.mxu0 %v4387_v20  ;;  %3136 = vmatpush1.bf16.msra.mxu1 %v4390_v21  ;;  %v4488_v20 = vld [vmem:[%s4747_s14 + $0xbe4] ss:$16 sps:$4 sm:$0xff]   ;;  %v4491_v21 = vld [vmem:[%s4747_s14 + $0xbec] ss:$16 sps:$4 sm:$0xff]  }
 0x1ac   : > { %2890 = vmatprep.subr.bf16.mxu0 %v4398_v22  ;;  %3148 = vmatprep.subr.bf16.mxu1 %v4401_v23  ;;  %v4486_v22 = vld [vmem:[%s4747_s14 + $0xbe0] ss:$16 sps:$4 sm:$0xff]   ;;  %v4489_v23 = vld [vmem:[%s4747_s14 + $0xbe8] ss:$16 sps:$4 sm:$0xff]  }
 0x1ae   : > { %2880 = vmatmul.mubr.bf16.vlgmr.msra.gmra.mrb[0].mxu0 %v4393_v24  ;;  %3138 = vmatmul.mubr.bf16.vlgmr.msra.gmra.mrb[0].mxu1 %v4393_v24  ;;  %v4492_v24 = vld [vmem:[%s4745_s13 + $0x28] ss:$48 sps:$4 sm:$0xff]  }
 0x1af   : > { %2891 = vmatpush1.bf16.msra.mxu0 %v4396_v25  ;;  %3149 = vmatpush1.bf16.msra.mxu1 %v4399_v26  ;;  %v291_v25 = vld [vmem:[#allocation2] sm:$0xff]  ;;  %v293_v26 = vld [vmem:[#allocation2 + $0x10] sm:$0xff] }
 0x1b0   : > { %2892 = vmatprep.subr.bf16.mxu0 %v4404_v27  ;;  %3150 = vmatprep.subr.bf16.mxu1 %v4407_v28  ;;  %v292_v27 = vld [vmem:[#allocation2 + $0x8] sm:$0xff]  ;;  %v294_v28 = vld [vmem:[#allocation2 + $0x18] sm:$0xff] }
 0x1b1   : > { %2922 = vmatprep.mubr.bf16.mxu0 %v4494_v29  ;;  %3180 = vmatprep.mubr.bf16.mxu1 %v4494_v29 }
 0x1b3   : > { %2893 = vmatpush1.bf16.msra.mxu0 %v4402_v30  ;;  %3151 = vmatpush1.bf16.msra.mxu1 %v4405_v31  ;;  %v295_v31 = vld [vmem:[#allocation2 + $0x20] sm:$0xff] }
 0x1b4   : > { %2894 = vmatprep.subr.bf16.mxu0 %v4410_v32  ;;  %3152 = vmatprep.subr.bf16.mxu1 %v4413_v33  ;;  %v297_v32 = vld [vmem:[#allocation2 + $0x30] sm:$0xff] }
 0x1b7   : > { %2895 = vmatpush1.bf16.msra.mxu0 %v4408_v34  ;;  %3153 = vmatpush1.bf16.msra.mxu1 %v4411_v35 }
 0x1b8   : > { %2896 = vmatprep.subr.bf16.mxu0 %v4416_v36  ;;  %3154 = vmatprep.subr.bf16.mxu1 %v4419_v37  ;;  %v296_v37 = vld [vmem:[#allocation2 + $0x28] sm:$0xff] }
 0x1bb   : > { %2897 = vmatpush1.bf16.msra.mxu0 %v4414_v38  ;;  %3155 = vmatpush1.bf16.msra.mxu1 %v4417_v39  ;;  %v298_v38 = vld [vmem:[#allocation2 + $0x38] sm:$0xff] }
 0x1bc   : > { %2898 = vmatprep.subr.bf16.mxu0 %v4422_v40  ;;  %3156 = vmatprep.subr.bf16.mxu1 %v4425_v41 }
 0x1bf   : > { %2899 = vmatpush1.bf16.msra.mxu0 %v4420_v42  ;;  %3157 = vmatpush1.bf16.msra.mxu1 %v4423_v43 }
 0x1c0   : > { %2900 = vmatprep.subr.bf16.mxu0 %v4428_v44  ;;  %3158 = vmatprep.subr.bf16.mxu1 %v4431_v45 }
 0x1c3   : > { %2901 = vmatpush1.bf16.msra.mxu0 %v4426_v46  ;;  %3159 = vmatpush1.bf16.msra.mxu1 %v4429_v47 }
 0x1c4   : > { %2902 = vmatprep.subr.bf16.mxu0 %v4434_v48  ;;  %3160 = vmatprep.subr.bf16.mxu1 %v4437_v49  ;;  %v3221_v49 = vlaneseq (!%p3794_p3) }
 0x1c7   : > { %2903 = vmatpush1.bf16.msra.mxu0 %v4432_v50  ;;  %3161 = vmatpush1.bf16.msra.mxu1 %v4435_v51  ;;  %v3222_v50 = vshrl.u32 (!%p3794_p3), %v3221_v49, 7  ;;  %v3219_v51 = vld [vmem:[#allocation6] sm:$0xf] (!%p3794_p3) }
 0x1c8   : > { %2904 = vmatprep.subr.bf16.mxu0 %v4440_v52  ;;  %3162 = vmatprep.subr.bf16.mxu1 %v4443_v53 }
 0x1c9   : > { %v3223_v53 = vsub.s32 (!%p3794_p3), 0, %v3222_v50 }
 0x1cb   : > { %2905 = vmatpush1.bf16.msra.mxu0 %v4438_v54  ;;  %3163 = vmatpush1.bf16.msra.mxu1 %v4441_v55  ;;  %v3227_v54 = vsub.s32 (!%p3794_p3), 1, %v3222_v50  ;;  %v3231_v55 = vsub.s32 (!%p3794_p3), 2, %v3222_v50 }
 0x1cc   : > { %2906 = vmatprep.subr.bf16.mxu0 %v4446_v56  ;;  %3164 = vmatprep.subr.bf16.mxu1 %v4449_v57  ;;  %v3235_v56 = vsub.s32 (!%p3794_p3), 3, %v3222_v50 }
 0x1cf   : > { %2907 = vmatpush1.bf16.msra.mxu0 %v4444_v58  ;;  %3165 = vmatpush1.bf16.msra.mxu1 %v4447_v59 }
 0x1d0   : > { %2908 = vmatprep.subr.bf16.mxu0 %v4452_v60  ;;  %3166 = vmatprep.subr.bf16.mxu1 %v4455_v61  ;;  %v3224_v60 = vrot.slane (!%p3794_p3), %v3219_v51, %v3223_v53  ;;  %v3228_v61 = vrot.slane (!%p3794_p3), %v3219_v51, %v3227_v54 }
 0x1d3   : > { %2909 = vmatpush1.bf16.msra.mxu0 %v4450_v62  ;;  %3167 = vmatpush1.bf16.msra.mxu1 %v4453_v63  ;;  %v3232_v62 = vrot.slane (!%p3794_p3), %v3219_v51, %v3231_v55  ;;  %v3236_v63 = vrot.slane (!%p3794_p3), %v3219_v51, %v3235_v56 }
 0x1d4   : > { %2910 = vmatprep.subr.bf16.mxu0 %v4458_v0  ;;  %3168 = vmatprep.subr.bf16.mxu1 %v4461_v1 }
 0x1d7   : > { %2911 = vmatpush1.bf16.msra.mxu0 %v4456_v2  ;;  %3169 = vmatpush1.bf16.msra.mxu1 %v4459_v3 }
 0x1d8   : > { %2912 = vmatprep.subr.bf16.mxu0 %v4464_v4  ;;  %3170 = vmatprep.subr.bf16.mxu1 %v4467_v5 }
 0x1db   : > { %2913 = vmatpush1.bf16.msra.mxu0 %v4462_v6  ;;  %3171 = vmatpush1.bf16.msra.mxu1 %v4465_v7 }
 0x1dc   : > { %2914 = vmatprep.subr.bf16.mxu0 %v4470_v8  ;;  %3172 = vmatprep.subr.bf16.mxu1 %v4473_v9 }
 0x1df   : > { %2915 = vmatpush1.bf16.msra.mxu0 %v4468_v10  ;;  %3173 = vmatpush1.bf16.msra.mxu1 %v4471_v11 }
 0x1e0   : > { %2916 = vmatprep.subr.bf16.mxu0 %v4476_v12  ;;  %3174 = vmatprep.subr.bf16.mxu1 %v4479_v13 }
 0x1e3   : > { %2917 = vmatpush1.bf16.msra.mxu0 %v4474_v14  ;;  %3175 = vmatpush1.bf16.msra.mxu1 %v4477_v15 }
 0x1e4   : > { %2918 = vmatprep.subr.bf16.mxu0 %v4482_v16  ;;  %3176 = vmatprep.subr.bf16.mxu1 %v4485_v17 }
 0x1e7   : > { %2919 = vmatpush1.bf16.msra.mxu0 %v4480_v18  ;;  %3177 = vmatpush1.bf16.msra.mxu1 %v4483_v19 }
 0x1e8   : > { %2920 = vmatprep.subr.bf16.mxu0 %v4488_v20  ;;  %3178 = vmatprep.subr.bf16.mxu1 %v4491_v21 }
 0x1eb   : > { %2921 = vmatpush1.bf16.msra.mxu0 %v4486_v22  ;;  %3179 = vmatpush1.bf16.msra.mxu1 %v4489_v23 }
 0x1ee   : > { %2923 = vmatmul.mubr.bf16.vlgmr.msra.gmra.mrb[0].mxu0 %v4492_v24  ;;  %3181 = vmatmul.mubr.bf16.vlgmr.msra.gmra.mrb[0].mxu1 %v4492_v24 }
 0x2c1   : > { %v2924_v29 = vpop.f32.mrb[0].mxu0  ;;  %v3182_v30 = vpop.f32.mrb[0].mxu1  ;;  %3210 = sbr.rel (%p3794_p3) target bundleno = 892 (0x37c), region = 71 }
 0x2c2   : > { %v3191_v33 = vadd.f32 %v2924_v29, %v291_v25  ;;  %v3193_v34 = vadd.f32 %v3182_v30, %v293_v26  ;;  %v2926_v35 = vpop.f32.mrb[1].mxu0  ;;  %v3184_v36 = vpop.f32.mrb[1].mxu1 }
 0x2c3   : > { %v3192_v39 = vadd.f32 %v2926_v35, %v292_v27  ;;  %v3194_v40 = vadd.f32 %v3184_v36, %v294_v28  ;;  %v2928_v41 = vpop.f32.mrb[2].mxu0  ;;  %v3186_v42 = vpop.f32.mrb[2].mxu1 }
 0x2c4   : > { %3199 = vst [vmem:[#allocation2] sm:$0xff] %v3191_v33  ;;  %3201 = vst [vmem:[#allocation2 + $0x10] sm:$0xff] %v3193_v34  ;;  %v3195_v43 = vadd.f32 %v2928_v41, %v295_v31  ;;  %v3197_v44 = vadd.f32 %v3186_v42, %v297_v32  ;;  %v2930_v45 = vpop.f32.mrb[3].mxu0  ;;  %v3188_v46 = vpop.f32.mrb[3].mxu1 }
 0x2c5   : > { %3200 = vst [vmem:[#allocation2 + $0x8] sm:$0xff] %v3192_v39  ;;  %3202 = vst [vmem:[#allocation2 + $0x18] sm:$0xff] %v3194_v40  ;;  %v3196_v47 = vadd.f32 %v2930_v45, %v296_v37  ;;  %v3198_v48 = vadd.f32 %v3188_v46, %v298_v38 }
 0x2c6   : > { %3203 = vst [vmem:[#allocation2 + $0x20] sm:$0xff] %v3195_v43  ;;  %3205 = vst [vmem:[#allocation2 + $0x30] sm:$0xff] %v3197_v44 }
 0x2c7   : > { %3204 = vst [vmem:[#allocation2 + $0x28] sm:$0xff] %v3196_v47  ;;  %3206 = vst [vmem:[#allocation2 + $0x38] sm:$0xff] %v3198_v48 }
 0x2cb   : > { %v3211_v52 = vld [vmem:[#allocation2] sm:$0xff]  ;;  %v3213_v58 = vld [vmem:[#allocation2 + $0x10] sm:$0xff] }
 0x2cc   : > { %v3212_v57 = vld [vmem:[#allocation2 + $0x8] sm:$0xff]  ;;  %v3214_v59 = vld [vmem:[#allocation2 + $0x18] sm:$0xff]  ;;  %v3241_v4 = vadd.f32 %v3224_v60, %v3211_v52  ;;  %v3243_v6 = vadd.f32 %v3232_v62, %v3213_v58 }
 0x2cd   : > { %v3215_v0 = vld [vmem:[#allocation2 + $0x20] sm:$0xff]  ;;  %v3217_v2 = vld [vmem:[#allocation2 + $0x30] sm:$0xff]  ;;  %v3242_v5 = vadd.f32 %v3228_v61, %v3212_v57  ;;  %v3244_v7 = vadd.f32 %v3236_v63, %v3214_v59 }
 0x2ce   : > { %v3216_v1 = vld [vmem:[#allocation2 + $0x28] sm:$0xff]  ;;  %v3218_v3 = vld [vmem:[#allocation2 + $0x38] sm:$0xff]  ;;  %v3245_v8 = vadd.f32 %v3224_v60, %v3215_v0  ;;  %v3247_v10 = vadd.f32 %v3232_v62, %v3217_v2  ;;  %v3249_v11 = vmul.f32 %v3241_v4, %v3241_v4  ;;  %v3251_v13 = vmul.f32 %v3243_v6, %v3243_v6 }
 0x2cf   : > { %v3246_v9 = vadd.f32 %v3228_v61, %v3216_v1  ;;  %v3250_v12 = vmul.f32 %v3242_v5, %v3242_v5  ;;  %v3248_v14 = vadd.f32 %v3236_v63, %v3218_v3  ;;  %v3252_v18 = vmul.f32 %v3244_v7, %v3244_v7 }
 0x2d0   : > { %v3253_v15 = vmul.f32 %v3245_v8, %v3245_v8  ;;  %v3255_v17 = vmul.f32 %v3247_v10, %v3247_v10 }
 0x2d1   : > { %v3254_v16 = vmul.f32 %v3246_v9, %v3246_v9  ;;  %v3257_v19 = vadd.f32 %v3250_v12, %v3249_v11  ;;  %v3256_v22 = vmul.f32 %v3248_v14, %v3248_v14 }
 0x2d3   : > { %v3262_v20 = vadd.f32 %v3254_v16, %v3253_v15  ;;  %v3258_v21 = vadd.f32 %v3257_v19, %v3251_v13 }
 0x2d5   : > { %v3263_v23 = vadd.f32 %v3262_v20, %v3255_v17  ;;  %v3259_v24 = vadd.f32 %v3258_v21, %v3252_v18 }
 0x2d7   : > { %3260 = vadd.xlane.f32.xlu0 %v3259_v24  ;;  %v3264_v25 = vadd.f32 %v3263_v23, %v3256_v22 }
 0x2db   : > { %3265 = vadd.xlane.f32.xlu0 %v3264_v25 }
 0x364   : > { %v3261_v26 = vpop.xlane.xlu0 %3260 }
 0x365   : > { %v3267_v27 = vmax.f32 %v3261_v26, 1e-24 }
 0x367   : > { %4495 = vrsqrt.f32 %v3267_v27 }
 0x368   : > { %v3266_v28 = vpop.xlane.xlu0 %3265 }
 0x369   : > { %v3268_v29 = vmax.f32 %v3266_v28, 1e-24 }
 0x36b   : > { %4497 = vrsqrt.f32 %v3268_v29 }
 0x371   : > { %v4496_v30 = vpop.eup %4495 }
 0x372   : > { %v3271_v31 = vmul.f32 %v4496_v30, %v3241_v4  ;;  %v3272_v32 = vmul.f32 %v4496_v30, %v3242_v5  ;;  %v3273_v33 = vmul.f32 %v4496_v30, %v3243_v6  ;;  %v3274_v34 = vmul.f32 %v4496_v30, %v3244_v7 }
 0x374   : > { %3279 = vst [vmem:[%s5208_s3] sm:$0xff] %v3271_v31  ;;  %3280 = vst [vmem:[%s5208_s3 + $0x8] sm:$0xff] %v3272_v32  ;;  %v3804_v35 = vpack.c.bf16 %v3272_v32, %v3271_v31  ;;  %v3805_v36 = vpack.c.bf16 %v3274_v34, %v3273_v33 }
 0x375   : > { %3281 = vst [vmem:[%s5208_s3 + $0x10] sm:$0xff] %v3273_v33  ;;  %3282 = vst [vmem:[%s5208_s3 + $0x18] sm:$0xff] %v3274_v34  ;;  %v4498_v37 = vpop.eup %4497 }
 0x376   : > { %3311 = vst [vmem:[%s5209_s4] sm:$0xff] %v3804_v35  ;;  %3312 = vst [vmem:[%s5209_s4 + $0x8] sm:$0xff] %v3805_v36  ;;  %v3275_v38 = vmul.f32 %v4498_v37, %v3245_v8  ;;  %v3276_v39 = vmul.f32 %v4498_v37, %v3246_v9  ;;  %v3277_v40 = vmul.f32 %v4498_v37, %v3247_v10 }
 0x377   : > { %v3278_v41 = vmul.f32 %v4498_v37, %v3248_v14 }
 0x378   : > { %3283 = vst [vmem:[%s5208_s3 + $0x20] sm:$0xff] %v3275_v38  ;;  %3284 = vst [vmem:[%s5208_s3 + $0x28] sm:$0xff] %v3276_v39  ;;  %v3806_v42 = vpack.c.bf16 %v3276_v39, %v3275_v38 }
 0x379   : > { %3285 = vst [vmem:[%s5208_s3 + $0x30] sm:$0xff] %v3277_v40  ;;  %3286 = vst [vmem:[%s5208_s3 + $0x38] sm:$0xff] %v3278_v41  ;;  %v3807_v43 = vpack.c.bf16 %v3278_v41, %v3277_v40 }
 0x37a   : > { %3313 = vst [vmem:[%s5209_s4 + $0x10] sm:$0xff] %v3806_v42 }
 0x37b   : > { %3314 = vst [vmem:[%s5209_s4 + $0x18] sm:$0xff] %v3807_v43 }
 0x37c PF: > { %p16_p6 = scmp.ge.s32.totalorder %s4647_s20, 4   ;;  %s5225_s15 = smov %s4585_s16 }
 0x37d   : > { %s5226_s16 = smov %s4589_s17  ;;  %s5227_s17 = smov %s4657_s23 }
 0x37e   : > { %s5228_s18 = smov %s4647_s20  ;;  %18 = sbr.rel (!%p16_p6) target bundleno = 4 (0x4), region = 119 }
 0x385   :  { %3332 = vsyncpa [#allocation5], 1 }
 0x386   :  { %3334 = vsyncpa [#allocation5 + $0x1], 1 }
 0x387   :  { %3335 = vsyncpa [#allocation7], 1 }

</bundles_post_ra>
